<compile_context>
chip_gen: v7x
topology: tpu7x:2x2x1
jax: 0.10.0
libtpu: 0.0.40
codegen_flags: <defaults>
</compile_context>

<pallas_src>
import math
import functools

import jax
import jax.numpy as jnp
from jax.experimental import pallas as pl
from jax.experimental.pallas import tpu as pltpu

# ---- hyperparameters mirroring the `args` globals of PASTS_model.py ----
D_K = D_V = 16          # args.aemb
N_HEADS = 2             # args.speaker_head_num
IMAGE_N_HEADS = 2       # image_n_heads (= speaker_head_num)
D_FF = 64               # args.proj_hidden
HIDDEN = 32             # args.h_dim (hidden_size)
FEATURE = 32            # feature_size
N_LAYERS = 2            # args.speaker_layer_num (n_layers_encoder)
N_VIEWS = 36
LN_EPS = 1e-5
ATTN_SCALE = 1.0 / math.sqrt(D_K)

ATTN_W = IMAGE_N_HEADS * N_VIEWS          # 72
OUT_W = 256                               # lane-dense output slab width
PAD_W = OUT_W - 2 * HIDDEN - ATTN_W       # 120


# --------------------------- in-kernel helpers -------------------------------

def _layernorm(y):
    mean = jnp.mean(y, axis=-1, keepdims=True)
    var = jnp.mean((y - mean) ** 2, axis=-1, keepdims=True)
    return (y - mean) * jax.lax.rsqrt(var + LN_EPS)


def _softmax_rows(s):
    # Exact softmax (exact division) for parity with the PyTorch reference.
    s = s - jnp.max(s, axis=-1, keepdims=True)
    e = jnp.exp(s)
    return e / jnp.sum(e, axis=-1, keepdims=True)


# --------------------------- fused encoder kernel ----------------------------

def _pasts_encoder_kernel(act_ref, feat_ref, pe_ref, mask_ref, bid_ref, sab_ref,
                          down_w_ref, down_b_ref,
                          img_wq_ref, img_wkv_ref, img_fc_ref,
                          lyr_wqkv_ref, lyr_fc_ref, lyr_w1_ref, lyr_w2_ref,
                          out_ref, *, seq_len, batch_per_block):
    R = batch_per_block * seq_len
    contract_last = (((1,), (1,)), ((), ()))   # dot over last axis of both

    mask = mask_ref[...]                       # (R, R*36) 0/1 f32 block-diag
    bid = bid_ref[...]                         # (R*36, 36) block identity

    # ---- down_size projection (drop_feat / speaker dropout are identity) ----
    # TODO(synk): dropout layers are eval-mode identity; no RNG in kernel.
    x = act_ref[...]                                                  # (R, F)
    ctx = jnp.dot(x, down_w_ref[...],
                  preferred_element_type=jnp.float32) + down_b_ref[...]

    # ---- image cross-attention: Q = ctx tokens, K/V = 36 views per token ----
    feats = feat_ref[...]                                             # (R*36, F)
    q = jnp.dot(ctx, img_wq_ref[...],
                preferred_element_type=jnp.float32)                   # (R, heads*dk)
    kv = jnp.dot(feats, img_wkv_ref[...],
                 preferred_element_type=jnp.float32)                  # (R*36, 2*heads*dk)

    v_ofs = IMAGE_N_HEADS * D_K
    ctx_heads = []
    attn_heads = []
    for h in range(IMAGE_N_HEADS):
        qh = q[:, h * D_K:(h + 1) * D_K]                              # (R, dk)
        kh = kv[:, h * D_K:(h + 1) * D_K]                             # (R*36, dk)
        vh = kv[:, v_ofs + h * D_V: v_ofs + (h + 1) * D_V]            # (R*36, dv)
        s_full = jax.lax.dot_general(qh, kh, contract_last,
                                     preferred_element_type=jnp.float32) * ATTN_SCALE
        # Compact block-diagonal scores to (R, 36): zero the off-blocks, then
        # one matmul against the block identity (MXU, no cross-lane shuffles).
        s_c = jnp.dot(s_full * mask, bid, preferred_element_type=jnp.float32)
        a_c = _softmax_rows(s_c)                                      # (R, 36)
        attn_heads.append(a_c)
        # Expand compacted probs back to (R, R*36) for the context matmul.
        a_full = jax.lax.dot_general(a_c, bid, contract_last,
                                     preferred_element_type=jnp.float32) * mask
        ctx_heads.append(jnp.dot(a_full, vh,
                                 preferred_element_type=jnp.float32))  # (R, dv)

    # Fused per-head output projection: one (R, heads*dv) @ (heads*dv, H).
    ctx_cat = jnp.concatenate(ctx_heads, axis=-1)
    y = ctx + jnp.dot(ctx_cat, img_fc_ref[...],
                      preferred_element_type=jnp.float32)
    enc_in = _layernorm(y)                                            # (R, H)
    attns = jnp.concatenate(attn_heads, axis=-1)                      # (R, heads*36)

    # ---- positional encoding (constant (L, H) input, repeated in-kernel) ----
    pe = pe_ref[...]
    if batch_per_block > 1:
        pe = jnp.concatenate([pe] * batch_per_block, axis=0)
    enc = enc_in + pe

    # ---- transformer encoder layers ----
    sa_bias = sab_ref[...]       # (R, R): 0 within a batch element, -1e9 across
    q_ofs, k_ofs, v2_ofs = 0, N_HEADS * D_K, 2 * N_HEADS * D_K
    for li in range(N_LAYERS):
        qkv = jnp.dot(enc, lyr_wqkv_ref[li],
                      preferred_element_type=jnp.float32)             # (R, 3*heads*dk)
        ctx_heads = []
        for h in range(N_HEADS):
            qh = qkv[:, q_ofs + h * D_K: q_ofs + (h + 1) * D_K]
            kh = qkv[:, k_ofs + h * D_K: k_ofs + (h + 1) * D_K]
            vh = qkv[:, v2_ofs + h * D_V: v2_ofs + (h + 1) * D_V]
            s = jax.lax.dot_general(qh, kh, contract_last,
                                    preferred_element_type=jnp.float32) * ATTN_SCALE
            s = s + sa_bias
            a = _softmax_rows(s)                                      # (R, R)
            ctx_heads.append(jnp.dot(a, vh,
                                     preferred_element_type=jnp.float32))
        ctx_cat = jnp.concatenate(ctx_heads, axis=-1)                 # (R, heads*dv)
        y = enc + jnp.dot(ctx_cat, lyr_fc_ref[li],
                          preferred_element_type=jnp.float32)
        enc = _layernorm(y)
        # position-wise FFN + residual + LayerNorm
        h1 = jnp.maximum(jnp.dot(enc, lyr_w1_ref[li],
                                 preferred_element_type=jnp.float32), 0.0)
        enc = _layernorm(jnp.dot(h1, lyr_w2_ref[li],
                                 preferred_element_type=jnp.float32) + enc)
        # NOTE: per-layer self-attention probs are intentionally NOT written
        # out — the reference discards enc_self_attns.

    # ---- lane-dense fused output slab: [enc_in | enc_out | attns | pad] ----
    pad = jnp.zeros((R, PAD_W), jnp.float32)
    out_ref[...] = jnp.concatenate([enc_in, enc, attns, pad], axis=-1)


# --------------------------- host-side wrapper --------------------------------

def positional_encoding(max_len, d_model):
    position = jnp.arange(max_len, dtype=jnp.float32)[:, None]
    div_term = jnp.exp(jnp.arange(0, d_model, 2, dtype=jnp.float32)
                       * (-math.log(10000.0) / d_model))
    pe = jnp.zeros((max_len, d_model), jnp.float32)
    pe = pe.at[:, 0::2].set(jnp.sin(position * div_term))
    pe = pe.at[:, 1::2].set(jnp.cos(position * div_term))
    return pe


def pasts_encoder_forward(packed, action_inputs, feature_inputs, pe,
                          *, batch_per_block=None):
    # action_inputs:  (B, L, FEATURE)
    # feature_inputs: (B, L, 36*FEATURE)
    B, L, F = action_inputs.shape
    if batch_per_block is None:
        # Fold the whole batch into one grid step: best on single-TC v5e/v6e.
        # On v7x set batch_per_block = max(1, B // 2) so grid=(2,) with
        # dimension_semantics=("parallel",) occupies both TensorCores.
        batch_per_block = B
    assert B % batch_per_block == 0
    R = batch_per_block * L
    G = B // batch_per_block

    act = action_inputs.reshape(B * L, F)
    feat = feature_inputs.reshape(B * L * N_VIEWS, F)

    # Precomputed constants (static shapes -> constant under jit), all passed
    # with constant index_maps so they stay VMEM-resident like the weights.
    r = jnp.arange(R)
    c = jnp.arange(R * N_VIEWS)
    img_mask = ((c[None, :] // N_VIEWS) == r[:, None]).astype(jnp.float32)      # (R, R*36)
    block_id = ((c[:, None] % N_VIEWS) ==
                jnp.arange(N_VIEWS)[None, :]).astype(jnp.float32)               # (R*36, 36)
    sa_bias = jnp.where((r[:, None] // L) == (r[None, :] // L),
                        0.0, -1e9).astype(jnp.float32)                          # (R, R)

    kernel = functools.partial(_pasts_encoder_kernel,
                               seq_len=L, batch_per_block=batch_per_block)

    def const2(arr):
        return pl.BlockSpec(arr.shape, lambda g: (0, 0))

    def const3(arr):
        return pl.BlockSpec(arr.shape, lambda g: (0, 0, 0))

    slab = pl.pallas_call(
        kernel,
        out_shape=jax.ShapeDtypeStruct((B * L, OUT_W), jnp.float32),
        grid=(G,),
        in_specs=[
            pl.BlockSpec((R, F), lambda g: (g, 0)),               # action tokens
            pl.BlockSpec((R * N_VIEWS, F), lambda g: (g, 0)),     # view features
            const2(pe),                                            # (L, H) pos enc
            const2(img_mask), const2(block_id), const2(sa_bias),
            const2(packed["down_w"]), const2(packed["down_b"]),
            const2(packed["img_wq"]), const2(packed["img_wkv"]), const2(packed["img_fc"]),
            const3(packed["lyr_wqkv"]), const3(packed["lyr_fc"]),
            const3(packed["lyr_w1"]), const3(packed["lyr_w2"]),
        ],
        out_specs=pl.BlockSpec((R, OUT_W), lambda g: (g, 0)),
        compiler_params=pltpu.CompilerParams(
            dimension_semantics=("parallel",)),
    )(act, feat, pe, img_mask, block_id, sa_bias,
      packed["down_w"], packed["down_b"],
      packed["img_wq"], packed["img_wkv"], packed["img_fc"],
      packed["lyr_wqkv"], packed["lyr_fc"], packed["lyr_w1"], packed["lyr_w2"])

    enc_in = slab[:, :HIDDEN].reshape(B, L, HIDDEN)
    enc_out = slab[:, HIDDEN:2 * HIDDEN].reshape(B, L, HIDDEN)
    attns = slab[:, 2 * HIDDEN:2 * HIDDEN + ATTN_W].reshape(B, L, ATTN_W)
    return enc_in, enc_out, attns


# --------------------------- params / main ------------------------------------

def init_params(key):
    keys = iter(jax.random.split(key, 64))

    def w(shape):
        return jax.random.normal(next(keys), shape, jnp.float32) * 0.05

    params = {
        "down_w": w((FEATURE, HIDDEN)),
        "down_b": w((1, HIDDEN)),
        "img_attn": dict(
            wq=w((HIDDEN, IMAGE_N_HEADS * D_K)),
            wk=w((FEATURE, IMAGE_N_HEADS * D_K)),
            wv=w((FEATURE, IMAGE_N_HEADS * D_V)),
            fc=w((IMAGE_N_HEADS * D_V, HIDDEN)),
        ),
        "layers": [],
    }
    for _ in range(N_LAYERS):
        params["layers"].append(dict(
            wq=w((HIDDEN, N_HEADS * D_K)),
            wk=w((HIDDEN, N_HEADS * D_K)),
            wv=w((HIDDEN, N_HEADS * D_V)),
            fc=w((N_HEADS * D_V, HIDDEN)),
            ffn_w1=w((HIDDEN, D_FF)),
            ffn_w2=w((D_FF, HIDDEN)),
        ))
    return params


def pack_params(params):
    """Concatenate wq|wk|wv and stack per-layer weights for the fused kernel."""
    img = params["img_attn"]
    return {
        "down_w": params["down_w"],
        "down_b": params["down_b"],
        "img_wq": img["wq"],
        "img_wkv": jnp.concatenate([img["wk"], img["wv"]], axis=1),   # (F, 2*heads*dk)
        "img_fc": img["fc"],
        "lyr_wqkv": jnp.stack(
            [jnp.concatenate([l["wq"], l["wk"], l["wv"]], axis=1)
             for l in params["layers"]]),                             # (NL, H, 3*heads*dk)
        "lyr_fc": jnp.stack([l["fc"] for l in params["layers"]]),
        "lyr_w1": jnp.stack([l["ffn_w1"] for l in params["layers"]]),
        "lyr_w2": jnp.stack([l["ffn_w2"] for l in params["layers"]]),
    }


if __name__ == "__main__":
    B, L = 2, 8
    key = jax.random.PRNGKey(0)
    k_param, k_act, k_feat = jax.random.split(key, 3)

    params = init_params(k_param)
    packed = pack_params(params)
    pe = positional_encoding(L, HIDDEN)          # hoisted: computed once

    action_inputs = jax.random.normal(k_act, (B, L, FEATURE), jnp.float32)
    feature_inputs = jax.random.normal(k_feat, (B, L, N_VIEWS * FEATURE),
                                       jnp.float32)

    forward = jax.jit(pasts_encoder_forward)
    enc_inputs, enc_outputs, attns = forward(packed, action_inputs,
                                             feature_inputs, pe)
    jax.block_until_ready((enc_inputs, enc_outputs, attns))

    assert enc_inputs.shape == (B, L, HIDDEN)
    assert enc_outputs.shape == (B, L, HIDDEN)
    assert attns.shape == (B, L, IMAGE_N_HEADS * N_VIEWS)
    assert bool(jnp.all(jnp.isfinite(enc_outputs)))
    print("KERNEL_OK")
</pallas_src>

<mosaic_0001>
module attributes {stable_mosaic.version = 11 : i64} {
  func.func @_pasts_encoder_kernel(%arg0: i32, %arg1: memref<16x32xf32, #tpu.memory_space<vmem>>, %arg2: memref<576x32xf32, #tpu.memory_space<vmem>>, %arg3: memref<8x32xf32, #tpu.memory_space<vmem>>, %arg4: memref<16x576xf32, #tpu.memory_space<vmem>>, %arg5: memref<576x36xf32, #tpu.memory_space<vmem>>, %arg6: memref<16x16xf32, #tpu.memory_space<vmem>>, %arg7: memref<32x32xf32, #tpu.memory_space<vmem>>, %arg8: memref<1x32xf32, #tpu.memory_space<vmem>>, %arg9: memref<32x32xf32, #tpu.memory_space<vmem>>, %arg10: memref<32x64xf32, #tpu.memory_space<vmem>>, %arg11: memref<32x32xf32, #tpu.memory_space<vmem>>, %arg12: memref<2x32x96xf32, #tpu.memory_space<vmem>>, %arg13: memref<2x32x32xf32, #tpu.memory_space<vmem>>, %arg14: memref<2x32x64xf32, #tpu.memory_space<vmem>>, %arg15: memref<2x64x32xf32, #tpu.memory_space<vmem>>, %arg16: memref<16x256xf32, #tpu.memory_space<vmem>>) attributes {dimension_semantics = [#tpu.dimension_semantics<parallel>], iteration_bounds = array<i64: 1>, scalar_prefetch = 0 : i64, scratch_operands = 0 : i64, tpu.core_type = #tpu.core_type<tc>, window_params = [{transform_indices = @transform_0, window_bounds = array<i64: 16, 32>}, {transform_indices = @transform_1, window_bounds = array<i64: 576, 32>}, {pipeline_mode = #tpu.pipeline_mode<synchronous>, transform_indices = @transform_2, window_bounds = array<i64: 8, 32>}, {pipeline_mode = #tpu.pipeline_mode<synchronous>, transform_indices = @transform_3, window_bounds = array<i64: 16, 576>}, {pipeline_mode = #tpu.pipeline_mode<synchronous>, transform_indices = @transform_4, window_bounds = array<i64: 576, 36>}, {pipeline_mode = #tpu.pipeline_mode<synchronous>, transform_indices = @transform_5, window_bounds = array<i64: 16, 16>}, {pipeline_mode = #tpu.pipeline_mode<synchronous>, transform_indices = @transform_6, window_bounds = array<i64: 32, 32>}, {pipeline_mode = #tpu.pipeline_mode<synchronous>, transform_indices = @transform_7, window_bounds = array<i64: 1, 32>}, {pipeline_mode = #tpu.pipeline_mode<synchronous>, transform_indices = @transform_8, window_bounds = array<i64: 32, 32>}, {pipeline_mode = #tpu.pipeline_mode<synchronous>, transform_indices = @transform_9, window_bounds = array<i64: 32, 64>}, {pipeline_mode = #tpu.pipeline_mode<synchronous>, transform_indices = @transform_10, window_bounds = array<i64: 32, 32>}, {pipeline_mode = #tpu.pipeline_mode<synchronous>, transform_indices = @transform_11, window_bounds = array<i64: 2, 32, 96>}, {pipeline_mode = #tpu.pipeline_mode<synchronous>, transform_indices = @transform_12, window_bounds = array<i64: 2, 32, 32>}, {pipeline_mode = #tpu.pipeline_mode<synchronous>, transform_indices = @transform_13, window_bounds = array<i64: 2, 32, 64>}, {pipeline_mode = #tpu.pipeline_mode<synchronous>, transform_indices = @transform_14, window_bounds = array<i64: 2, 64, 32>}, {transform_indices = @transform_15, window_bounds = array<i64: 16, 256>}]} {
    %c0 = arith.constant 0 : index
    %c0_0 = arith.constant 0 : index
    %0 = vector.load %arg4[%c0, %c0_0] : memref<16x576xf32, #tpu.memory_space<vmem>>, vector<16x576xf32>
    %c0_1 = arith.constant 0 : index
    %c0_2 = arith.constant 0 : index
    %1 = vector.load %arg5[%c0_1, %c0_2] : memref<576x36xf32, #tpu.memory_space<vmem>>, vector<576x36xf32>
    %c0_3 = arith.constant 0 : index
    %c0_4 = arith.constant 0 : index
    %2 = vector.load %arg1[%c0_3, %c0_4] : memref<16x32xf32, #tpu.memory_space<vmem>>, vector<16x32xf32>
    %c0_5 = arith.constant 0 : index
    %c0_6 = arith.constant 0 : index
    %3 = vector.load %arg7[%c0_5, %c0_6] : memref<32x32xf32, #tpu.memory_space<vmem>>, vector<32x32xf32>
    %cst = arith.constant dense<0.000000e+00> : vector<16x32xf32>
    %4 = tpu.matmul %2, %3, %cst {dimension_numbers = #tpu.dot_dimension_numbers<[1], [0], [0], [1], [0, 0, 1, 1], [], []>} : vector<16x32xf32>, vector<32x32xf32>, vector<16x32xf32> -> vector<16x32xf32>
    %c0_7 = arith.constant 0 : index
    %c0_8 = arith.constant 0 : index
    %5 = vector.load %arg8[%c0_7, %c0_8] : memref<1x32xf32, #tpu.memory_space<vmem>>, vector<1x32xf32>
    %6 = vector.broadcast %5 : vector<1x32xf32> to vector<16x32xf32>
    %7 = arith.addf %4, %6 : vector<16x32xf32>
    %c0_9 = arith.constant 0 : index
    %c0_10 = arith.constant 0 : index
    %8 = vector.load %arg2[%c0_9, %c0_10] : memref<576x32xf32, #tpu.memory_space<vmem>>, vector<576x32xf32>
    %c0_11 = arith.constant 0 : index
    %c0_12 = arith.constant 0 : index
    %9 = vector.load %arg9[%c0_11, %c0_12] : memref<32x32xf32, #tpu.memory_space<vmem>>, vector<32x32xf32>
    %cst_13 = arith.constant dense<0.000000e+00> : vector<16x32xf32>
    %10 = tpu.matmul %7, %9, %cst_13 {dimension_numbers = #tpu.dot_dimension_numbers<[1], [0], [0], [1], [0, 0, 1, 1], [], []>} : vector<16x32xf32>, vector<32x32xf32>, vector<16x32xf32> -> vector<16x32xf32>
    %c0_14 = arith.constant 0 : index
    %c0_15 = arith.constant 0 : index
    %11 = vector.load %arg10[%c0_14, %c0_15] : memref<32x64xf32, #tpu.memory_space<vmem>>, vector<32x64xf32>
    %cst_16 = arith.constant dense<0.000000e+00> : vector<576x64xf32>
    %12 = tpu.matmul %8, %11, %cst_16 {dimension_numbers = #tpu.dot_dimension_numbers<[1], [0], [0], [1], [0, 0, 1, 1], [], []>} : vector<576x32xf32>, vector<32x64xf32>, vector<576x64xf32> -> vector<576x64xf32>
    %13 = vector.extract_strided_slice %10 {offsets = [0, 0], sizes = [16, 16], strides = [1, 1]} : vector<16x32xf32> to vector<16x16xf32>
    %14 = vector.extract_strided_slice %12 {offsets = [0, 0], sizes = [576, 16], strides = [1, 1]} : vector<576x64xf32> to vector<576x16xf32>
    %15 = vector.extract_strided_slice %12 {offsets = [0, 32], sizes = [576, 16], strides = [1, 1]} : vector<576x64xf32> to vector<576x16xf32>
    %cst_17 = arith.constant dense<0.000000e+00> : vector<16x576xf32>
    %16 = tpu.matmul %13, %14, %cst_17 {dimension_numbers = #tpu.dot_dimension_numbers<[1], [1], [0], [0], [0, 0, 1, 0], [], []>} : vector<16x16xf32>, vector<576x16xf32>, vector<16x576xf32> -> vector<16x576xf32>
    %cst_18 = arith.constant 2.500000e-01 : f32
    %17 = vector.broadcast %cst_18 : f32 to vector<16x576xf32>
    %18 = arith.mulf %16, %17 : vector<16x576xf32>
    %19 = arith.mulf %18, %0 : vector<16x576xf32>
    %cst_19 = arith.constant dense<0.000000e+00> : vector<16x36xf32>
    %20 = tpu.matmul %19, %1, %cst_19 {dimension_numbers = #tpu.dot_dimension_numbers<[1], [0], [0], [1], [0, 0, 1, 1], [], []>} : vector<16x576xf32>, vector<576x36xf32>, vector<16x36xf32> -> vector<16x36xf32>
    %cst_20 = arith.constant dense<0xFF800000> : vector<16xf32>
    %21 = vector.multi_reduction <maximumf>, %20, %cst_20 [1] : vector<16x36xf32> to vector<16xf32>
    %22 = vector.shape_cast %21 : vector<16xf32> to vector<16x1xf32>
    %23 = vector.broadcast %22 : vector<16x1xf32> to vector<16x36xf32>
    %24 = arith.subf %20, %23 : vector<16x36xf32>
    %25 = math.exp %24 : vector<16x36xf32>
    %cst_21 = arith.constant dense<0.000000e+00> : vector<16xf32>
    %26 = vector.multi_reduction <add>, %25, %cst_21 [1] : vector<16x36xf32> to vector<16xf32>
    %27 = vector.shape_cast %26 : vector<16xf32> to vector<16x1xf32>
    %28 = vector.broadcast %27 : vector<16x1xf32> to vector<16x36xf32>
    %29 = arith.divf %25, %28 : vector<16x36xf32>
    %cst_22 = arith.constant dense<0.000000e+00> : vector<16x576xf32>
    %30 = tpu.matmul %29, %1, %cst_22 {dimension_numbers = #tpu.dot_dimension_numbers<[1], [1], [0], [0], [0, 0, 1, 0], [], []>} : vector<16x36xf32>, vector<576x36xf32>, vector<16x576xf32> -> vector<16x576xf32>
    %31 = arith.mulf %30, %0 : vector<16x576xf32>
    %cst_23 = arith.constant dense<0.000000e+00> : vector<16x16xf32>
    %32 = tpu.matmul %31, %15, %cst_23 {dimension_numbers = #tpu.dot_dimension_numbers<[1], [0], [0], [1], [0, 0, 1, 1], [], []>} : vector<16x576xf32>, vector<576x16xf32>, vector<16x16xf32> -> vector<16x16xf32>
    %33 = vector.extract_strided_slice %10 {offsets = [0, 16], sizes = [16, 16], strides = [1, 1]} : vector<16x32xf32> to vector<16x16xf32>
    %34 = vector.extract_strided_slice %12 {offsets = [0, 16], sizes = [576, 16], strides = [1, 1]} : vector<576x64xf32> to vector<576x16xf32>
    %35 = vector.extract_strided_slice %12 {offsets = [0, 48], sizes = [576, 16], strides = [1, 1]} : vector<576x64xf32> to vector<576x16xf32>
    %cst_24 = arith.constant dense<0.000000e+00> : vector<16x576xf32>
    %36 = tpu.matmul %33, %34, %cst_24 {dimension_numbers = #tpu.dot_dimension_numbers<[1], [1], [0], [0], [0, 0, 1, 0], [], []>} : vector<16x16xf32>, vector<576x16xf32>, vector<16x576xf32> -> vector<16x576xf32>
    %cst_25 = arith.constant 2.500000e-01 : f32
    %37 = vector.broadcast %cst_25 : f32 to vector<16x576xf32>
    %38 = arith.mulf %36, %37 : vector<16x576xf32>
    %39 = arith.mulf %38, %0 : vector<16x576xf32>
    %cst_26 = arith.constant dense<0.000000e+00> : vector<16x36xf32>
    %40 = tpu.matmul %39, %1, %cst_26 {dimension_numbers = #tpu.dot_dimension_numbers<[1], [0], [0], [1], [0, 0, 1, 1], [], []>} : vector<16x576xf32>, vector<576x36xf32>, vector<16x36xf32> -> vector<16x36xf32>
    %cst_27 = arith.constant dense<0xFF800000> : vector<16xf32>
    %41 = vector.multi_reduction <maximumf>, %40, %cst_27 [1] : vector<16x36xf32> to vector<16xf32>
    %42 = vector.shape_cast %41 : vector<16xf32> to vector<16x1xf32>
    %43 = vector.broadcast %42 : vector<16x1xf32> to vector<16x36xf32>
    %44 = arith.subf %40, %43 : vector<16x36xf32>
    %45 = math.exp %44 : vector<16x36xf32>
    %cst_28 = arith.constant dense<0.000000e+00> : vector<16xf32>
    %46 = vector.multi_reduction <add>, %45, %cst_28 [1] : vector<16x36xf32> to vector<16xf32>
    %47 = vector.shape_cast %46 : vector<16xf32> to vector<16x1xf32>
    %48 = vector.broadcast %47 : vector<16x1xf32> to vector<16x36xf32>
    %49 = arith.divf %45, %48 : vector<16x36xf32>
    %cst_29 = arith.constant dense<0.000000e+00> : vector<16x576xf32>
    %50 = tpu.matmul %49, %1, %cst_29 {dimension_numbers = #tpu.dot_dimension_numbers<[1], [1], [0], [0], [0, 0, 1, 0], [], []>} : vector<16x36xf32>, vector<576x36xf32>, vector<16x576xf32> -> vector<16x576xf32>
    %51 = arith.mulf %50, %0 : vector<16x576xf32>
    %cst_30 = arith.constant dense<0.000000e+00> : vector<16x16xf32>
    %52 = tpu.matmul %51, %35, %cst_30 {dimension_numbers = #tpu.dot_dimension_numbers<[1], [0], [0], [1], [0, 0, 1, 1], [], []>} : vector<16x576xf32>, vector<576x16xf32>, vector<16x16xf32> -> vector<16x16xf32>
    %53 = tpu.concatenate %32, %52 in 1 : vector<16x16xf32>, vector<16x16xf32> -> vector<16x32xf32>
    %c0_31 = arith.constant 0 : index
    %c0_32 = arith.constant 0 : index
    %54 = vector.load %arg11[%c0_31, %c0_32] : memref<32x32xf32, #tpu.memory_space<vmem>>, vector<32x32xf32>
    %cst_33 = arith.constant dense<0.000000e+00> : vector<16x32xf32>
    %55 = tpu.matmul %53, %54, %cst_33 {dimension_numbers = #tpu.dot_dimension_numbers<[1], [0], [0], [1], [0, 0, 1, 1], [], []>} : vector<16x32xf32>, vector<32x32xf32>, vector<16x32xf32> -> vector<16x32xf32>
    %56 = arith.addf %7, %55 : vector<16x32xf32>
    %cst_34 = arith.constant dense<0.000000e+00> : vector<16xf32>
    %57 = vector.multi_reduction <add>, %56, %cst_34 [1] : vector<16x32xf32> to vector<16xf32>
    %58 = vector.shape_cast %57 : vector<16xf32> to vector<16x1xf32>
    %cst_35 = arith.constant 3.200000e+01 : f32
    %59 = vector.broadcast %cst_35 : f32 to vector<16x1xf32>
    %60 = arith.divf %58, %59 : vector<16x1xf32>
    %61 = vector.broadcast %60 : vector<16x1xf32> to vector<16x32xf32>
    %62 = arith.subf %56, %61 : vector<16x32xf32>
    %63 = arith.mulf %62, %62 : vector<16x32xf32>
    %cst_36 = arith.constant dense<0.000000e+00> : vector<16xf32>
    %64 = vector.multi_reduction <add>, %63, %cst_36 [1] : vector<16x32xf32> to vector<16xf32>
    %65 = vector.shape_cast %64 : vector<16xf32> to vector<16x1xf32>
    %cst_37 = arith.constant 3.200000e+01 : f32
    %66 = vector.broadcast %cst_37 : f32 to vector<16x1xf32>
    %67 = arith.divf %65, %66 : vector<16x1xf32>
    %68 = vector.broadcast %60 : vector<16x1xf32> to vector<16x32xf32>
    %69 = arith.subf %56, %68 : vector<16x32xf32>
    %cst_38 = arith.constant 9.99999974E-6 : f32
    %70 = vector.broadcast %cst_38 : f32 to vector<16x1xf32>
    %71 = arith.addf %67, %70 : vector<16x1xf32>
    %72 = math.rsqrt %71 : vector<16x1xf32>
    %73 = vector.broadcast %72 : vector<16x1xf32> to vector<16x32xf32>
    %74 = arith.mulf %69, %73 : vector<16x32xf32>
    %75 = tpu.concatenate %29, %49 in 1 : vector<16x36xf32>, vector<16x36xf32> -> vector<16x72xf32>
    %c0_39 = arith.constant 0 : index
    %c0_40 = arith.constant 0 : index
    %76 = vector.load %arg3[%c0_39, %c0_40] : memref<8x32xf32, #tpu.memory_space<vmem>>, vector<8x32xf32>
    %77 = tpu.concatenate %76, %76 in 0 : vector<8x32xf32>, vector<8x32xf32> -> vector<16x32xf32>
    %78 = arith.addf %74, %77 : vector<16x32xf32>
    %c0_41 = arith.constant 0 : index
    %c0_42 = arith.constant 0 : index
    %79 = vector.load %arg6[%c0_41, %c0_42] : memref<16x16xf32, #tpu.memory_space<vmem>>, vector<16x16xf32>
    %c0_43 = arith.constant 0 : index
    %c0_44 = arith.constant 0 : index
    %c0_45 = arith.constant 0 : index
    %80 = vector.load %arg12[%c0_43, %c0_44, %c0_45] : memref<2x32x96xf32, #tpu.memory_space<vmem>>, vector<1x32x96xf32>
    %81 = vector.shape_cast %80 : vector<1x32x96xf32> to vector<32x96xf32>
    %cst_46 = arith.constant dense<0.000000e+00> : vector<16x96xf32>
    %82 = tpu.matmul %78, %81, %cst_46 {dimension_numbers = #tpu.dot_dimension_numbers<[1], [0], [0], [1], [0, 0, 1, 1], [], []>} : vector<16x32xf32>, vector<32x96xf32>, vector<16x96xf32> -> vector<16x96xf32>
    %83 = vector.extract_strided_slice %82 {offsets = [0, 0], sizes = [16, 16], strides = [1, 1]} : vector<16x96xf32> to vector<16x16xf32>
    %84 = vector.extract_strided_slice %82 {offsets = [0, 32], sizes = [16, 16], strides = [1, 1]} : vector<16x96xf32> to vector<16x16xf32>
    %85 = vector.extract_strided_slice %82 {offsets = [0, 64], sizes = [16, 16], strides = [1, 1]} : vector<16x96xf32> to vector<16x16xf32>
    %cst_47 = arith.constant dense<0.000000e+00> : vector<16x16xf32>
    %86 = tpu.matmul %83, %84, %cst_47 {dimension_numbers = #tpu.dot_dimension_numbers<[1], [1], [0], [0], [0, 0, 1, 0], [], []>} : vector<16x16xf32>, vector<16x16xf32>, vector<16x16xf32> -> vector<16x16xf32>
    %cst_48 = arith.constant 2.500000e-01 : f32
    %87 = vector.broadcast %cst_48 : f32 to vector<16x16xf32>
    %88 = arith.mulf %86, %87 : vector<16x16xf32>
    %89 = arith.addf %88, %79 : vector<16x16xf32>
    %cst_49 = arith.constant dense<0xFF800000> : vector<16xf32>
    %90 = vector.multi_reduction <maximumf>, %89, %cst_49 [1] : vector<16x16xf32> to vector<16xf32>
    %91 = vector.shape_cast %90 : vector<16xf32> to vector<16x1xf32>
    %92 = vector.broadcast %91 : vector<16x1xf32> to vector<16x16xf32>
    %93 = arith.subf %89, %92 : vector<16x16xf32>
    %94 = math.exp %93 : vector<16x16xf32>
    %cst_50 = arith.constant dense<0.000000e+00> : vector<16xf32>
    %95 = vector.multi_reduction <add>, %94, %cst_50 [1] : vector<16x16xf32> to vector<16xf32>
    %96 = vector.shape_cast %95 : vector<16xf32> to vector<16x1xf32>
    %97 = vector.broadcast %96 : vector<16x1xf32> to vector<16x16xf32>
    %98 = arith.divf %94, %97 : vector<16x16xf32>
    %cst_51 = arith.constant dense<0.000000e+00> : vector<16x16xf32>
    %99 = tpu.matmul %98, %85, %cst_51 {dimension_numbers = #tpu.dot_dimension_numbers<[1], [0], [0], [1], [0, 0, 1, 1], [], []>} : vector<16x16xf32>, vector<16x16xf32>, vector<16x16xf32> -> vector<16x16xf32>
    %100 = vector.extract_strided_slice %82 {offsets = [0, 16], sizes = [16, 16], strides = [1, 1]} : vector<16x96xf32> to vector<16x16xf32>
    %101 = vector.extract_strided_slice %82 {offsets = [0, 48], sizes = [16, 16], strides = [1, 1]} : vector<16x96xf32> to vector<16x16xf32>
    %102 = vector.extract_strided_slice %82 {offsets = [0, 80], sizes = [16, 16], strides = [1, 1]} : vector<16x96xf32> to vector<16x16xf32>
    %cst_52 = arith.constant dense<0.000000e+00> : vector<16x16xf32>
    %103 = tpu.matmul %100, %101, %cst_52 {dimension_numbers = #tpu.dot_dimension_numbers<[1], [1], [0], [0], [0, 0, 1, 0], [], []>} : vector<16x16xf32>, vector<16x16xf32>, vector<16x16xf32> -> vector<16x16xf32>
    %cst_53 = arith.constant 2.500000e-01 : f32
    %104 = vector.broadcast %cst_53 : f32 to vector<16x16xf32>
    %105 = arith.mulf %103, %104 : vector<16x16xf32>
    %106 = arith.addf %105, %79 : vector<16x16xf32>
    %cst_54 = arith.constant dense<0xFF800000> : vector<16xf32>
    %107 = vector.multi_reduction <maximumf>, %106, %cst_54 [1] : vector<16x16xf32> to vector<16xf32>
    %108 = vector.shape_cast %107 : vector<16xf32> to vector<16x1xf32>
    %109 = vector.broadcast %108 : vector<16x1xf32> to vector<16x16xf32>
    %110 = arith.subf %106, %109 : vector<16x16xf32>
    %111 = math.exp %110 : vector<16x16xf32>
    %cst_55 = arith.constant dense<0.000000e+00> : vector<16xf32>
    %112 = vector.multi_reduction <add>, %111, %cst_55 [1] : vector<16x16xf32> to vector<16xf32>
    %113 = vector.shape_cast %112 : vector<16xf32> to vector<16x1xf32>
    %114 = vector.broadcast %113 : vector<16x1xf32> to vector<16x16xf32>
    %115 = arith.divf %111, %114 : vector<16x16xf32>
    %cst_56 = arith.constant dense<0.000000e+00> : vector<16x16xf32>
    %116 = tpu.matmul %115, %102, %cst_56 {dimension_numbers = #tpu.dot_dimension_numbers<[1], [0], [0], [1], [0, 0, 1, 1], [], []>} : vector<16x16xf32>, vector<16x16xf32>, vector<16x16xf32> -> vector<16x16xf32>
    %117 = tpu.concatenate %99, %116 in 1 : vector<16x16xf32>, vector<16x16xf32> -> vector<16x32xf32>
    %c0_57 = arith.constant 0 : index
    %c0_58 = arith.constant 0 : index
    %c0_59 = arith.constant 0 : index
    %118 = vector.load %arg13[%c0_57, %c0_58, %c0_59] : memref<2x32x32xf32, #tpu.memory_space<vmem>>, vector<1x32x32xf32>
    %119 = vector.shape_cast %118 : vector<1x32x32xf32> to vector<32x32xf32>
    %cst_60 = arith.constant dense<0.000000e+00> : vector<16x32xf32>
    %120 = tpu.matmul %117, %119, %cst_60 {dimension_numbers = #tpu.dot_dimension_numbers<[1], [0], [0], [1], [0, 0, 1, 1], [], []>} : vector<16x32xf32>, vector<32x32xf32>, vector<16x32xf32> -> vector<16x32xf32>
    %121 = arith.addf %78, %120 : vector<16x32xf32>
    %cst_61 = arith.constant dense<0.000000e+00> : vector<16xf32>
    %122 = vector.multi_reduction <add>, %121, %cst_61 [1] : vector<16x32xf32> to vector<16xf32>
    %123 = vector.shape_cast %122 : vector<16xf32> to vector<16x1xf32>
    %cst_62 = arith.constant 3.200000e+01 : f32
    %124 = vector.broadcast %cst_62 : f32 to vector<16x1xf32>
    %125 = arith.divf %123, %124 : vector<16x1xf32>
    %126 = vector.broadcast %125 : vector<16x1xf32> to vector<16x32xf32>
    %127 = arith.subf %121, %126 : vector<16x32xf32>
    %128 = arith.mulf %127, %127 : vector<16x32xf32>
    %cst_63 = arith.constant dense<0.000000e+00> : vector<16xf32>
    %129 = vector.multi_reduction <add>, %128, %cst_63 [1] : vector<16x32xf32> to vector<16xf32>
    %130 = vector.shape_cast %129 : vector<16xf32> to vector<16x1xf32>
    %cst_64 = arith.constant 3.200000e+01 : f32
    %131 = vector.broadcast %cst_64 : f32 to vector<16x1xf32>
    %132 = arith.divf %130, %131 : vector<16x1xf32>
    %133 = vector.broadcast %125 : vector<16x1xf32> to vector<16x32xf32>
    %134 = arith.subf %121, %133 : vector<16x32xf32>
    %cst_65 = arith.constant 9.99999974E-6 : f32
    %135 = vector.broadcast %cst_65 : f32 to vector<16x1xf32>
    %136 = arith.addf %132, %135 : vector<16x1xf32>
    %137 = math.rsqrt %136 : vector<16x1xf32>
    %138 = vector.broadcast %137 : vector<16x1xf32> to vector<16x32xf32>
    %139 = arith.mulf %134, %138 : vector<16x32xf32>
    %c0_66 = arith.constant 0 : index
    %c0_67 = arith.constant 0 : index
    %c0_68 = arith.constant 0 : index
    %140 = vector.load %arg14[%c0_66, %c0_67, %c0_68] : memref<2x32x64xf32, #tpu.memory_space<vmem>>, vector<1x32x64xf32>
    %141 = vector.shape_cast %140 : vector<1x32x64xf32> to vector<32x64xf32>
    %cst_69 = arith.constant dense<0.000000e+00> : vector<16x64xf32>
    %142 = tpu.matmul %139, %141, %cst_69 {dimension_numbers = #tpu.dot_dimension_numbers<[1], [0], [0], [1], [0, 0, 1, 1], [], []>} : vector<16x32xf32>, vector<32x64xf32>, vector<16x64xf32> -> vector<16x64xf32>
    %cst_70 = arith.constant 0.000000e+00 : f32
    %143 = vector.broadcast %cst_70 : f32 to vector<16x64xf32>
    %144 = arith.maximumf %142, %143 : vector<16x64xf32>
    %c0_71 = arith.constant 0 : index
    %c0_72 = arith.constant 0 : index
    %c0_73 = arith.constant 0 : index
    %145 = vector.load %arg15[%c0_71, %c0_72, %c0_73] : memref<2x64x32xf32, #tpu.memory_space<vmem>>, vector<1x64x32xf32>
    %146 = vector.shape_cast %145 : vector<1x64x32xf32> to vector<64x32xf32>
    %cst_74 = arith.constant dense<0.000000e+00> : vector<16x32xf32>
    %147 = tpu.matmul %144, %146, %cst_74 {dimension_numbers = #tpu.dot_dimension_numbers<[1], [0], [0], [1], [0, 0, 1, 1], [], []>} : vector<16x64xf32>, vector<64x32xf32>, vector<16x32xf32> -> vector<16x32xf32>
    %148 = arith.addf %147, %139 : vector<16x32xf32>
    %cst_75 = arith.constant dense<0.000000e+00> : vector<16xf32>
    %149 = vector.multi_reduction <add>, %148, %cst_75 [1] : vector<16x32xf32> to vector<16xf32>
    %150 = vector.shape_cast %149 : vector<16xf32> to vector<16x1xf32>
    %cst_76 = arith.constant 3.200000e+01 : f32
    %151 = vector.broadcast %cst_76 : f32 to vector<16x1xf32>
    %152 = arith.divf %150, %151 : vector<16x1xf32>
    %153 = vector.broadcast %152 : vector<16x1xf32> to vector<16x32xf32>
    %154 = arith.subf %148, %153 : vector<16x32xf32>
    %155 = arith.mulf %154, %154 : vector<16x32xf32>
    %cst_77 = arith.constant dense<0.000000e+00> : vector<16xf32>
    %156 = vector.multi_reduction <add>, %155, %cst_77 [1] : vector<16x32xf32> to vector<16xf32>
    %157 = vector.shape_cast %156 : vector<16xf32> to vector<16x1xf32>
    %cst_78 = arith.constant 3.200000e+01 : f32
    %158 = vector.broadcast %cst_78 : f32 to vector<16x1xf32>
    %159 = arith.divf %157, %158 : vector<16x1xf32>
    %160 = vector.broadcast %152 : vector<16x1xf32> to vector<16x32xf32>
    %161 = arith.subf %148, %160 : vector<16x32xf32>
    %cst_79 = arith.constant 9.99999974E-6 : f32
    %162 = vector.broadcast %cst_79 : f32 to vector<16x1xf32>
    %163 = arith.addf %159, %162 : vector<16x1xf32>
    %164 = math.rsqrt %163 : vector<16x1xf32>
    %165 = vector.broadcast %164 : vector<16x1xf32> to vector<16x32xf32>
    %166 = arith.mulf %161, %165 : vector<16x32xf32>
    %c1 = arith.constant 1 : index
    %c0_80 = arith.constant 0 : index
    %c0_81 = arith.constant 0 : index
    %167 = vector.load %arg12[%c1, %c0_80, %c0_81] : memref<2x32x96xf32, #tpu.memory_space<vmem>>, vector<1x32x96xf32>
    %168 = vector.shape_cast %167 : vector<1x32x96xf32> to vector<32x96xf32>
    %cst_82 = arith.constant dense<0.000000e+00> : vector<16x96xf32>
    %169 = tpu.matmul %166, %168, %cst_82 {dimension_numbers = #tpu.dot_dimension_numbers<[1], [0], [0], [1], [0, 0, 1, 1], [], []>} : vector<16x32xf32>, vector<32x96xf32>, vector<16x96xf32> -> vector<16x96xf32>
    %170 = vector.extract_strided_slice %169 {offsets = [0, 0], sizes = [16, 16], strides = [1, 1]} : vector<16x96xf32> to vector<16x16xf32>
    %171 = vector.extract_strided_slice %169 {offsets = [0, 32], sizes = [16, 16], strides = [1, 1]} : vector<16x96xf32> to vector<16x16xf32>
    %172 = vector.extract_strided_slice %169 {offsets = [0, 64], sizes = [16, 16], strides = [1, 1]} : vector<16x96xf32> to vector<16x16xf32>
    %cst_83 = arith.constant dense<0.000000e+00> : vector<16x16xf32>
    %173 = tpu.matmul %170, %171, %cst_83 {dimension_numbers = #tpu.dot_dimension_numbers<[1], [1], [0], [0], [0, 0, 1, 0], [], []>} : vector<16x16xf32>, vector<16x16xf32>, vector<16x16xf32> -> vector<16x16xf32>
    %cst_84 = arith.constant 2.500000e-01 : f32
    %174 = vector.broadcast %cst_84 : f32 to vector<16x16xf32>
    %175 = arith.mulf %173, %174 : vector<16x16xf32>
    %176 = arith.addf %175, %79 : vector<16x16xf32>
    %cst_85 = arith.constant dense<0xFF800000> : vector<16xf32>
    %177 = vector.multi_reduction <maximumf>, %176, %cst_85 [1] : vector<16x16xf32> to vector<16xf32>
    %178 = vector.shape_cast %177 : vector<16xf32> to vector<16x1xf32>
    %179 = vector.broadcast %178 : vector<16x1xf32> to vector<16x16xf32>
    %180 = arith.subf %176, %179 : vector<16x16xf32>
    %181 = math.exp %180 : vector<16x16xf32>
    %cst_86 = arith.constant dense<0.000000e+00> : vector<16xf32>
    %182 = vector.multi_reduction <add>, %181, %cst_86 [1] : vector<16x16xf32> to vector<16xf32>
    %183 = vector.shape_cast %182 : vector<16xf32> to vector<16x1xf32>
    %184 = vector.broadcast %183 : vector<16x1xf32> to vector<16x16xf32>
    %185 = arith.divf %181, %184 : vector<16x16xf32>
    %cst_87 = arith.constant dense<0.000000e+00> : vector<16x16xf32>
    %186 = tpu.matmul %185, %172, %cst_87 {dimension_numbers = #tpu.dot_dimension_numbers<[1], [0], [0], [1], [0, 0, 1, 1], [], []>} : vector<16x16xf32>, vector<16x16xf32>, vector<16x16xf32> -> vector<16x16xf32>
    %187 = vector.extract_strided_slice %169 {offsets = [0, 16], sizes = [16, 16], strides = [1, 1]} : vector<16x96xf32> to vector<16x16xf32>
    %188 = vector.extract_strided_slice %169 {offsets = [0, 48], sizes = [16, 16], strides = [1, 1]} : vector<16x96xf32> to vector<16x16xf32>
    %189 = vector.extract_strided_slice %169 {offsets = [0, 80], sizes = [16, 16], strides = [1, 1]} : vector<16x96xf32> to vector<16x16xf32>
    %cst_88 = arith.constant dense<0.000000e+00> : vector<16x16xf32>
    %190 = tpu.matmul %187, %188, %cst_88 {dimension_numbers = #tpu.dot_dimension_numbers<[1], [1], [0], [0], [0, 0, 1, 0], [], []>} : vector<16x16xf32>, vector<16x16xf32>, vector<16x16xf32> -> vector<16x16xf32>
    %cst_89 = arith.constant 2.500000e-01 : f32
    %191 = vector.broadcast %cst_89 : f32 to vector<16x16xf32>
    %192 = arith.mulf %190, %191 : vector<16x16xf32>
    %193 = arith.addf %192, %79 : vector<16x16xf32>
    %cst_90 = arith.constant dense<0xFF800000> : vector<16xf32>
    %194 = vector.multi_reduction <maximumf>, %193, %cst_90 [1] : vector<16x16xf32> to vector<16xf32>
    %195 = vector.shape_cast %194 : vector<16xf32> to vector<16x1xf32>
    %196 = vector.broadcast %195 : vector<16x1xf32> to vector<16x16xf32>
    %197 = arith.subf %193, %196 : vector<16x16xf32>
    %198 = math.exp %197 : vector<16x16xf32>
    %cst_91 = arith.constant dense<0.000000e+00> : vector<16xf32>
    %199 = vector.multi_reduction <add>, %198, %cst_91 [1] : vector<16x16xf32> to vector<16xf32>
    %200 = vector.shape_cast %199 : vector<16xf32> to vector<16x1xf32>
    %201 = vector.broadcast %200 : vector<16x1xf32> to vector<16x16xf32>
    %202 = arith.divf %198, %201 : vector<16x16xf32>
    %cst_92 = arith.constant dense<0.000000e+00> : vector<16x16xf32>
    %203 = tpu.matmul %202, %189, %cst_92 {dimension_numbers = #tpu.dot_dimension_numbers<[1], [0], [0], [1], [0, 0, 1, 1], [], []>} : vector<16x16xf32>, vector<16x16xf32>, vector<16x16xf32> -> vector<16x16xf32>
    %204 = tpu.concatenate %186, %203 in 1 : vector<16x16xf32>, vector<16x16xf32> -> vector<16x32xf32>
    %c1_93 = arith.constant 1 : index
    %c0_94 = arith.constant 0 : index
    %c0_95 = arith.constant 0 : index
    %205 = vector.load %arg13[%c1_93, %c0_94, %c0_95] : memref<2x32x32xf32, #tpu.memory_space<vmem>>, vector<1x32x32xf32>
    %206 = vector.shape_cast %205 : vector<1x32x32xf32> to vector<32x32xf32>
    %cst_96 = arith.constant dense<0.000000e+00> : vector<16x32xf32>
    %207 = tpu.matmul %204, %206, %cst_96 {dimension_numbers = #tpu.dot_dimension_numbers<[1], [0], [0], [1], [0, 0, 1, 1], [], []>} : vector<16x32xf32>, vector<32x32xf32>, vector<16x32xf32> -> vector<16x32xf32>
    %208 = arith.addf %166, %207 : vector<16x32xf32>
    %cst_97 = arith.constant dense<0.000000e+00> : vector<16xf32>
    %209 = vector.multi_reduction <add>, %208, %cst_97 [1] : vector<16x32xf32> to vector<16xf32>
    %210 = vector.shape_cast %209 : vector<16xf32> to vector<16x1xf32>
    %cst_98 = arith.constant 3.200000e+01 : f32
    %211 = vector.broadcast %cst_98 : f32 to vector<16x1xf32>
    %212 = arith.divf %210, %211 : vector<16x1xf32>
    %213 = vector.broadcast %212 : vector<16x1xf32> to vector<16x32xf32>
    %214 = arith.subf %208, %213 : vector<16x32xf32>
    %215 = arith.mulf %214, %214 : vector<16x32xf32>
    %cst_99 = arith.constant dense<0.000000e+00> : vector<16xf32>
    %216 = vector.multi_reduction <add>, %215, %cst_99 [1] : vector<16x32xf32> to vector<16xf32>
    %217 = vector.shape_cast %216 : vector<16xf32> to vector<16x1xf32>
    %cst_100 = arith.constant 3.200000e+01 : f32
    %218 = vector.broadcast %cst_100 : f32 to vector<16x1xf32>
    %219 = arith.divf %217, %218 : vector<16x1xf32>
    %220 = vector.broadcast %212 : vector<16x1xf32> to vector<16x32xf32>
    %221 = arith.subf %208, %220 : vector<16x32xf32>
    %cst_101 = arith.constant 9.99999974E-6 : f32
    %222 = vector.broadcast %cst_101 : f32 to vector<16x1xf32>
    %223 = arith.addf %219, %222 : vector<16x1xf32>
    %224 = math.rsqrt %223 : vector<16x1xf32>
    %225 = vector.broadcast %224 : vector<16x1xf32> to vector<16x32xf32>
    %226 = arith.mulf %221, %225 : vector<16x32xf32>
    %c1_102 = arith.constant 1 : index
    %c0_103 = arith.constant 0 : index
    %c0_104 = arith.constant 0 : index
    %227 = vector.load %arg14[%c1_102, %c0_103, %c0_104] : memref<2x32x64xf32, #tpu.memory_space<vmem>>, vector<1x32x64xf32>
    %228 = vector.shape_cast %227 : vector<1x32x64xf32> to vector<32x64xf32>
    %cst_105 = arith.constant dense<0.000000e+00> : vector<16x64xf32>
    %229 = tpu.matmul %226, %228, %cst_105 {dimension_numbers = #tpu.dot_dimension_numbers<[1], [0], [0], [1], [0, 0, 1, 1], [], []>} : vector<16x32xf32>, vector<32x64xf32>, vector<16x64xf32> -> vector<16x64xf32>
    %cst_106 = arith.constant 0.000000e+00 : f32
    %230 = vector.broadcast %cst_106 : f32 to vector<16x64xf32>
    %231 = arith.maximumf %229, %230 : vector<16x64xf32>
    %c1_107 = arith.constant 1 : index
    %c0_108 = arith.constant 0 : index
    %c0_109 = arith.constant 0 : index
    %232 = vector.load %arg15[%c1_107, %c0_108, %c0_109] : memref<2x64x32xf32, #tpu.memory_space<vmem>>, vector<1x64x32xf32>
    %233 = vector.shape_cast %232 : vector<1x64x32xf32> to vector<64x32xf32>
    %cst_110 = arith.constant dense<0.000000e+00> : vector<16x32xf32>
    %234 = tpu.matmul %231, %233, %cst_110 {dimension_numbers = #tpu.dot_dimension_numbers<[1], [0], [0], [1], [0, 0, 1, 1], [], []>} : vector<16x64xf32>, vector<64x32xf32>, vector<16x32xf32> -> vector<16x32xf32>
    %235 = arith.addf %234, %226 : vector<16x32xf32>
    %cst_111 = arith.constant dense<0.000000e+00> : vector<16xf32>
    %236 = vector.multi_reduction <add>, %235, %cst_111 [1] : vector<16x32xf32> to vector<16xf32>
    %237 = vector.shape_cast %236 : vector<16xf32> to vector<16x1xf32>
    %cst_112 = arith.constant 3.200000e+01 : f32
    %238 = vector.broadcast %cst_112 : f32 to vector<16x1xf32>
    %239 = arith.divf %237, %238 : vector<16x1xf32>
    %240 = vector.broadcast %239 : vector<16x1xf32> to vector<16x32xf32>
    %241 = arith.subf %235, %240 : vector<16x32xf32>
    %242 = arith.mulf %241, %241 : vector<16x32xf32>
    %cst_113 = arith.constant dense<0.000000e+00> : vector<16xf32>
    %243 = vector.multi_reduction <add>, %242, %cst_113 [1] : vector<16x32xf32> to vector<16xf32>
    %244 = vector.shape_cast %243 : vector<16xf32> to vector<16x1xf32>
    %cst_114 = arith.constant 3.200000e+01 : f32
    %245 = vector.broadcast %cst_114 : f32 to vector<16x1xf32>
    %246 = arith.divf %244, %245 : vector<16x1xf32>
    %247 = vector.broadcast %239 : vector<16x1xf32> to vector<16x32xf32>
    %248 = arith.subf %235, %247 : vector<16x32xf32>
    %cst_115 = arith.constant 9.99999974E-6 : f32
    %249 = vector.broadcast %cst_115 : f32 to vector<16x1xf32>
    %250 = arith.addf %246, %249 : vector<16x1xf32>
    %251 = math.rsqrt %250 : vector<16x1xf32>
    %252 = vector.broadcast %251 : vector<16x1xf32> to vector<16x32xf32>
    %253 = arith.mulf %248, %252 : vector<16x32xf32>
    %cst_116 = arith.constant 0.000000e+00 : f32
    %254 = vector.broadcast %cst_116 : f32 to vector<16x120xf32>
    %255 = tpu.concatenate %74, %253, %75, %254 in 1 : vector<16x32xf32>, vector<16x32xf32>, vector<16x72xf32>, vector<16x120xf32> -> vector<16x256xf32>
    %c0_117 = arith.constant 0 : index
    %c0_118 = arith.constant 0 : index
    %256 = vector.load %arg16[%c0_117, %c0_118] : memref<16x256xf32, #tpu.memory_space<vmem>>, vector<16x256xf32>
    tpu.vector_store %arg16[%c0_117, %c0_118], %255 {strides = array<i32>} : memref<16x256xf32, #tpu.memory_space<vmem>>, vector<16x256xf32>,
    return
  }
  func.func @transform_0(%arg0: i32) -> (i32, i32) {
    %c0_i32 = arith.constant 0 : i32
    %c0_i32_0 = arith.constant 0 : i32
    return %arg0, %c0_i32 : i32, i32
  }
  func.func @transform_1(%arg0: i32) -> (i32, i32) {
    %c0_i32 = arith.constant 0 : i32
    %c0_i32_0 = arith.constant 0 : i32
    return %arg0, %c0_i32 : i32, i32
  }
  func.func @transform_2(%arg0: i32) -> (i32, i32) {
    %c0_i32 = arith.constant 0 : i32
    %c0_i32_0 = arith.constant 0 : i32
    %c0_i32_1 = arith.constant 0 : i32
    return %c0_i32, %c0_i32_0 : i32, i32
  }
  func.func @transform_3(%arg0: i32) -> (i32, i32) {
    %c0_i32 = arith.constant 0 : i32
    %c0_i32_0 = arith.constant 0 : i32
    %c0_i32_1 = arith.constant 0 : i32
    return %c0_i32, %c0_i32_0 : i32, i32
  }
  func.func @transform_4(%arg0: i32) -> (i32, i32) {
    %c0_i32 = arith.constant 0 : i32
    %c0_i32_0 = arith.constant 0 : i32
    %c0_i32_1 = arith.constant 0 : i32
    return %c0_i32, %c0_i32_0 : i32, i32
  }
  func.func @transform_5(%arg0: i32) -> (i32, i32) {
    %c0_i32 = arith.constant 0 : i32
    %c0_i32_0 = arith.constant 0 : i32
    %c0_i32_1 = arith.constant 0 : i32
    return %c0_i32, %c0_i32_0 : i32, i32
  }
  func.func @transform_6(%arg0: i32) -> (i32, i32) {
    %c0_i32 = arith.constant 0 : i32
    %c0_i32_0 = arith.constant 0 : i32
    %c0_i32_1 = arith.constant 0 : i32
    return %c0_i32, %c0_i32_0 : i32, i32
  }
  func.func @transform_7(%arg0: i32) -> (i32, i32) {
    %c0_i32 = arith.constant 0 : i32
    %c0_i32_0 = arith.constant 0 : i32
    %c0_i32_1 = arith.constant 0 : i32
    return %c0_i32, %c0_i32_0 : i32, i32
  }
  func.func @transform_8(%arg0: i32) -> (i32, i32) {
    %c0_i32 = arith.constant 0 : i32
    %c0_i32_0 = arith.constant 0 : i32
    %c0_i32_1 = arith.constant 0 : i32
    return %c0_i32, %c0_i32_0 : i32, i32
  }
  func.func @transform_9(%arg0: i32) -> (i32, i32) {
    %c0_i32 = arith.constant 0 : i32
    %c0_i32_0 = arith.constant 0 : i32
    %c0_i32_1 = arith.constant 0 : i32
    return %c0_i32, %c0_i32_0 : i32, i32
  }
  func.func @transform_10(%arg0: i32) -> (i32, i32) {
    %c0_i32 = arith.constant 0 : i32
    %c0_i32_0 = arith.constant 0 : i32
    %c0_i32_1 = arith.constant 0 : i32
    return %c0_i32, %c0_i32_0 : i32, i32
  }
  func.func @transform_11(%arg0: i32) -> (i32, i32, i32) {
    %c0_i32 = arith.constant 0 : i32
    %c0_i32_0 = arith.constant 0 : i32
    %c0_i32_1 = arith.constant 0 : i32
    %c0_i32_2 = arith.constant 0 : i32
    return %c0_i32, %c0_i32_0, %c0_i32_1 : i32, i32, i32
  }
  func.func @transform_12(%arg0: i32) -> (i32, i32, i32) {
    %c0_i32 = arith.constant 0 : i32
    %c0_i32_0 = arith.constant 0 : i32
    %c0_i32_1 = arith.constant 0 : i32
    %c0_i32_2 = arith.constant 0 : i32
    return %c0_i32, %c0_i32_0, %c0_i32_1 : i32, i32, i32
  }
  func.func @transform_13(%arg0: i32) -> (i32, i32, i32) {
    %c0_i32 = arith.constant 0 : i32
    %c0_i32_0 = arith.constant 0 : i32
    %c0_i32_1 = arith.constant 0 : i32
    %c0_i32_2 = arith.constant 0 : i32
    return %c0_i32, %c0_i32_0, %c0_i32_1 : i32, i32, i32
  }
  func.func @transform_14(%arg0: i32) -> (i32, i32, i32) {
    %c0_i32 = arith.constant 0 : i32
    %c0_i32_0 = arith.constant 0 : i32
    %c0_i32_1 = arith.constant 0 : i32
    %c0_i32_2 = arith.constant 0 : i32
    return %c0_i32, %c0_i32_0, %c0_i32_1 : i32, i32, i32
  }
  func.func @transform_15(%arg0: i32) -> (i32, i32) {
    %c0_i32 = arith.constant 0 : i32
    %c0_i32_0 = arith.constant 0 : i32
    return %arg0, %c0_i32 : i32, i32
  }
}

</mosaic_0001>

<bundles_post_ra>
// kernel: pasts_encoder_forward.1
= control target key start
LH: loop header
LB: loop body
LE: loop exit
PB: predicated region body
PF: predicated region fallthrough
CT: control target
= control target key end

     0   :  { %vm145_vm0 = vcmask 261120   ;;  %vm1029_vm1 = vcmask 130048   ;;  %vm1501_vm3 = vcmask 523264   ;;  %vm1733_vm4 = vcmask 293888   ;;  %s9350_s23 = smov 96   ;;  %s9351_s24 = smov 112   ;;  %s11737_s6 = inlined_call_operand.vmem [shape: f32[32,32], index: 6, kind: input, shape index: {}]   ;;  %s11738_s9 = inlined_call_operand.vmem [shape: f32[32,64], index: 9, kind: input, shape index: {}]   ;;  %s11739_s0 = inlined_call_operand.vmem [shape: f32[16,32], index: 0, kind: input, shape index: {}]   ;;  %s11740_s1 = inlined_call_operand.vmem [shape: f32[576,32], index: 1, kind: input, shape index: {}]   ;;  %s11741_s8 = inlined_call_operand.vmem [shape: f32[32,32], index: 8, kind: input, shape index: {}]   ;;  %s11742_s7 = inlined_call_operand.vmem [shape: f32[1,32], index: 7, kind: input, shape index: {}]   ;;  %s11743_s4 = inlined_call_operand.vmem [shape: f32[576,36], index: 4, kind: input, shape index: {}]   ;;  %s11744_s3 = inlined_call_operand.vmem [shape: f32[16,576], index: 3, kind: input, shape index: {}]   ;;  %s11745_s10 = inlined_call_operand.vmem [shape: f32[32,32], index: 10, kind: input, shape index: {}]   ;;  %s11746_s11 = inlined_call_operand.vmem [shape: f32[2,32,96], index: 11, kind: input, shape index: {}]   ;;  %s11747_s2 = inlined_call_operand.vmem [shape: f32[8,32], index: 2, kind: input, shape index: {}]   ;;  %s11748_s5 = inlined_call_operand.vmem [shape: f32[16,16], index: 5, kind: input, shape index: {}]   ;;  %s11749_s12 = inlined_call_operand.vmem [shape: f32[2,32,32], index: 12, kind: input, shape index: {}]   ;;  %s11750_s13 = inlined_call_operand.vmem [shape: f32[2,32,64], index: 13, kind: input, shape index: {}]   ;;  %s11751_s14 = inlined_call_operand.vmem [shape: f32[2,64,32], index: 14, kind: input, shape index: {}]   ;;  %s11752_s15 = inlined_call_operand.vmem [shape: f32[16,256], index: 15, kind: output, shape index: {}]  }
   0x1   :  { %v134_v0 = vld [vmem:[%s11737_s6] sm:$0xff]  ;;  %v135_v1 = vld [vmem:[%s11737_s6 + $0x8] sm:$0xff]  ;;  %v136_v5 = vld [vmem:[%s11737_s6 + $0x10] sm:$0xff]  ;;  %s9355_s26 = smov 64   ;;  %vm5947_vm6 = vcmask 64512  }
   0x2   :  { %v384_v2 = vld [vmem:[%s11738_s9] sm:$0xff]  ;;  %v7732_v3 = vpack.c.bf16 %v135_v1, %v134_v0  ;;  %v385_v4 = vld [vmem:[%s11738_s9 + $0x8] sm:$0xff]  ;;  %v137_v6 = vld [vmem:[%s11737_s6 + $0x18] sm:$0xff] }
   0x3   :  { %v7748_v7 = vpack.c.bf16 %v385_v4, %v384_v2  ;;  %v7736_v8 = vpack.c.bf16 %v137_v6, %v136_v5  ;;  %v386_v9 = vld [vmem:[%s11738_s9 + $0x10] sm:$0xff]  ;;  %v387_v10 = vld [vmem:[%s11738_s9 + $0x18] sm:$0xff]  ;;  %v132_v11 = vld [vmem:[%s11739_s0] sm:$0xff] }
   0x4   :  { %7733 = vmatprep.subr.bf16.mxu1 %v7732_v3  ;;  %v7752_v12 = vpack.c.bf16 %v387_v10, %v386_v9  ;;  %7279 = vmatprep.mubr.msk.f32.mxu1 %vm145_vm0, %v132_v11  ;;  %v227_v13 = vld [vmem:[%s11740_s1] sm:$0xff]  ;;  %v133_v14 = vld [vmem:[%s11739_s0 + $0x8] sm:$0xff]  ;;  %v229_v16 = vld [vmem:[%s11740_s1 + $0x10] sm:$0xff] }
   0x5   :  { %7749 = vmatprep.subr.bf16.mxu0 %v7748_v7  ;;  %7735 = vmatpush3.bf16.msra.mxu1 %v7732_v3  ;;  %v228_v15 = vld [vmem:[%s11740_s1 + $0x8] sm:$0xff]  ;;  %v230_v17 = vld [vmem:[%s11740_s1 + $0x18] sm:$0xff]  ;;  %v231_v18 = vld [vmem:[%s11740_s1 + $0x20] sm:$0xff] }
   0x6   :  { %7751 = vmatpush3.bf16.msra.mxu0 %v7748_v7  ;;  %7737 = vmatprep.subr.bf16.mxu1 %v7736_v8  ;;  %v232_v19 = vld [vmem:[%s11740_s1 + $0x28] sm:$0xff]  ;;  %v233_v20 = vld [vmem:[%s11740_s1 + $0x30] sm:$0xff]  ;;  %v234_v21 = vld [vmem:[%s11740_s1 + $0x38] sm:$0xff] }
   0x7   :  { %7753 = vmatprep.subr.bf16.mxu0 %v7752_v12  ;;  %7301 = vmatprep.mubr.msk.f32.mxu0 %vm145_vm0, %v227_v13  ;;  %v235_v22 = vld [vmem:[%s11740_s1 + $0x40] sm:$0xff]  ;;  %v236_v23 = vld [vmem:[%s11740_s1 + $0x48] sm:$0xff]  ;;  %v237_v24 = vld [vmem:[%s11740_s1 + $0x50] sm:$0xff] }
   0x8   :  { %v299_v25 = vld [vmem:[%s11741_s8] sm:$0xff]  ;;  %v300_v26 = vld [vmem:[%s11741_s8 + $0x8] sm:$0xff]  ;;  %v238_v28 = vld [vmem:[%s11740_s1 + $0x58] sm:$0xff] }
   0x9   :  { %7739 = vmatpush3.bf16.msra.mxu1 %v7736_v8  ;;  %v7740_v27 = vpack.c.bf16 %v300_v26, %v299_v25  ;;  %v239_v29 = vld [vmem:[%s11740_s1 + $0x60] sm:$0xff]  ;;  %v240_v30 = vld [vmem:[%s11740_s1 + $0x68] sm:$0xff]  ;;  %v241_v31 = vld [vmem:[%s11740_s1 + $0x70] sm:$0xff] }
   0xa   :  { %7755 = vmatpush3.bf16.msra.mxu0 %v7752_v12  ;;  %v242_v32 = vld [vmem:[%s11740_s1 + $0x78] sm:$0xff]  ;;  %v243_v33 = vld [vmem:[%s11740_s1 + $0x80] sm:$0xff]  ;;  %v244_v34 = vld [vmem:[%s11740_s1 + $0x88] sm:$0xff] }
   0xb   :  { %7741 = vmatprep.subr.bf16.mxu1 %v7740_v27  ;;  %v245_v35 = vld [vmem:[%s11740_s1 + $0x90] sm:$0xff]  ;;  %v246_v36 = vld [vmem:[%s11740_s1 + $0x98] sm:$0xff]  ;;  %v247_v37 = vld [vmem:[%s11740_s1 + $0xa0] sm:$0xff] }
   0xc   :  { %7280 = vmatmul.mubr.msk.f32.vlgmr.msra.gmra.mrb[0].mxu1 %vm145_vm0, %v133_v14  ;;  %v248_v38 = vld [vmem:[%s11740_s1 + $0xa8] sm:$0xff]  ;;  %v249_v39 = vld [vmem:[%s11740_s1 + $0xb0] sm:$0xff]  ;;  %v250_v40 = vld [vmem:[%s11740_s1 + $0xb8] sm:$0xff] }
   0xd   :  { %7302 = vmatmul.mubr.msk.f32.vlgmr.msra.gmra.mrb[0].mxu0 %vm145_vm0, %v228_v15  ;;  %7743 = vmatpush3.bf16.msra.mxu1 %v7740_v27  ;;  %v251_v41 = vld [vmem:[%s11740_s1 + $0xc0] sm:$0xff]  ;;  %v252_v42 = vld [vmem:[%s11740_s1 + $0xc8] sm:$0xff]  ;;  %v253_v43 = vld [vmem:[%s11740_s1 + $0xd0] sm:$0xff] }
   0xe   :  { %7304 = vmatprep.mubr.msk.f32.mxu0 %vm145_vm0, %v229_v16  ;;  %v254_v44 = vld [vmem:[%s11740_s1 + $0xd8] sm:$0xff]  ;;  %v255_v45 = vld [vmem:[%s11740_s1 + $0xe0] sm:$0xff]  ;;  %v256_v46 = vld [vmem:[%s11740_s1 + $0xe8] sm:$0xff] }
   0xf   :  { %v257_v47 = vld [vmem:[%s11740_s1 + $0xf0] sm:$0xff]  ;;  %v258_v48 = vld [vmem:[%s11740_s1 + $0xf8] sm:$0xff]  ;;  %v259_v49 = vld [vmem:[%s11740_s1 + $0x100] sm:$0xff] }
  0x10   :  { %v260_v50 = vld [vmem:[%s11740_s1 + $0x108] sm:$0xff]  ;;  %v261_v51 = vld [vmem:[%s11740_s1 + $0x110] sm:$0xff]  ;;  %v262_v52 = vld [vmem:[%s11740_s1 + $0x118] sm:$0xff] }
  0x11   :  { %7305 = vmatmul.mubr.msk.f32.gmra.mrb[2].mxu0 %vm145_vm0, %v230_v17  ;;  %v263_v53 = vld [vmem:[%s11740_s1 + $0x120] sm:$0xff]  ;;  %v264_v54 = vld [vmem:[%s11740_s1 + $0x128] sm:$0xff]  ;;  %v265_v55 = vld [vmem:[%s11740_s1 + $0x130] sm:$0xff] }
  0x12   :  { %7307 = vmatprep.mubr.msk.f32.mxu0 %vm145_vm0, %v231_v18  ;;  %v266_v56 = vld [vmem:[%s11740_s1 + $0x138] sm:$0xff]  ;;  %v267_v57 = vld [vmem:[%s11740_s1 + $0x140] sm:$0xff]  ;;  %v268_v58 = vld [vmem:[%s11740_s1 + $0x148] sm:$0xff] }
  0x13   :  { %v269_v59 = vld [vmem:[%s11740_s1 + $0x150] sm:$0xff]  ;;  %v302_v61 = vld [vmem:[%s11741_s8 + $0x18] sm:$0xff]  ;;  %v271_v0 = vld [vmem:[%s11740_s1 + $0x160] sm:$0xff] }
  0x14   :  { %v301_v60 = vld [vmem:[%s11741_s8 + $0x10] sm:$0xff]  ;;  %v270_v62 = vld [vmem:[%s11740_s1 + $0x158] sm:$0xff]  ;;  %v272_v1 = vld [vmem:[%s11740_s1 + $0x168] sm:$0xff] }
  0x15   :  { %7308 = vmatmul.mubr.msk.f32.gmra.mrb[4].mxu0 %vm145_vm0, %v232_v19  ;;  %v7744_v63 = vpack.c.bf16 %v302_v61, %v301_v60  ;;  %v273_v2 = vld [vmem:[%s11740_s1 + $0x170] sm:$0xff]  ;;  %v274_v3 = vld [vmem:[%s11740_s1 + $0x178] sm:$0xff]  ;;  %v275_v4 = vld [vmem:[%s11740_s1 + $0x180] sm:$0xff] }
  0x16   :  { %7310 = vmatprep.mubr.msk.f32.mxu0 %vm145_vm0, %v233_v20  ;;  %v276_v5 = vld [vmem:[%s11740_s1 + $0x188] sm:$0xff]  ;;  %v277_v6 = vld [vmem:[%s11740_s1 + $0x190] sm:$0xff]  ;;  %v278_v7 = vld [vmem:[%s11740_s1 + $0x198] sm:$0xff] }
  0x17   :  { %7745 = vmatprep.subr.bf16.mxu1 %v7744_v63  ;;  %v279_v8 = vld [vmem:[%s11740_s1 + $0x1a0] sm:$0xff]  ;;  %v280_v9 = vld [vmem:[%s11740_s1 + $0x1a8] sm:$0xff]  ;;  %v281_v10 = vld [vmem:[%s11740_s1 + $0x1b0] sm:$0xff] }
  0x18   :  { %7747 = vmatpush3.bf16.msra.mxu1 %v7744_v63  ;;  %v282_v11 = vld [vmem:[%s11740_s1 + $0x1b8] sm:$0xff]  ;;  %v283_v12 = vld [vmem:[%s11740_s1 + $0x1c0] sm:$0xff]  ;;  %v284_v13 = vld [vmem:[%s11740_s1 + $0x1c8] sm:$0xff] }
  0x19   :  { %7311 = vmatmul.mubr.msk.f32.gmra.mrb[6].mxu0 %vm145_vm0, %v234_v21  ;;  %v285_v14 = vld [vmem:[%s11740_s1 + $0x1d0] sm:$0xff]  ;;  %v286_v15 = vld [vmem:[%s11740_s1 + $0x1d8] sm:$0xff]  ;;  %v287_v16 = vld [vmem:[%s11740_s1 + $0x1e0] sm:$0xff] }
  0x1a   :  { %7313 = vmatprep.mubr.msk.f32.mxu0 %vm145_vm0, %v235_v22  ;;  %v288_v17 = vld [vmem:[%s11740_s1 + $0x1e8] sm:$0xff]  ;;  %v289_v18 = vld [vmem:[%s11740_s1 + $0x1f0] sm:$0xff]  ;;  %v290_v19 = vld [vmem:[%s11740_s1 + $0x1f8] sm:$0xff] }
  0x1b   :  { %v291_v20 = vld [vmem:[%s11740_s1 + $0x200] sm:$0xff]  ;;  %v292_v21 = vld [vmem:[%s11740_s1 + $0x208] sm:$0xff]  ;;  %v293_v22 = vld [vmem:[%s11740_s1 + $0x210] sm:$0xff] }
  0x1c   :  { %v296_v25 = vld [vmem:[%s11740_s1 + $0x228] sm:$0xff]  ;;  %v297_v26 = vld [vmem:[%s11740_s1 + $0x230] sm:$0xff]  ;;  %v298_v27 = vld [vmem:[%s11740_s1 + $0x238] sm:$0xff] }
  0x1d   :  { %7314 = vmatmul.mubr.msk.f32.gmra.mrb[8].mxu0 %vm145_vm0, %v236_v23  ;;  %v294_v23 = vld [vmem:[%s11740_s1 + $0x218] sm:$0xff]  ;;  %vm9831_vm2 = vmpackc.low %vm1029_vm1, %vm1029_vm1 }
  0x1e   :  { %7316 = vmatprep.mubr.msk.f32.mxu0 %vm145_vm0, %v237_v24  ;;  %v295_v24 = vld [vmem:[%s11740_s1 + $0x220] sm:$0xff]  ;;  %vm10484_vm5 = vmpackc.low %vm1733_vm4, %vm1733_vm4 }
  0x21   :  { %7317 = vmatmul.mubr.msk.f32.gmra.mrb[10].mxu0 %vm145_vm0, %v238_v28  ;;  %v5958_v28 = vld [vmem:[%s11742_s7] ss:$0 sm:$0xff] }
  0x22   :  { %7319 = vmatprep.mubr.msk.f32.mxu0 %vm145_vm0, %v239_v29 }
  0x25   :  { %7320 = vmatmul.mubr.msk.f32.gmra.mrb[12].mxu0 %vm145_vm0, %v240_v30 }
  0x26   :  { %7322 = vmatprep.mubr.msk.f32.mxu0 %vm145_vm0, %v241_v31 }
  0x29   :  { %7323 = vmatmul.mubr.msk.f32.gmra.mrb[14].mxu0 %vm145_vm0, %v242_v32 }
  0x2a   :  { %7325 = vmatprep.mubr.msk.f32.mxu0 %vm145_vm0, %v243_v33 }
  0x2d   :  { %7326 = vmatmul.mubr.msk.f32.gmra.mrb[16].mxu0 %vm145_vm0, %v244_v34 }
  0x2e   :  { %7328 = vmatprep.mubr.msk.f32.mxu0 %vm145_vm0, %v245_v35 }
  0x31   :  { %7329 = vmatmul.mubr.msk.f32.gmra.mrb[18].mxu0 %vm145_vm0, %v246_v36 }
  0x32   :  { %7331 = vmatprep.mubr.msk.f32.mxu0 %vm145_vm0, %v247_v37 }
  0x35   :  { %7332 = vmatmul.mubr.msk.f32.gmra.mrb[20].mxu0 %vm145_vm0, %v248_v38 }
  0x36   :  { %7334 = vmatprep.mubr.msk.f32.mxu0 %vm145_vm0, %v249_v39 }
  0x39   :  { %7335 = vmatmul.mubr.msk.f32.gmra.mrb[22].mxu0 %vm145_vm0, %v250_v40 }
  0x3a   :  { %7337 = vmatprep.mubr.msk.f32.mxu0 %vm145_vm0, %v251_v41 }
  0x3d   :  { %7338 = vmatmul.mubr.msk.f32.gmra.mrb[24].mxu0 %vm145_vm0, %v252_v42 }
  0x3e   :  { %7340 = vmatprep.mubr.msk.f32.mxu0 %vm145_vm0, %v253_v43 }
  0x41   :  { %7341 = vmatmul.mubr.msk.f32.gmra.mrb[26].mxu0 %vm145_vm0, %v254_v44 }
  0x42   :  { %7343 = vmatprep.mubr.msk.f32.mxu0 %vm145_vm0, %v255_v45 }
  0x45   :  { %7344 = vmatmul.mubr.msk.f32.gmra.mrb[28].mxu0 %vm145_vm0, %v256_v46 }
  0x46   :  { %7346 = vmatprep.mubr.msk.f32.mxu0 %vm145_vm0, %v257_v47 }
  0x49   :  { %7347 = vmatmul.mubr.msk.f32.gmra.mrb[30].mxu0 %vm145_vm0, %v258_v48 }
  0x4a   :  { %7349 = vmatprep.mubr.msk.f32.mxu0 %vm145_vm0, %v259_v49 }
  0x4d   :  { %7350 = vmatmul.mubr.msk.f32.gmra.mrb[32].mxu0 %vm145_vm0, %v260_v50 }
  0x4e   :  { %7352 = vmatprep.mubr.msk.f32.mxu0 %vm145_vm0, %v261_v51 }
  0x51   :  { %7353 = vmatmul.mubr.msk.f32.gmra.mrb[34].mxu0 %vm145_vm0, %v262_v52 }
  0x52   :  { %7355 = vmatprep.mubr.msk.f32.mxu0 %vm145_vm0, %v263_v53 }
  0x55   :  { %7356 = vmatmul.mubr.msk.f32.gmra.mrb[36].mxu0 %vm145_vm0, %v264_v54 }
  0x56   :  { %7358 = vmatprep.mubr.msk.f32.mxu0 %vm145_vm0, %v265_v55 }
  0x59   :  { %7359 = vmatmul.mubr.msk.f32.gmra.mrb[38].mxu0 %vm145_vm0, %v266_v56 }
  0x5a   :  { %7361 = vmatprep.mubr.msk.f32.mxu0 %vm145_vm0, %v267_v57 }
  0x5d   :  { %7362 = vmatmul.mubr.msk.f32.gmra.mrb[40].mxu0 %vm145_vm0, %v268_v58 }
  0x5e   :  { %7364 = vmatprep.mubr.msk.f32.mxu0 %vm145_vm0, %v269_v59 }
  0x61   :  { %7365 = vmatmul.mubr.msk.f32.gmra.mrb[42].mxu0 %vm145_vm0, %v270_v62 }
  0x62   :  { %7367 = vmatprep.mubr.msk.f32.mxu0 %vm145_vm0, %v271_v0 }
  0x65   :  { %7368 = vmatmul.mubr.msk.f32.gmra.mrb[44].mxu0 %vm145_vm0, %v272_v1 }
  0x66   :  { %7370 = vmatprep.mubr.msk.f32.mxu0 %vm145_vm0, %v273_v2 }
  0x69   :  { %7371 = vmatmul.mubr.msk.f32.gmra.mrb[46].mxu0 %vm145_vm0, %v274_v3  ;;  %v11890_v3 = vmov 0 }
  0x6a   :  { %7373 = vmatprep.mubr.msk.f32.mxu0 %vm145_vm0, %v275_v4  ;;  %v11891_v3 = vsel %vm9831_vm2, 4294967295, %v11890_v3 }
  0x6b   :  { %11892 = vst [vmem:[#allocation12_spill] sm:$0xff] %v11891_v3  ;;  %v116_v3 = vld [vmem:[%s11743_s4 + $0x1c0] sm:$0xff] }
  0x6d   :  { %7374 = vmatmul.mubr.msk.f32.gmra.mrb[48].mxu0 %vm145_vm0, %v276_v5 }
  0x6e   :  { %7376 = vmatprep.mubr.msk.f32.mxu0 %vm145_vm0, %v277_v6 }
  0x71   :  { %7377 = vmatmul.mubr.msk.f32.gmra.mrb[50].mxu0 %vm145_vm0, %v278_v7 }
  0x72   :  { %7379 = vmatprep.mubr.msk.f32.mxu0 %vm145_vm0, %v279_v8 }
  0x75   :  { %7380 = vmatmul.mubr.msk.f32.gmra.mrb[52].mxu0 %vm145_vm0, %v280_v9 }
  0x76   :  { %7382 = vmatprep.mubr.msk.f32.mxu0 %vm145_vm0, %v281_v10 }
  0x79   :  { %7383 = vmatmul.mubr.msk.f32.gmra.mrb[54].mxu0 %vm145_vm0, %v282_v11 }
  0x7a   :  { %7385 = vmatprep.mubr.msk.f32.mxu0 %vm145_vm0, %v283_v12 }
  0x7d   :  { %7386 = vmatmul.mubr.msk.f32.gmra.mrb[56].mxu0 %vm145_vm0, %v284_v13 }
  0x7e   :  { %7388 = vmatprep.mubr.msk.f32.mxu0 %vm145_vm0, %v285_v14 }
  0x81   :  { %7389 = vmatmul.mubr.msk.f32.gmra.mrb[58].mxu0 %vm145_vm0, %v286_v15 }
  0x82   :  { %7391 = vmatprep.mubr.msk.f32.mxu0 %vm145_vm0, %v287_v16 }
  0x85   :  { %7392 = vmatmul.mubr.msk.f32.gmra.mrb[60].mxu0 %vm145_vm0, %v288_v17 }
  0x86   :  { %7394 = vmatprep.mubr.msk.f32.mxu0 %vm145_vm0, %v289_v18 }
  0x89   :  { %7395 = vmatmul.mubr.msk.f32.gmra.mrb[62].mxu0 %vm145_vm0, %v290_v19 }
  0x8a   :  { %7397 = vmatprep.mubr.msk.f32.mxu0 %vm145_vm0, %v291_v20 }
  0x8d   :  { %7398 = vmatmul.mubr.msk.f32.gmra.mrb[64].mxu0 %vm145_vm0, %v292_v21 }
  0x8e   :  { %7400 = vmatprep.mubr.msk.f32.mxu0 %vm145_vm0, %v293_v22 }
  0x91   :  { %7401 = vmatmul.mubr.msk.f32.gmra.mrb[66].mxu0 %vm145_vm0, %v294_v23 }
  0x92   :  { %7403 = vmatprep.mubr.msk.f32.mxu0 %vm145_vm0, %v295_v24 }
  0x95   :  { %7404 = vmatmul.mubr.msk.f32.gmra.mrb[68].mxu0 %vm145_vm0, %v296_v25 }
  0x96   :  { %7406 = vmatprep.mubr.msk.f32.mxu0 %vm145_vm0, %v297_v26 }
  0x99   :  { %7407 = vmatmul.mubr.msk.f32.gmra.mrb[70].mxu0 %vm145_vm0, %v298_v27 }
  0xdf   :  { %v7281_v29 = vpop.f32.mrb[0].mxu1 }
  0xe0   :  { %v218_v30 = vpop.f32.mrb[1].mxu1  ;;  %v7303_v31 = vpop.f32.mrb[0].mxu0  ;;  %v9773_v32 = vadd.f32 %v7281_v29, %v5958_v28 }
  0xe1   :  { %v9775_v33 = vadd.f32 %v5958_v28, %v218_v30  ;;  %v670_v34 = vpop.f32.mrb[1].mxu0 }
  0xe2   :  { %11880 = vst [vmem:[#allocation2_spill] sm:$0xff] %v9773_v32  ;;  %v7759_v35 = vpack.c.bf16 %v7303_v31, %v670_v34  ;;  %v9777_v36 = vpack.i.bf16 %v7303_v31, %v670_v34 }
  0xe3   :  { %11881 = vst [vmem:[#allocation3_spill] sm:$0xff] %v9775_v33  ;;  %7290 = vmatprep.mubr.msk.f32.mxu1 %vm145_vm0, %v9775_v33 }
  0xe4   :  { %11882 = vst [vmem:[#allocation4_spill] sm:$0xff] %v9777_v36  ;;  %7291 = vmatmul.mubr.msk.f32.vlgmr.msra.gmra.mrb[2].mxu1 %vm145_vm0, %v9773_v32  ;;  %v7306_v37 = vpop.f32.mrb[2].mxu0 }
  0xe5   :  { %v680_v38 = vpop.f32.mrb[3].mxu0 }
  0xe6   :  { %v7765_v39 = vpack.c.bf16 %v7306_v37, %v680_v38  ;;  %v9783_v40 = vpack.i.bf16 %v7306_v37, %v680_v38 }
  0xe8   :  { %11883 = vst [vmem:[#allocation5_spill] sm:$0xff] %v9783_v40  ;;  %v7309_v41 = vpop.f32.mrb[4].mxu0  ;;  %v10397_v40 = vld [vmem:[%s11744_s3] sm:$0xff] }
  0xe9   :  { %v690_v42 = vpop.f32.mrb[5].mxu0  ;;  %11953 = vst [vmem:[#allocation65_spill] sm:$0xff] %v10397_v40 }
  0xea   :  { %v7771_v43 = vpack.c.bf16 %v7309_v41, %v690_v42  ;;  %v9785_v44 = vpack.i.bf16 %v7309_v41, %v690_v42 }
  0xec   :  { %11884 = vst [vmem:[#allocation6_spill] sm:$0xff] %v9785_v44  ;;  %v7312_v45 = vpop.f32.mrb[6].mxu0 }
  0xed   :  { %v700_v46 = vpop.f32.mrb[7].mxu0 }
  0xee   :  { %v7777_v47 = vpack.c.bf16 %v7312_v45, %v700_v46  ;;  %v9787_v48 = vpack.i.bf16 %v7312_v45, %v700_v46 }
  0xf0   :  { %11885 = vst [vmem:[#allocation7_spill] sm:$0xff] %v9787_v48  ;;  %v9789_v49 = vpop.f32.mrb[8].mxu0 }
  0xf1   :  { %v9791_v50 = vpop.f32.mrb[9].mxu0 }
  0xf2   :  { %v7783_v51 = vpack.c.bf16 %v9789_v49, %v9791_v50  ;;  %v9797_v52 = vpack.i.bf16 %v9789_v49, %v9791_v50 }
  0xf4   :  { %11886 = vst [vmem:[#allocation8_spill] sm:$0xff] %v9797_v52  ;;  %v9799_v53 = vpop.f32.mrb[10].mxu0 }
  0xf5   :  { %v9801_v54 = vpop.f32.mrb[11].mxu0 }
  0xf6   :  { %v9805_v55 = vpack.i.bf16 %v9799_v53, %v9801_v54  ;;  %v7789_v56 = vpack.c.bf16 %v9799_v53, %v9801_v54 }
  0xf8   :  { %11887 = vst [vmem:[#allocation9_spill] sm:$0xff] %v9805_v55  ;;  %v9809_v57 = vpop.f32.mrb[12].mxu0 }
  0xf9   :  { %v9811_v58 = vpop.f32.mrb[13].mxu0 }
  0xfa   :  { %v9815_v59 = vpack.i.bf16 %v9809_v57, %v9811_v58  ;;  %v7795_v60 = vpack.c.bf16 %v9809_v57, %v9811_v58 }
  0xfc   :  { %11888 = vst [vmem:[#allocation10_spill] sm:$0xff] %v9815_v59  ;;  %v9819_v61 = vpop.f32.mrb[14].mxu0 }
  0xfd   :  { %v9821_v62 = vpop.f32.mrb[15].mxu0 }
  0xfe   :  { %v9825_v63 = vpack.i.bf16 %v9819_v61, %v9821_v62  ;;  %v7801_v0 = vpack.c.bf16 %v9819_v61, %v9821_v62 }
 0x100   :  { %11889 = vst [vmem:[#allocation11_spill] sm:$0xff] %v9825_v63  ;;  %v7327_v1 = vpop.f32.mrb[16].mxu0  ;;  %v105_v63 = vld [vmem:[%s11743_s4 + $0x168] sm:$0xff] }
 0x101   :  { %v750_v2 = vpop.f32.mrb[17].mxu0 }
 0x102   :  { %v7756_v4 = vpack.c.bf16 %v7327_v1, %v750_v2  ;;  %v9835_v5 = vpack.i.bf16 %v7327_v1, %v750_v2 }
 0x104   :  { %11893 = vst [vmem:[#allocation13_spill] sm:$0xff] %v9835_v5  ;;  %7758 = vmatprep.subr.msk.bf16.mxu1 %vm9831_vm2, %v7756_v4  ;;  %v7330_v6 = vpop.f32.mrb[18].mxu0 }
 0x105   :  { %7761 = vmatpush3.bf16.xpose.msk.msra.mxu1 %vm9831_vm2, %v7759_v35  ;;  %v760_v7 = vpop.f32.mrb[19].mxu0 }
 0x106   :  { %v7762_v8 = vpack.c.bf16 %v7330_v6, %v760_v7  ;;  %v9841_v9 = vpack.i.bf16 %v7330_v6, %v760_v7 }
 0x108   :  { %11894 = vst [vmem:[#allocation14_spill] sm:$0xff] %v9841_v9  ;;  %7764 = vmatprep.subr.msk.bf16.mxu1 %vm9831_vm2, %v7762_v8  ;;  %v7333_v10 = vpop.f32.mrb[20].mxu0  ;;  %v10417_v9 = vld [vmem:[%s11744_s3 + $0x28] sm:$0xff] }
 0x109   :  { %v770_v11 = vpop.f32.mrb[21].mxu0  ;;  %11956 = vst [vmem:[#allocation68_spill] sm:$0xff] %v10417_v9 }
 0x10a   :  { %v7768_v12 = vpack.c.bf16 %v7333_v10, %v770_v11  ;;  %v9845_v13 = vpack.i.bf16 %v7333_v10, %v770_v11 }
 0x10c   :  { %11895 = vst [vmem:[#allocation15_spill] sm:$0xff] %v9845_v13  ;;  %v7336_v14 = vpop.f32.mrb[22].mxu0 }
 0x10d   :  { %7767 = vmatpush3.bf16.xpose.msk.msra.mxu1 %vm9831_vm2, %v7765_v39  ;;  %v780_v15 = vpop.f32.mrb[23].mxu0 }
 0x10e   :  { %7770 = vmatprep.subr.msk.bf16.mxu1 %vm9831_vm2, %v7768_v12  ;;  %v7774_v16 = vpack.c.bf16 %v7336_v14, %v780_v15  ;;  %v9851_v17 = vpack.i.bf16 %v7336_v14, %v780_v15 }
 0x110   :  { %11896 = vst [vmem:[#allocation16_spill] sm:$0xff] %v9851_v17  ;;  %v7339_v18 = vpop.f32.mrb[24].mxu0 }
 0x111   :  { %v790_v19 = vpop.f32.mrb[25].mxu0 }
 0x112   :  { %v7780_v20 = vpack.c.bf16 %v7339_v18, %v790_v19  ;;  %v9853_v21 = vpack.i.bf16 %v7339_v18, %v790_v19 }
 0x114   :  { %11897 = vst [vmem:[#allocation17_spill] sm:$0xff] %v9853_v21  ;;  %v7342_v22 = vpop.f32.mrb[26].mxu0 }
 0x115   :  { %7773 = vmatpush3.bf16.xpose.msk.msra.mxu1 %vm9831_vm2, %v7771_v43  ;;  %v800_v23 = vpop.f32.mrb[27].mxu0 }
 0x116   :  { %7776 = vmatprep.subr.msk.bf16.mxu1 %vm9831_vm2, %v7774_v16  ;;  %v7786_v24 = vpack.c.bf16 %v7342_v22, %v800_v23  ;;  %v9859_v25 = vpack.i.bf16 %v7342_v22, %v800_v23 }
 0x118   :  { %11898 = vst [vmem:[#allocation18_spill] sm:$0xff] %v9859_v25  ;;  %v7345_v26 = vpop.f32.mrb[28].mxu0 }
 0x119   :  { %v810_v27 = vpop.f32.mrb[29].mxu0 }
 0x11a   :  { %v9861_v28 = vpack.i.bf16 %v7345_v26, %v810_v27  ;;  %v7792_v29 = vpack.c.bf16 %v7345_v26, %v810_v27 }
 0x11c   :  { %11899 = vst [vmem:[#allocation19_spill] sm:$0xff] %v9861_v28  ;;  %v7348_v30 = vpop.f32.mrb[30].mxu0 }
 0x11d   :  { %7779 = vmatpush3.bf16.xpose.msk.msra.mxu1 %vm9831_vm2, %v7777_v47  ;;  %v820_v31 = vpop.f32.mrb[31].mxu0 }
 0x11e   :  { %7782 = vmatprep.subr.msk.bf16.mxu1 %vm9831_vm2, %v7780_v20  ;;  %v9867_v34 = vpack.i.bf16 %v7348_v30, %v820_v31  ;;  %v7798_v35 = vpack.c.bf16 %v7348_v30, %v820_v31 }
 0x120   :  { %11900 = vst [vmem:[#allocation20_spill] sm:$0xff] %v9867_v34  ;;  %v9869_v37 = vpop.f32.mrb[32].mxu0 }
 0x121   :  { %v9871_v38 = vpop.f32.mrb[33].mxu0 }
 0x122   :  { %v9877_v41 = vpack.i.bf16 %v9869_v37, %v9871_v38 }
 0x124   :  { %11901 = vst [vmem:[#allocation21_spill] sm:$0xff] %v9877_v41  ;;  %v9879_v42 = vpop.f32.mrb[34].mxu0  ;;  %v120_v41 = vld [vmem:[%s11743_s4 + $0x1e0] sm:$0xff] }
 0x125   :  { %7785 = vmatpush3.bf16.xpose.msk.msra.mxu1 %vm9831_vm2, %v7783_v51  ;;  %v9883_v43 = vpop.f32.mrb[35].mxu0 }
 0x126   :  { %7788 = vmatprep.subr.msk.bf16.mxu1 %vm9831_vm2, %v7786_v24  ;;  %v9891_v46 = vpack.i.bf16 %v9879_v42, %v9883_v43 }
 0x128   :  { %11902 = vst [vmem:[#allocation22_spill] sm:$0xff] %v9891_v46  ;;  %v9893_v47 = vpop.f32.mrb[36].mxu0  ;;  %v103_v46 = vld [vmem:[%s11743_s4 + $0x158] sm:$0xff] }
 0x129   :  { %v9895_v49 = vpop.f32.mrb[37].mxu0 }
 0x12a   :  { %v9899_v50 = vpack.i.bf16 %v9893_v47, %v9895_v49 }
 0x12c   :  { %11903 = vst [vmem:[#allocation23_spill] sm:$0xff] %v9899_v50  ;;  %v9903_v1 = vpop.f32.mrb[38].mxu0 }
 0x12d   :  { %7791 = vmatpush3.bf16.xpose.msk.msra.mxu1 %vm9831_vm2, %v7789_v56  ;;  %v9910_v2 = vpop.f32.mrb[39].mxu0 }
 0x12e   :  { %7794 = vmatprep.subr.msk.bf16.mxu1 %vm9831_vm2, %v7792_v29  ;;  %v9916_v4 = vpack.i.bf16 %v9903_v1, %v9910_v2 }
 0x130   :  { %11904 = vst [vmem:[#allocation24_spill] sm:$0xff] %v9916_v4  ;;  %v9920_v7 = vpop.f32.mrb[40].mxu0 }
 0x131   :  { %v9922_v8 = vpop.f32.mrb[41].mxu0 }
 0x132   :  { %v9926_v53 = vpack.i.bf16 %v9920_v7, %v9922_v8 }
 0x134   :  { %11905 = vst [vmem:[#allocation25_spill] sm:$0xff] %v9926_v53  ;;  %v9930_v56 = vpop.f32.mrb[42].mxu0 }
 0x135   :  { %7797 = vmatpush3.bf16.xpose.msk.msra.mxu1 %vm9831_vm2, %v7795_v60  ;;  %v9937_v10 = vpop.f32.mrb[43].mxu0 }
 0x136   :  { %7800 = vmatprep.subr.msk.bf16.mxu1 %vm9831_vm2, %v7798_v35  ;;  %v9943_v11 = vpack.i.bf16 %v9930_v56, %v9937_v10 }
 0x138   :  { %11906 = vst [vmem:[#allocation26_spill] sm:$0xff] %v9943_v11  ;;  %v9947_v14 = vpop.f32.mrb[44].mxu0 }
 0x139   :  { %v9949_v15 = vpop.f32.mrb[45].mxu0 }
 0x13a   :  { %v9953_v57 = vpack.i.bf16 %v9947_v14, %v9949_v15 }
 0x13c   :  { %11907 = vst [vmem:[#allocation27_spill] sm:$0xff] %v9953_v57  ;;  %v9957_v60 = vpop.f32.mrb[46].mxu0 }
 0x13d   :  { %7803 = vmatpush3.bf16.xpose.msk.msra.mxu1 %vm9831_vm2, %v7801_v0  ;;  %v9964_v16 = vpop.f32.mrb[47].mxu0 }
 0x13e   :  { %v9968_v18 = vpack.i.bf16 %v9957_v60, %v9964_v16 }
 0x140   :  { %11908 = vst [vmem:[#allocation28_spill] sm:$0xff] %v9968_v18  ;;  %v7375_v20 = vpop.f32.mrb[48].mxu0 }
 0x141   :  { %v910_v22 = vpop.f32.mrb[49].mxu0 }
 0x142   :  { %v7804_v23 = vpack.c.bf16 %v7375_v20, %v910_v22  ;;  %v9972_v24 = vpack.i.bf16 %v7375_v20, %v910_v22 }
 0x144   :  { %11909 = vst [vmem:[#allocation29_spill] sm:$0xff] %v9972_v24  ;;  %v7378_v26 = vpop.f32.mrb[50].mxu0  ;;  %7806 = vmatprep.subr.msk.bf16.mxu1 %vm9831_vm2, %v7804_v23 }
 0x145   :  { %v920_v61 = vpop.f32.mrb[51].mxu0 }
 0x146   :  { %v7810_v62 = vpack.c.bf16 %v7378_v26, %v920_v61  ;;  %v9976_v0 = vpack.i.bf16 %v7378_v26, %v920_v61 }
 0x148   :  { %11910 = vst [vmem:[#allocation30_spill] sm:$0xff] %v9976_v0  ;;  %v7381_v27 = vpop.f32.mrb[52].mxu0 }
 0x149   :  { %v930_v29 = vpop.f32.mrb[53].mxu0 }
 0x14a   :  { %v7816_v30 = vpack.c.bf16 %v7381_v27, %v930_v29  ;;  %v9978_v31 = vpack.i.bf16 %v7381_v27, %v930_v29 }
 0x14c   :  { %11911 = vst [vmem:[#allocation31_spill] sm:$0xff] %v9978_v31  ;;  %v7384_v35 = vpop.f32.mrb[54].mxu0 }
 0x14d   :  { %v940_v19 = vpop.f32.mrb[55].mxu0 }
 0x14e   :  { %v9980_v58 = vpack.i.bf16 %v7384_v35, %v940_v19  ;;  %v7822_v12 = vpack.c.bf16 %v7384_v35, %v940_v19 }
 0x150   :  { %11912 = vst [vmem:[#allocation32_spill] sm:$0xff] %v9980_v58  ;;  %v7387_v20 = vpop.f32.mrb[56].mxu0 }
 0x151   :  { %v950_v22 = vpop.f32.mrb[57].mxu0 }
 0x152   :  { %v9982_v54 = vpack.i.bf16 %v7387_v20, %v950_v22  ;;  %v7828_v6 = vpack.c.bf16 %v7387_v20, %v950_v22 }
 0x154   :  { %11913 = vst [vmem:[#allocation33_spill] sm:$0xff] %v9982_v54  ;;  %v7390_v23 = vpop.f32.mrb[58].mxu0 }
 0x155   :  { %v960_v51 = vpop.f32.mrb[59].mxu0 }
 0x156   :  { %v9984_v45 = vpack.i.bf16 %v7390_v23, %v960_v51  ;;  %v7834_v26 = vpack.c.bf16 %v7390_v23, %v960_v51 }
 0x158   :  { %11914 = vst [vmem:[#allocation34_spill] sm:$0xff] %v9984_v45  ;;  %v7393_v61 = vpop.f32.mrb[60].mxu0 }
 0x159   :  { %v970_v39 = vpop.f32.mrb[61].mxu0 }
 0x15a   :  { %v9986_v33 = vpack.i.bf16 %v7393_v61, %v970_v39  ;;  %v7840_v27 = vpack.c.bf16 %v7393_v61, %v970_v39 }
 0x15c   :  { %11915 = vst [vmem:[#allocation35_spill] sm:$0xff] %v9986_v33  ;;  %v7396_v29 = vpop.f32.mrb[62].mxu0 }
 0x15d   :  { %v980_v32 = vpop.f32.mrb[63].mxu0 }
 0x15e   :  { %v9988_v18 = vpack.i.bf16 %v7396_v29, %v980_v32  ;;  %v7846_v19 = vpack.c.bf16 %v7396_v29, %v980_v32 }
 0x160   :  { %11916 = vst [vmem:[#allocation36_spill] sm:$0xff] %v9988_v18  ;;  %v7399_v35 = vpop.f32.mrb[64].mxu0  ;;  %v10410_v18 = vld [vmem:[%s11744_s3 + $0x30] sm:$0xff] }
 0x161   :  { %v990_v11 = vpop.f32.mrb[65].mxu0  ;;  %11954 = vst [vmem:[#allocation66_spill] sm:$0xff] %v10410_v18 }
 0x162   :  { %v9990_v53 = vpack.i.bf16 %v7399_v35, %v990_v11  ;;  %v7852_v20 = vpack.c.bf16 %v7399_v35, %v990_v11 }
 0x164   :  { %11917 = vst [vmem:[#allocation37_spill] sm:$0xff] %v9990_v53  ;;  %7854 = vmatprep.subr.msk.bf16.mxu0 %vm9831_vm2, %v7852_v20  ;;  %v7402_v22 = vpop.f32.mrb[66].mxu0 }
 0x165   :  { %7857 = vmatpush3.bf16.xpose.msk.msra.mxu0 %vm9831_vm2, %v7852_v20  ;;  %v1000_v51 = vpop.f32.mrb[67].mxu0 }
 0x166   :  { %v9996_v23 = vpack.i.bf16 %v7402_v22, %v1000_v51  ;;  %v7858_v39 = vpack.c.bf16 %v7402_v22, %v1000_v51 }
 0x168   :  { %11918 = vst [vmem:[#allocation38_spill] sm:$0xff] %v9996_v23  ;;  %7860 = vmatprep.subr.msk.bf16.mxu0 %vm9831_vm2, %v7858_v39  ;;  %v7405_v32 = vpop.f32.mrb[68].mxu0 }
 0x169   :  { %v1010_v61 = vpop.f32.mrb[69].mxu0 }
 0x16a   :  { %v10000_v29 = vpack.i.bf16 %v7405_v32, %v1010_v61  ;;  %v7864_v4 = vpack.c.bf16 %v7405_v32, %v1010_v61  ;;  %v83_v32 = vld [vmem:[%s11743_s4 + $0xb8] sm:$0xff] }
 0x16c   :  { %11919 = vst [vmem:[#allocation39_spill] sm:$0xff] %v10000_v29  ;;  %v7408_v11 = vpop.f32.mrb[70].mxu0 }
 0x16d   :  { %7863 = vmatpush3.bf16.xpose.msk.msra.mxu0 %vm9831_vm2, %v7858_v39  ;;  %v1020_v35 = vpop.f32.mrb[71].mxu0  ;;  %v82_v39 = vld [vmem:[%s11743_s4 + $0xb0] sm:$0xff] }
 0x16e   :  { %7866 = vmatprep.subr.msk.bf16.mxu0 %vm9831_vm2, %v7864_v4  ;;  %v10006_v20 = vpack.i.bf16 %v7408_v11, %v1020_v35  ;;  %v7870_v50 = vpack.c.bf16 %v7408_v11, %v1020_v35  ;;  %v10151_v11 = vpack.c.bf16 %v83_v32, %v82_v39  ;;  %v66_v35 = vld [vmem:[%s11743_s4 + $0x30] sm:$0xff]  ;;  %v91_v39 = vld [vmem:[%s11743_s4 + $0xf8] sm:$0xff] }
 0x170   :  { %11920 = vst [vmem:[#allocation40_spill] sm:$0xff] %v10006_v20 }
 0x175   :  { %7869 = vmatpush3.bf16.xpose.msk.msra.mxu0 %vm9831_vm2, %v7864_v4  ;;  %v11923_v4 = vpack.c.bf16 %v9869_v37, %v9871_v38  ;;  %v11925_v37 = vpack.c.bf16 %v9893_v47, %v9895_v49  ;;  %v11926_v38 = vpack.c.bf16 %v9903_v1, %v9910_v2  ;;  %v11929_v47 = vpack.c.bf16 %v9947_v14, %v9949_v15  ;;  %v76_v49 = vld [vmem:[%s11743_s4 + $0x80] sm:$0xff]  ;;  %v77_v1 = vld [vmem:[%s11743_s4 + $0x88] sm:$0xff]  ;;  %v62_v15 = vld [vmem:[%s11743_s4 + $0x10] sm:$0xff] }
 0x176   :  { %7872 = vmatprep.subr.msk.bf16.mxu0 %vm9831_vm2, %v7870_v50  ;;  %v10087_v2 = vpack.c.bf16 %v77_v1, %v76_v49  ;;  %v86_v49 = vld [vmem:[%s11743_s4 + $0xd0] sm:$0xff]  ;;  %v87_v1 = vld [vmem:[%s11743_s4 + $0xd8] sm:$0xff] }
 0x17d   :  { %7875 = vmatpush3.bf16.xpose.msk.msra.mxu0 %vm9831_vm2, %v7870_v50  ;;  %v11924_v50 = vpack.c.bf16 %v9879_v42, %v9883_v43  ;;  %v11927_v42 = vpack.c.bf16 %v9920_v7, %v9922_v8  ;;  %v11928_v43 = vpack.c.bf16 %v9930_v56, %v9937_v10  ;;  %v60_v7 = vld [vmem:[%s11743_s4] sm:$0xff]  ;;  %v61_v8 = vld [vmem:[%s11743_s4 + $0x8] sm:$0xff]  ;;  %v78_v56 = vld [vmem:[%s11743_s4 + $0x90] sm:$0xff] }
 0x17e   :  { %v79_v10 = vld [vmem:[%s11743_s4 + $0x98] sm:$0xff] }
 0x17f   :  { %v10109_v14 = vpack.c.bf16 %v79_v10, %v78_v56  ;;  %v71_v56 = vld [vmem:[%s11743_s4 + $0x58] sm:$0xff]  ;;  %v88_v10 = vld [vmem:[%s11743_s4 + $0xe0] sm:$0xff] }
 0x1b7   :  { %v10014_v22 = vpop.f32.mrb[2].mxu1 }
 0x1b8   :  { %11921 = vst [vmem:[#allocation41_spill] sm:$0xff] %v10014_v22  ;;  %v10016_v51 = vpop.f32.mrb[3].mxu1 }
 0x1b9   :  { %11922 = vst [vmem:[#allocation42_spill] sm:$0xff] %v10016_v51  ;;  %6537 = vmatprep.mubr.msk.f32.mxu1 %vm1029_vm1, %v10016_v51  ;;  %7425 = vmatprep.mubr.msk.f32.mxu0 %vm1029_vm1, %v10016_v51 }
 0x1ba   :  { %6538 = vmatmul.mubr.msk.f32.vlgmr.msra.gmra.mrb[4].mxu1 %vm1029_vm1, %v10016_v51  ;;  %7426 = vmatmul.mubr.msk.f32.vlgmr.msra.gmra.mrb[72].mxu0 %vm1029_vm1, %v10014_v22 }
 0x1bb   :  { %7809 = vmatpush3.bf16.xpose.msk.msra.mxu1 %vm9831_vm2, %v11923_v4  ;;  %6539 = vmatprep.mubr.msk.f32.mxu1 %vm1029_vm1, %v10014_v22  ;;  %v67_v4 = vld [vmem:[%s11743_s4 + $0x38] sm:$0xff] }
 0x1bc   :  { %7812 = vmatprep.subr.msk.bf16.mxu1 %vm9831_vm2, %v7810_v62  ;;  %v81_v62 = vld [vmem:[%s11743_s4 + $0xa8] sm:$0xff] }
 0x1be   :  { %6540 = vmatmul.mubr.msk.f32.gmra.mrb[6].mxu1 %vm1029_vm1, %v10014_v22 }
 0x1bf   :  { %6573 = vmatprep.mubr.msk.f32.mxu1 %vm1029_vm1, %v10016_v51 }
 0x1c3   :  { %7815 = vmatpush3.bf16.xpose.msk.msra.mxu1 %vm9831_vm2, %v11924_v50  ;;  %v84_v50 = vld [vmem:[%s11743_s4 + $0xc0] sm:$0xff] }
 0x1c4   :  { %7818 = vmatprep.subr.msk.bf16.mxu1 %vm9831_vm2, %v7816_v30 }
 0x1cb   :  { %7821 = vmatpush3.bf16.xpose.msk.msra.mxu1 %vm9831_vm2, %v11925_v37  ;;  %v85_v37 = vld [vmem:[%s11743_s4 + $0xc8] sm:$0xff] }
 0x1cc   :  { %7824 = vmatprep.subr.msk.bf16.mxu1 %vm9831_vm2, %v7822_v12  ;;  %v10107_v12 = vpack.c.bf16 %v61_v8, %v60_v7  ;;  %v10187_v7 = vpack.c.bf16 %v87_v1, %v86_v49  ;;  %v70_v8 = vld [vmem:[%s11743_s4 + $0x50] sm:$0xff]  ;;  %v108_v1 = vld [vmem:[%s11743_s4 + $0x180] sm:$0xff] }
 0x1d3   :  { %7827 = vmatpush3.bf16.xpose.msk.msra.mxu1 %vm9831_vm2, %v11926_v38  ;;  %v10166_v38 = vpack.c.bf16 %v67_v4, %v66_v35  ;;  %v74_v4 = vld [vmem:[%s11743_s4 + $0x70] sm:$0xff] }
 0x1d4   :  { %7830 = vmatprep.subr.msk.bf16.mxu1 %vm9831_vm2, %v7828_v6  ;;  %v11930_v6 = vpack.c.bf16 %v9957_v60, %v9964_v16  ;;  %v63_v60 = vld [vmem:[%s11743_s4 + $0x18] sm:$0xff]  ;;  %v80_v16 = vld [vmem:[%s11743_s4 + $0xa0] sm:$0xff] }
 0x1d5   :  { %v10128_v30 = vpack.c.bf16 %v63_v60, %v62_v15  ;;  %v89_v15 = vld [vmem:[%s11743_s4 + $0xe8] sm:$0xff]  ;;  %v10202_v60 = vpack.c.bf16 %v71_v56, %v70_v8  ;;  %v92_v56 = vld [vmem:[%s11743_s4 + $0x100] sm:$0xff] }
 0x1d6   :  { %v109_v8 = vld [vmem:[%s11743_s4 + $0x188] sm:$0xff] }
 0x1db   :  { %7833 = vmatpush3.bf16.xpose.msk.msra.mxu1 %vm9831_vm2, %v11927_v42  ;;  %v10169_v42 = vpack.c.bf16 %v85_v37, %v84_v50  ;;  %v75_v50 = vld [vmem:[%s11743_s4 + $0x78] sm:$0xff]  ;;  %v124_v37 = vld [vmem:[%s11743_s4 + $0x200] sm:$0xff] }
 0x1dc   :  { %7836 = vmatprep.subr.msk.bf16.mxu1 %vm9831_vm2, %v7834_v26  ;;  %v10131_v26 = vpack.c.bf16 %v81_v62, %v80_v16  ;;  %v10205_v16 = vpack.c.bf16 %v89_v15, %v88_v10  ;;  %v72_v62 = vld [vmem:[%s11743_s4 + $0x60] sm:$0xff]  ;;  %v10254_v10 = vpack.c.bf16 %v109_v8, %v108_v1  ;;  %v93_v15 = vld [vmem:[%s11743_s4 + $0x108] sm:$0xff] }
 0x1de   :  { %11931 = vst [vmem:[#allocation43_spill] sm:$0xff] %v10205_v16  ;;  %11936 = vst [vmem:[#allocation48_spill] sm:$0xff] %v10254_v10  ;;  %7909 = vmatprep.subr.bf16.mxu0 %v10254_v10 }
 0x1e3   :  { %7839 = vmatpush3.bf16.xpose.msk.msra.mxu1 %vm9831_vm2, %v11928_v43  ;;  %v68_v43 = vld [vmem:[%s11743_s4 + $0x40] sm:$0xff] }
 0x1e4   :  { %7842 = vmatprep.subr.msk.bf16.mxu1 %vm9831_vm2, %v7840_v27  ;;  %v64_v27 = vld [vmem:[%s11743_s4 + $0x20] sm:$0xff] }
 0x1eb   :  { %7845 = vmatpush3.bf16.xpose.msk.msra.mxu1 %vm9831_vm2, %v11929_v47  ;;  %v69_v47 = vld [vmem:[%s11743_s4 + $0x48] sm:$0xff] }
 0x1ec   :  { %7848 = vmatprep.subr.msk.bf16.mxu1 %vm9831_vm2, %v7846_v19  ;;  %v65_v19 = vld [vmem:[%s11743_s4 + $0x28] sm:$0xff] }
 0x1ed   :  { %v10148_v61 = vpack.c.bf16 %v65_v19, %v64_v27  ;;  %v73_v27 = vld [vmem:[%s11743_s4 + $0x68] sm:$0xff]  ;;  %v90_v19 = vld [vmem:[%s11743_s4 + $0xf0] sm:$0xff] }
 0x1ee   :  { %v10220_v32 = vpack.c.bf16 %v73_v27, %v72_v62  ;;  %v10223_v35 = vpack.c.bf16 %v91_v39, %v90_v19  ;;  %v110_v62 = vld [vmem:[%s11743_s4 + $0x190] sm:$0xff]  ;;  %v111_v27 = vld [vmem:[%s11743_s4 + $0x198] sm:$0xff]  ;;  %v10265_v19 = vpack.c.bf16 %v93_v15, %v92_v56  ;;  %v96_v56 = vld [vmem:[%s11743_s4 + $0x120] sm:$0xff] }
 0x1ef   :  { %v10267_v39 = vpack.c.bf16 %v111_v27, %v110_v62  ;;  %v97_v15 = vld [vmem:[%s11743_s4 + $0x128] sm:$0xff]  ;;  %v114_v62 = vld [vmem:[%s11743_s4 + $0x1b0] sm:$0xff]  ;;  %v115_v27 = vld [vmem:[%s11743_s4 + $0x1b8] sm:$0xff] }
 0x1f0   :  { %11932 = vst [vmem:[#allocation44_spill] sm:$0xff] %v10220_v32  ;;  %11933 = vst [vmem:[#allocation45_spill] sm:$0xff] %v10223_v35  ;;  %7911 = vmatpush3.bf16.msra.mxu0 %v10265_v19 }
 0x1f1   :  { %11937 = vst [vmem:[#allocation49_spill] sm:$0xff] %v10265_v19  ;;  %11938 = vst [vmem:[#allocation50_spill] sm:$0xff] %v10267_v39  ;;  %7913 = vmatprep.subr.bf16.mxu0 %v10267_v39 }
 0x1f3   :  { %7851 = vmatpush3.bf16.xpose.msk.msra.mxu1 %vm9831_vm2, %v11930_v6  ;;  %v10184_v6 = vpack.c.bf16 %v69_v47, %v68_v43  ;;  %v125_v43 = vld [vmem:[%s11743_s4 + $0x208] sm:$0xff]  ;;  %v10238_v47 = vpack.c.bf16 %v75_v50, %v74_v4  ;;  %v94_v4 = vld [vmem:[%s11743_s4 + $0x110] sm:$0xff]  ;;  %v95_v50 = vld [vmem:[%s11743_s4 + $0x118] sm:$0xff] }
 0x1f4   :  { %7877 = vmatprep.subr.bf16.mxu1 %v10087_v2  ;;  %v10241_v49 = vpack.c.bf16 %v125_v43, %v124_v37  ;;  %v112_v37 = vld [vmem:[%s11743_s4 + $0x1a0] sm:$0xff]  ;;  %v113_v43 = vld [vmem:[%s11743_s4 + $0x1a8] sm:$0xff]  ;;  %v10283_v1 = vpack.c.bf16 %v95_v50, %v94_v4  ;;  %v10301_v4 = vpack.c.bf16 %v97_v15, %v96_v56  ;;  %v10304_v50 = vpack.c.bf16 %v115_v27, %v114_v62 }
 0x1f5   :  { %11934 = vst [vmem:[#allocation46_spill] sm:$0xff] %v10238_v47  ;;  %v10286_v8 = vpack.c.bf16 %v113_v43, %v112_v37  ;;  %v98_v37 = vld [vmem:[%s11743_s4 + $0x130] sm:$0xff]  ;;  %v99_v43 = vld [vmem:[%s11743_s4 + $0x138] sm:$0xff]  ;;  %v117_v56 = vld [vmem:[%s11743_s4 + $0x1c8] sm:$0xff] }
 0x1f6   :  { %11935 = vst [vmem:[#allocation47_spill] sm:$0xff] %v10241_v49  ;;  %11939 = vst [vmem:[#allocation51_spill] sm:$0xff] %v10283_v1  ;;  %7915 = vmatpush3.bf16.msra.mxu0 %v10283_v1  ;;  %v10319_v15 = vpack.c.bf16 %v99_v43, %v98_v37  ;;  %v10322_v62 = vpack.c.bf16 %v117_v56, %v116_v3  ;;  %v100_v27 = vld [vmem:[%s11743_s4 + $0x140] sm:$0xff]  ;;  %v119_v37 = vld [vmem:[%s11743_s4 + $0x1d8] sm:$0xff] }
 0x1f7   :  { %11940 = vst [vmem:[#allocation52_spill] sm:$0xff] %v10286_v8  ;;  %11941 = vst [vmem:[#allocation53_spill] sm:$0xff] %v10301_v4  ;;  %7917 = vmatprep.subr.bf16.mxu0 %v10286_v8  ;;  %v102_v56 = vld [vmem:[%s11743_s4 + $0x150] sm:$0xff] }
 0x1f8   :  { %11942 = vst [vmem:[#allocation54_spill] sm:$0xff] %v10304_v50  ;;  %11943 = vst [vmem:[#allocation55_spill] sm:$0xff] %v10319_v15 }
 0x1f9   :  { %11944 = vst [vmem:[#allocation56_spill] sm:$0xff] %v10322_v62 }
 0x1fa   :  { %6574 = vmatmul.mubr.msk.f32.vlgmr.msra.gmra.mrb[8].mxu1 %vm1029_vm1, %v10016_v51  ;;  %7919 = vmatpush3.bf16.msra.mxu0 %v10301_v4  ;;  %v118_v51 = vld [vmem:[%s11743_s4 + $0x1d0] sm:$0xff] }
 0x1fb   :  { %6575 = vmatprep.mubr.msk.f32.mxu1 %vm1029_vm1, %v10014_v22  ;;  %7879 = vmatpush3.bf16.msra.mxu1 %v10107_v12  ;;  %v10340_v43 = vpack.c.bf16 %v119_v37, %v118_v51  ;;  %v10355_v51 = vpack.c.bf16 %v103_v46, %v102_v56  ;;  %v104_v37 = vld [vmem:[%s11743_s4 + $0x160] sm:$0xff]  ;;  %v123_v46 = vld [vmem:[%s11743_s4 + $0x1f8] sm:$0xff] }
 0x1fc   :  { %7881 = vmatprep.subr.bf16.mxu1 %v10109_v14  ;;  %7921 = vmatprep.subr.bf16.mxu0 %v10304_v50  ;;  %v10368_v59 = vpack.c.bf16 %v105_v63, %v104_v37  ;;  %v107_v63 = vld [vmem:[%s11743_s4 + $0x178] sm:$0xff] }
 0x1fd   :  { %11946 = vst [vmem:[#allocation58_spill] sm:$0xff] %v10340_v43  ;;  %11947 = vst [vmem:[#allocation59_spill] sm:$0xff] %v10355_v51 }
 0x1fe   :  { %6576 = vmatmul.mubr.msk.f32.gmra.mrb[10].mxu1 %vm1029_vm1, %v10014_v22  ;;  %v101_v22 = vld [vmem:[%s11743_s4 + $0x148] sm:$0xff]  ;;  %7923 = vmatpush3.bf16.msra.mxu0 %v10319_v15  ;;  %11949 = vst [vmem:[#allocation61_spill] sm:$0xff] %v10368_v59 }
 0x1ff   :  { %7883 = vmatpush3.bf16.msra.mxu1 %v10128_v30  ;;  %v10337_v3 = vpack.c.bf16 %v101_v22, %v100_v27  ;;  %7925 = vmatprep.subr.bf16.mxu0 %v10322_v62  ;;  %v121_v22 = vld [vmem:[%s11743_s4 + $0x1e8] sm:$0xff] }
 0x200   :  { %7885 = vmatprep.subr.bf16.mxu1 %v10131_v26  ;;  %v10358_v27 = vpack.c.bf16 %v121_v22, %v120_v41  ;;  %v122_v41 = vld [vmem:[%s11743_s4 + $0x1f0] sm:$0xff] }
 0x201   :  { %11945 = vst [vmem:[#allocation57_spill] sm:$0xff] %v10337_v3  ;;  %v10377_v56 = vpack.c.bf16 %v123_v46, %v122_v41  ;;  %v106_v22 = vld [vmem:[%s11743_s4 + $0x170] sm:$0xff]  ;;  %v10392_v41 = vld [vmem:[%s11744_s3 + $0x8] sm:$0xff] }
 0x202   :  { %7927 = vmatpush3.bf16.msra.mxu0 %v10337_v3  ;;  %11948 = vst [vmem:[#allocation60_spill] sm:$0xff] %v10358_v27  ;;  %v10385_v37 = vpack.c.bf16 %v107_v63, %v106_v22  ;;  %11952 = vst [vmem:[#allocation64_spill] sm:$0xff] %v10392_v41  ;;  %v126_v63 = vld [vmem:[%s11743_s4 + $0x210] sm:$0xff] }
 0x203   :  { %7887 = vmatpush3.bf16.msra.mxu1 %v10148_v61  ;;  %7929 = vmatprep.subr.bf16.mxu0 %v10340_v43  ;;  %11950 = vst [vmem:[#allocation62_spill] sm:$0xff] %v10377_v56 }
 0x204   :  { %7889 = vmatprep.subr.bf16.mxu1 %v10151_v11  ;;  %11951 = vst [vmem:[#allocation63_spill] sm:$0xff] %v10385_v37 }
 0x206   :  { %7931 = vmatpush3.bf16.msra.mxu0 %v10355_v51 }
 0x207   :  { %7891 = vmatpush3.bf16.msra.mxu1 %v10166_v38  ;;  %7933 = vmatprep.subr.bf16.mxu0 %v10358_v27 }
 0x208   :  { %7893 = vmatprep.subr.bf16.mxu1 %v10169_v42 }
 0x20a   :  { %7935 = vmatpush3.bf16.msra.mxu0 %v10368_v59 }
 0x20b   :  { %7895 = vmatpush3.bf16.msra.mxu1 %v10184_v6  ;;  %7937 = vmatprep.subr.bf16.mxu0 %v10377_v56 }
 0x20c   :  { %7897 = vmatprep.subr.bf16.mxu1 %v10187_v7 }
 0x20e   :  { %7939 = vmatpush3.bf16.msra.mxu0 %v10385_v37 }
 0x20f   :  { %7899 = vmatpush3.bf16.msra.mxu1 %v10202_v60  ;;  %8006 = vmatprep.subr.msk.bf16.mxu0 %vm10484_vm5, %v10254_v10 }
 0x210   :  { %7901 = vmatprep.subr.bf16.mxu1 %v10205_v16 }
 0x213   :  { %7903 = vmatpush3.bf16.msra.mxu1 %v10220_v32 }
 0x214   :  { %7905 = vmatprep.subr.bf16.mxu1 %v10223_v35 }
 0x217   :  { %7907 = vmatpush3.bf16.msra.mxu1 %v10238_v47 }
 0x218   :  { %7941 = vmatprep.subr.bf16.mxu1 %v10241_v49 }
 0x28d   :  { %v1318_v55 = vpop.f32.mrb[4].mxu1  ;;  %v7427_v52 = vpop.f32.mrb[72].mxu0 }
 0x28e   :  { %v1481_v48 = vmul.f32 0.25, %v1318_v55  ;;  %v1320_v46 = vpop.f32.mrb[5].mxu1  ;;  %v1472_v44 = vpop.f32.mrb[73].mxu0  ;;  %v127_v55 = vld [vmem:[%s11743_s4 + $0x218] sm:$0xff] }
 0x28f   :  { %v1482_v22 = vmul.f32 0.25, %v1320_v46  ;;  %v10412_v33 = vpack.c.bf16 %v127_v55, %v126_v63  ;;  %v1485_v45 = vmul.f32 0.25, %v1472_v44 }
 0x290   :  { %v1491_v23 = vmul.f32 %v1481_v48, %v10397_v40  ;;  %v128_v48 = vld [vmem:[%s11743_s4 + $0x220] sm:$0xff] }
 0x291   :  { %v1492_v36 = vmul.f32 %v1482_v22, %v10392_v41  ;;  %v1324_v57 = vpop.f32.mrb[6].mxu1  ;;  %11955 = vst [vmem:[#allocation67_spill] sm:$0xff] %v10412_v33  ;;  %v10428_v22 = vld [vmem:[%s11744_s3 + $0x20] sm:$0xff] }
 0x292   :  { %v1486_v24 = vmul.f32 0.25, %v1324_v57  ;;  %v1326_v46 = vpop.f32.mrb[7].mxu1  ;;  %v129_v57 = vld [vmem:[%s11743_s4 + $0x228] sm:$0xff]  ;;  %11957 = vst [vmem:[#allocation69_spill] sm:$0xff] %v10428_v22  ;;  %v1495_v55 = vmul.f32 %v1485_v45, %v10428_v22  ;;  %v1490_v45 = vmul.f32 0.25, %v7427_v52 }
 0x293   :  { %v1487_v54 = vmul.f32 0.25, %v1326_v46  ;;  %1572 = vmatprep.mubr.f32.mxu1 %v1492_v36  ;;  %v10434_v63 = vpack.c.bf16 %v129_v57, %v128_v48  ;;  %v130_v46 = vld [vmem:[%s11743_s4 + $0x230] sm:$0xff] }
 0x294   :  { %1573 = vmatmul.mubr.f32.vlgmr.msra.gmra.mrb[12].mxu1 %v1491_v23  ;;  %v1496_v36 = vmul.f32 %v1486_v24, %v10417_v9  ;;  %v10453_v23 = vld [vmem:[%s11744_s3 + $0x48] sm:$0xff]  ;;  %v10478_v9 = vld [vmem:[%s11744_s3 + $0x38] sm:$0xff] }
 0x295   :  { %v1497_v44 = vmul.f32 %v1487_v54, %v10410_v18  ;;  %7943 = vmatpush3.bf16.msra.mxu1 %v10241_v49  ;;  %11958 = vst [vmem:[#allocation70_spill] sm:$0xff] %v10434_v63  ;;  %v131_v54 = vld [vmem:[%s11743_s4 + $0x238] sm:$0xff]  ;;  %11960 = vst [vmem:[#allocation72_spill] sm:$0xff] %v10453_v23  ;;  %v1500_v48 = vmul.f32 %v1490_v45, %v10453_v23 }
 0x296   :  { %7945 = vmatprep.subr.bf16.mxu1 %v10412_v33  ;;  %v10446_v24 = vpack.c.bf16 %v131_v54, %v130_v46 }
 0x297   :  { %1577 = vmatprep.mubr.f32.mxu1 %v1497_v44 }
 0x298   :  { %1578 = vmatmul.mubr.f32.gmra.mrb[14].mxu1 %v1496_v36  ;;  %11959 = vst [vmem:[#allocation71_spill] sm:$0xff] %v10446_v24  ;;  %v10461_v36 = vld [vmem:[%s11744_s3 + $0x18] sm:$0xff] }
 0x299   :  { %7947 = vmatpush3.bf16.msra.mxu1 %v10412_v33  ;;  %7444 = vmatprep.mubr.msk.f32.mxu1 %vm1501_vm3, %v1495_v55  ;;  %11961 = vst [vmem:[#allocation73_spill] sm:$0xff] %v10461_v36  ;;  %v10466_v55 = vld [vmem:[%s11744_s3 + $0x10] sm:$0xff] }
 0x29a   :  { %7949 = vmatprep.subr.bf16.mxu1 %v10434_v63  ;;  %11962 = vst [vmem:[#allocation74_spill] sm:$0xff] %v10466_v55 }
 0x29d   :  { %7951 = vmatpush3.bf16.msra.mxu1 %v10434_v63 }
 0x29e   :  { %7953 = vmatprep.subr.bf16.mxu1 %v10446_v24 }
 0x2a1   :  { %7955 = vmatpush3.bf16.msra.mxu1 %v10446_v24 }
 0x2a2   :  { %7958 = vmatprep.subr.msk.bf16.mxu1 %vm10484_vm5, %v10087_v2 }
 0x2a4   :  { %7445 = vmatmul.mubr.msk.f32.vlgmr.msra.gmra.mrb[16].mxu1 %vm1501_vm3, %v1500_v48 }
 0x2aa   :  { %7961 = vmatpush3.bf16.xpose.msk.msra.mxu1 %vm10484_vm5, %v10107_v12 }
 0x2ab   :  { %7964 = vmatprep.subr.msk.bf16.mxu1 %vm10484_vm5, %v10109_v14 }
 0x2b2   :  { %7967 = vmatpush3.bf16.xpose.msk.msra.mxu1 %vm10484_vm5, %v10128_v30 }
 0x2b3   :  { %7970 = vmatprep.subr.msk.bf16.mxu1 %vm10484_vm5, %v10131_v26 }
 0x2ba   :  { %7973 = vmatpush3.bf16.xpose.msk.msra.mxu1 %vm10484_vm5, %v10148_v61 }
 0x2bb   :  { %7976 = vmatprep.subr.msk.bf16.mxu1 %vm10484_vm5, %v10151_v11 }
 0x2c2   :  { %7979 = vmatpush3.bf16.xpose.msk.msra.mxu1 %vm10484_vm5, %v10166_v38 }
 0x2c3   :  { %7982 = vmatprep.subr.msk.bf16.mxu1 %vm10484_vm5, %v10169_v42 }
 0x2ca   :  { %7985 = vmatpush3.bf16.xpose.msk.msra.mxu1 %vm10484_vm5, %v10184_v6 }
 0x2cb   :  { %7988 = vmatprep.subr.msk.bf16.mxu1 %vm10484_vm5, %v10187_v7 }
 0x2cd   :  { %v1395_v57 = vpop.f32.mrb[8].mxu1 }
 0x2ce   :  { %v1483_v44 = vmul.f32 0.25, %v1395_v57  ;;  %v1397_v52 = vpop.f32.mrb[9].mxu1  ;;  %v10473_v57 = vld [vmem:[%s11744_s3 + $0x40] sm:$0xff] }
 0x2cf   :  { %v1484_v46 = vmul.f32 0.25, %v1397_v52 }
 0x2d0   :  { %v1493_v45 = vmul.f32 %v1483_v44, %v10466_v55 }
 0x2d1   :  { %v1494_v54 = vmul.f32 %v1484_v46, %v10461_v36  ;;  %v1401_v22 = vpop.f32.mrb[10].mxu1 }
 0x2d2   :  { %v1488_v48 = vmul.f32 0.25, %v1401_v22  ;;  %v1403_v23 = vpop.f32.mrb[11].mxu1  ;;  %7991 = vmatpush3.bf16.xpose.msk.msra.mxu1 %vm10484_vm5, %v10202_v60 }
 0x2d3   :  { %v1489_v18 = vmul.f32 0.25, %v1403_v23  ;;  %1647 = vmatprep.mubr.f32.mxu0 %v1494_v54  ;;  %v11963_v23 = vmov 0  ;;  %7994 = vmatprep.subr.msk.bf16.mxu1 %vm10484_vm5, %v10205_v16 }
 0x2d4   :  { %1648 = vmatmul.mubr.f32.vlgmr.msra.gmra.mrb[74].mxu0 %v1493_v45  ;;  %v1498_v46 = vmul.f32 %v1488_v48, %v10478_v9  ;;  %v11964_v23 = vsel %vm10484_vm5, 4294967295, %v11963_v23 }
 0x2d5   :  { %v1499_v52 = vmul.f32 %v1489_v18, %v10473_v57  ;;  %11965 = vst [vmem:[#allocation75_spill] sm:$0xff] %v11964_v23  ;;  %8009 = vmatpush3.bf16.xpose.msk.msra.mxu0 %vm10484_vm5, %v10265_v19 }
 0x2d6   :  { %8012 = vmatprep.subr.msk.bf16.mxu0 %vm10484_vm5, %v10267_v39  ;;  %v11998_v39 = vld [vmem:[#allocation65_spill] sm:$0xff] }
 0x2d7   :  { %1652 = vmatprep.mubr.f32.mxu0 %v1499_v52 }
 0x2d8   :  { %1653 = vmatmul.mubr.f32.gmra.mrb[76].mxu0 %v1498_v46 }
 0x2da   :  { %7997 = vmatpush3.bf16.xpose.msk.msra.mxu1 %vm10484_vm5, %v10220_v32 }
 0x2db   :  { %8000 = vmatprep.subr.msk.bf16.mxu1 %vm10484_vm5, %v10223_v35 }
 0x2dd   :  { %8015 = vmatpush3.bf16.xpose.msk.msra.mxu0 %vm10484_vm5, %v10283_v1 }
 0x2de   :  { %8018 = vmatprep.subr.msk.bf16.mxu0 %vm10484_vm5, %v10286_v8 }
 0x2e2   :  { %8003 = vmatpush3.bf16.xpose.msk.msra.mxu1 %vm10484_vm5, %v10238_v47 }
 0x2e3   :  { %8054 = vmatprep.subr.msk.bf16.mxu1 %vm10484_vm5, %v10241_v49 }
 0x2e5   :  { %8021 = vmatpush3.bf16.xpose.msk.msra.mxu0 %vm10484_vm5, %v10301_v4 }
 0x2e6   :  { %8024 = vmatprep.subr.msk.bf16.mxu0 %vm10484_vm5, %v10304_v50  ;;  %v11997_v50 = vld [vmem:[#allocation73_spill] sm:$0xff] }
 0x2ed   :  { %8027 = vmatpush3.bf16.xpose.msk.msra.mxu0 %vm10484_vm5, %v10319_v15 }
 0x2ee   :  { %8030 = vmatprep.subr.msk.bf16.mxu0 %vm10484_vm5, %v10322_v62  ;;  %v11996_v62 = vld [vmem:[#allocation64_spill] sm:$0xff] }
 0x2f5   :  { %8033 = vmatpush3.bf16.xpose.msk.msra.mxu0 %vm10484_vm5, %v10337_v3 }
 0x2f6   :  { %8036 = vmatprep.subr.msk.bf16.mxu0 %vm10484_vm5, %v10340_v43 }
 0x2fd   :  { %8039 = vmatpush3.bf16.xpose.msk.msra.mxu0 %vm10484_vm5, %v10355_v51 }
 0x2fe   :  { %8042 = vmatprep.subr.msk.bf16.mxu0 %vm10484_vm5, %v10358_v27 }
 0x305   :  { %8045 = vmatpush3.bf16.xpose.msk.msra.mxu0 %vm10484_vm5, %v10368_v59 }
 0x306   :  { %8048 = vmatprep.subr.msk.bf16.mxu0 %vm10484_vm5, %v10377_v56 }
 0x30d   :  { %8051 = vmatpush3.bf16.xpose.msk.msra.mxu0 %vm10484_vm5, %v10385_v37 }
 0x367   :  { %v6619_v22 = vpop.f32.mrb[12].mxu1 }
 0x368   :  { %v6620_v44 = vpop.f32.mrb[13].mxu1 }
 0x369   :  { %v6621_v55 = vadd.f32 %v6620_v44, %v6619_v22 }
 0x36b   :  { %v6622_v40 = vpop.f32.mrb[14].mxu1 }
 0x36c   :  { %v6623_v36 = vpop.f32.mrb[15].mxu1 }
 0x36d   :  { %v6624_v41 = vadd.f32 %v6623_v36, %v6622_v40 }
 0x377   :  { %v7446_v24 = vpop.f32.mrb[16].mxu1 }
 0x378   :  { %v1724_v63 = vpop.f32.mrb[17].mxu1 }
 0x3a7   :  { %v6657_v40 = vpop.f32.mrb[74].mxu0 }
 0x3a8   :  { %v6658_v18 = vpop.f32.mrb[75].mxu0 }
 0x3a9   :  { %v6659_v36 = vadd.f32 %v6658_v18, %v6657_v40  ;;  %v11969_v18 = vld [vmem:[#allocation35_spill] sm:$0xff] }
 0x3ab   :  { %v1650_v54 = vadd.f32 %v6659_v36, %v6621_v55  ;;  %v6660_v45 = vpop.f32.mrb[76].mxu0  ;;  %v11968_v55 = vld [vmem:[#allocation34_spill] sm:$0xff]  ;;  %v11970_v36 = vld [vmem:[#allocation36_spill] sm:$0xff] }
 0x3ac   :  { %v6661_v48 = vpop.f32.mrb[77].mxu0 }
 0x3ad   :  { %v6662_v52 = vadd.f32 %v6661_v48, %v6660_v45  ;;  %v1725_v46 = vadd.f32 %v1724_v63, %v1650_v54  ;;  %v11966_v63 = vld [vmem:[#allocation33_spill] sm:$0xff] }
 0x3ae   :  { %v11971_v54 = vld [vmem:[#allocation29_spill] sm:$0xff] }
 0x3af   :  { %v1655_v22 = vadd.f32 %v6662_v52, %v6624_v41  ;;  %v1734_v44 = vsel %vm1733_vm4, %v1725_v46, -inf }
 0x3b0   :  { %1735 = vmax.xlane.f32.xlu0 %v1734_v44 }
 0x3b1   :  { %v1730_v40 = vadd.f32 %v7446_v24, %v1655_v22  ;;  %v11967_v24 = vld [vmem:[#allocation14_spill] sm:$0xff] }
 0x3b3   :  { %v1737_v41 = vsel %vm1733_vm4, %v1730_v40, -inf }
 0x3b4   :  { %1738 = vmax.xlane.f32.xlu0 %v1737_v41 }
 0x3ca   :  { %8693 = vrot.lane.b32.xlu0 %v9835_v5, %s9350_s23 }
 0x3ce   :  { %8713 = vrot.lane.b32.xlu0 %v9845_v13, %s9350_s23 }
 0x3d2   :  { %8723 = vrot.lane.b32.xlu0 %v9851_v17, %s9350_s23 }
 0x3d6   :  { %8733 = vrot.lane.b32.xlu0 %v9853_v21, %s9350_s23 }
 0x3da   :  { %8743 = vrot.lane.b32.xlu0 %v9859_v25, %s9350_s23 }
 0x3de   :  { %8753 = vrot.lane.b32.xlu0 %v9861_v28, %s9350_s23 }
 0x3e2   :  { %8763 = vrot.lane.b32.xlu0 %v9867_v34, %s9350_s23 }
 0x3e6   :  { %8773 = vrot.lane.b32.xlu0 %v9990_v53, %s9350_s23 }
 0x3ea   :  { %8783 = vrot.lane.b32.xlu0 %v10000_v29, %s9350_s23 }
 0x3ee   :  { %8793 = vrot.lane.b32.xlu0 %v10006_v20, %s9350_s23 }
 0x3f2   :  { %8803 = vrot.lane.b32.xlu0 %v9976_v0, %s9350_s23 }
 0x3f6   :  { %8813 = vrot.lane.b32.xlu0 %v9978_v31, %s9350_s23 }
 0x3fa   :  { %8823 = vrot.lane.b32.xlu0 %v9835_v5, %s9351_s24 }
 0x3fe   :  { %8833 = vrot.lane.b32.xlu0 %v9980_v58, %s9350_s23 }
 0x402   :  { %8843 = vrot.lane.b32.xlu0 %v11966_v63, %s9350_s23 }
 0x406   :  { %8853 = vrot.lane.b32.xlu0 %v11967_v24, %s9351_s24 }
 0x40a   :  { %8863 = vrot.lane.b32.xlu0 %v11968_v55, %s9350_s23 }
 0x40e   :  { %8873 = vrot.lane.b32.xlu0 %v11969_v18, %s9350_s23 }
 0x412   :  { %8883 = vrot.lane.b32.xlu0 %v9845_v13, %s9351_s24 }
 0x416   :  { %8893 = vrot.lane.b32.xlu0 %v11970_v36, %s9350_s23 }
 0x41a   :  { %8903 = vrot.lane.b32.xlu0 %v9851_v17, %s9351_s24 }
 0x41e   :  { %8913 = vrot.lane.b32.xlu0 %v11971_v54, %s9351_s24 }
 0x422   :  { %8923 = vrot.lane.b32.xlu0 %v9853_v21, %s9351_s24  ;;  %v11987_v21 = vld [vmem:[#allocation26_spill] sm:$0xff] }
 0x426   :  { %8933 = vrot.lane.b32.xlu0 %v9976_v0, %s9351_s24  ;;  %v11988_v0 = vld [vmem:[#allocation28_spill] sm:$0xff] }
 0x42a   :  { %8943 = vrot.lane.b32.xlu0 %v9859_v25, %s9351_s24 }
 0x42e   :  { %8953 = vrot.lane.b32.xlu0 %v9978_v31, %s9351_s24  ;;  %v11986_v31 = vld [vmem:[#allocation25_spill] sm:$0xff] }
 0x432   :  { %8963 = vrot.lane.b32.xlu0 %v9861_v28, %s9351_s24 }
 0x436   :  { %8973 = vrot.lane.b32.xlu0 %v9980_v58, %s9351_s24 }
 0x43a   :  { %8983 = vrot.lane.b32.xlu0 %v9867_v34, %s9351_s24 }
 0x43d   :  { %v1736_v45 = vpop.xlane.xlu0 %1735 }
 0x43e   :  { %v1740_v48 = vsub.f32 %v1725_v46, %v1736_v45  ;;  %8993 = vrot.lane.b32.xlu0 %v11966_v63, %s9351_s24  ;;  %v11972_v46 = vld [vmem:[#allocation38_spill] sm:$0xff]  ;;  %v11985_v63 = vld [vmem:[#allocation24_spill] sm:$0xff] }
 0x440   :  { %v1742_v52 = vmul.f32 1.442695, %v1740_v48 }
 0x441   :  { %v1739_v22 = vpop.xlane.xlu0 %1738 }
 0x442   :  { %9272 = vpow2.f32 %v1742_v52  ;;  %v1741_v44 = vsub.f32 %v1730_v40, %v1739_v22  ;;  %9003 = vrot.lane.b32.xlu0 %v9990_v53, %s9351_s24  ;;  %v11973_v40 = vld [vmem:[#allocation27_spill] sm:$0xff]  ;;  %v11983_v53 = vld [vmem:[#allocation22_spill] sm:$0xff] }
 0x443   :  { %v11977_v22 = vld [vmem:[#allocation7_spill] sm:$0xff] }
 0x444   :  { %v1744_v41 = vmul.f32 1.442695, %v1741_v44  ;;  %v11978_v44 = vld [vmem:[#allocation8_spill] sm:$0xff] }
 0x445   :  { %v8694_v28 = vpop.permute.xlu0 %8693 }
 0x446   :  { %9274 = vpow2.f32 %v1744_v41  ;;  %v8696_v25 = vunpack.i.h.bf16 %v8694_v28  ;;  %v8695_v58 = vunpack.i.l.bf16 %v8694_v28  ;;  %9008 = vrot.lane.b32.xlu0 %v11968_v55, %s9351_s24  ;;  %v11979_v41 = vld [vmem:[#allocation9_spill] sm:$0xff]  ;;  %v11984_v55 = vld [vmem:[#allocation23_spill] sm:$0xff] }
 0x448   :  { %v8076_v34 = vpack.c.bf16 %v8696_v25, %v8695_v58  ;;  %v11974_v25 = vld [vmem:[#allocation4_spill] sm:$0xff]  ;;  %v11976_v58 = vld [vmem:[#allocation6_spill] sm:$0xff] }
 0x449   :  { %v8714_v17 = vpop.permute.xlu0 %8713 }
 0x44a   :  { %9018 = vrot.lane.b32.xlu0 %v11972_v46, %s9351_s24  ;;  %8077 = vmatprep.subr.bf16.mxu0 %v8076_v34  ;;  %v11975_v34 = vld [vmem:[#allocation5_spill] sm:$0xff] }
 0x44c   :  { %v9273_v45 = vpop.eup %9272 }
 0x44d   :  { %v1746_v48 = vsel %vm1733_vm4, %v9273_v45, 0.0 }
 0x44e   :  { %1747 = vadd.xlane.f32.xlu1 %v1746_v48  ;;  %9028 = vrot.lane.b32.xlu0 %v11973_v40, %s9351_s24  ;;  %v11980_v48 = vld [vmem:[#allocation10_spill] sm:$0xff] }
 0x450   :  { %v10658_v52 = vpop.eup %9274 }
 0x451   :  { %v1749_v28 = vsel %vm1733_vm4, %v10658_v52, 0.0 }
 0x452   :  { %9038 = vrot.lane.b32.xlu0 %v11970_v36, %s9351_s24  ;;  %1750 = vadd.xlane.f32.xlu1 %v1749_v28  ;;  %v11981_v28 = vld [vmem:[#allocation11_spill] sm:$0xff]  ;;  %v11982_v36 = vld [vmem:[#allocation21_spill] sm:$0xff] }
 0x456   :  { %9048 = vrot.lane.b32.xlu0 %v10006_v20, %s9351_s24 }
 0x463   :  { %8698 = vrot.lane.b32.xlu1 %v11974_v25, %s9350_s23 }
 0x467   :  { %8703 = vrot.lane.b32.xlu1 %v11967_v24, %s9350_s23 }
 0x46b   :  { %8708 = vrot.lane.b32.xlu1 %v11975_v34, %s9350_s23 }
 0x46f   :  { %8718 = vrot.lane.b32.xlu1 %v11976_v58, %s9350_s23 }
 0x473   :  { %8728 = vrot.lane.b32.xlu1 %v11977_v22, %s9350_s23 }
 0x477   :  { %8738 = vrot.lane.b32.xlu1 %v11978_v44, %s9350_s23 }
 0x47b   :  { %8748 = vrot.lane.b32.xlu1 %v11979_v41, %s9350_s23 }
 0x47f   :  { %8758 = vrot.lane.b32.xlu1 %v11980_v48, %s9350_s23 }
 0x483   :  { %8768 = vrot.lane.b32.xlu1 %v11981_v28, %s9350_s23 }
 0x487   :  { %8778 = vrot.lane.b32.xlu1 %v11972_v46, %s9350_s23 }
 0x48b   :  { %8788 = vrot.lane.b32.xlu1 %v11971_v54, %s9350_s23  ;;  %v10714_v54 = vpop.permute.xlu0 %8723 }
 0x48f   :  { %8798 = vrot.lane.b32.xlu1 %v11982_v36, %s9350_s23 }
 0x493   :  { %8808 = vrot.lane.b32.xlu1 %v11983_v53, %s9350_s23 }
 0x497   :  { %8818 = vrot.lane.b32.xlu1 %v11984_v55, %s9350_s23 }
 0x49b   :  { %8828 = vrot.lane.b32.xlu1 %v11974_v25, %s9351_s24 }
 0x49f   :  { %8838 = vrot.lane.b32.xlu1 %v11985_v63, %s9350_s23 }
 0x4a3   :  { %8848 = vrot.lane.b32.xlu1 %v11986_v31, %s9350_s23 }
 0x4a7   :  { %8858 = vrot.lane.b32.xlu1 %v11975_v34, %s9351_s24 }
 0x4ab   :  { %8868 = vrot.lane.b32.xlu1 %v11987_v21, %s9350_s23 }
 0x4af   :  { %8878 = vrot.lane.b32.xlu1 %v11973_v40, %s9350_s23  ;;  %v10720_v40 = vpop.permute.xlu0 %8733 }
 0x4b3   :  { %8888 = vrot.lane.b32.xlu1 %v11976_v58, %s9351_s24  ;;  %v10724_v13 = vpop.permute.xlu0 %8743 }
 0x4b7   :  { %8898 = vrot.lane.b32.xlu1 %v11988_v0, %s9350_s23  ;;  %v10730_v5 = vpop.permute.xlu0 %8753 }
 0x4bb   :  { %8908 = vrot.lane.b32.xlu1 %v11977_v22, %s9351_s24  ;;  %v10734_v20 = vpop.permute.xlu0 %8763 }
 0x4bf   :  { %8918 = vrot.lane.b32.xlu1 %v11982_v36, %s9351_s24 }
 0x4c3   :  { %8928 = vrot.lane.b32.xlu1 %v11978_v44, %s9351_s24 }
 0x4c7   :  { %8938 = vrot.lane.b32.xlu1 %v11983_v53, %s9351_s24 }
 0x4cb   :  { %8948 = vrot.lane.b32.xlu1 %v11979_v41, %s9351_s24 }
 0x4cf   :  { %8958 = vrot.lane.b32.xlu1 %v11984_v55, %s9351_s24  ;;  %v10740_v55 = vpop.permute.xlu0 %8773 }
 0x4d3   :  { %8968 = vrot.lane.b32.xlu1 %v11980_v48, %s9351_s24  ;;  %v11989_v48 = vld [vmem:[#allocation42_spill] sm:$0xff]  ;;  %v10744_v36 = vpop.permute.xlu0 %8783 }
 0x4d7   :  { %8978 = vrot.lane.b32.xlu1 %v11985_v63, %s9351_s24 }
 0x4db   :  { %v1748_v46 = vpop.xlane.xlu1 %1747  ;;  %8988 = vrot.lane.b32.xlu1 %v11981_v28, %s9351_s24 }
 0x4dc   :  { %9276 = vrcp.f32 %v1748_v46 }
 0x4df   :  { %8998 = vrot.lane.b32.xlu1 %v11986_v31, %s9351_s24  ;;  %v1751_v41 = vpop.xlane.xlu1 %1750 }
 0x4e0   :  { %9278 = vrcp.f32 %v1751_v41 }
 0x4e3   :  { %2664 = vrot.lane.b32.xlu1 %v11989_v48, %s9351_s24  ;;  %v8699_v44 = vpop.permute.xlu1 %8698 }
 0x4e4   :  { %v8701_v53 = vunpack.i.h.bf16 %v8699_v44  ;;  %v8700_v63 = vunpack.i.l.bf16 %v8699_v44  ;;  %v8715_v44 = vunpack.i.l.bf16 %v8714_v17 }
 0x4e6   :  { %v9277_v22 = vpop.eup %9276  ;;  %v8078_v34 = vpack.c.bf16 %v8701_v53, %v8700_v63  ;;  %v10764_v63 = vpop.permute.xlu0 %8793 }
 0x4e7   :  { %v10746_v58 = vmul.f32 %v9277_v22, %v9273_v45  ;;  %9013 = vrot.lane.b32.xlu1 %v11987_v21, %s9351_s24  ;;  %v8704_v46 = vpop.permute.xlu1 %8703  ;;  %v8716_v22 = vunpack.i.h.bf16 %v8714_v17 }
 0x4e8   :  { %v8706_v28 = vunpack.i.h.bf16 %v8704_v46  ;;  %v8705_v31 = vunpack.i.l.bf16 %v8704_v46 }
 0x4e9   :  { %11990 = vst [vmem:[#allocation42_spill] sm:$0xff] %v10746_v58  ;;  %6705 = vmatprep.mubr.msk.f32.mxu1 %vm1733_vm4, %v10746_v58  ;;  %6741 = vmatprep.mubr.msk.f32.mxu0 %vm1733_vm4, %v10746_v58 }
 0x4ea   :  { %v9279_v41 = vpop.eup %9278  ;;  %6706 = vmatmul.mubr.msk.f32.vlgmr.msra.gmra.mrb[18].mxu1 %vm1733_vm4, %v10746_v58  ;;  %6742 = vmatmul.mubr.msk.f32.vlgmr.msra.gmra.mrb[78].mxu0 %vm1733_vm4, %v10746_v58  ;;  %v8080_v45 = vpack.c.bf16 %v8706_v28, %v8705_v31  ;;  %v8726_v31 = vunpack.i.h.bf16 %v10714_v54  ;;  %v8084_v28 = vpack.c.bf16 %v8716_v22, %v8715_v44 }
 0x4eb   :  { %v10759_v48 = vmul.f32 %v9279_v41, %v10658_v52  ;;  %8057 = vmatpush3.bf16.xpose.msk.msra.mxu1 %vm10484_vm5, %v10241_v49  ;;  %8079 = vmatpush3.bf16.msra.mxu0 %v8078_v34  ;;  %v8709_v53 = vpop.permute.xlu1 %8708  ;;  %v8725_v52 = vunpack.i.l.bf16 %v10714_v54  ;;  %v8736_v54 = vunpack.i.h.bf16 %v10720_v40  ;;  %v8786_v49 = vunpack.i.h.bf16 %v10744_v36 }
 0x4ec   :  { %9023 = vrot.lane.b32.xlu1 %v11969_v18, %s9351_s24  ;;  %v8711_v46 = vunpack.i.h.bf16 %v8709_v53  ;;  %v8710_v21 = vunpack.i.l.bf16 %v8709_v53  ;;  %8081 = vmatprep.subr.bf16.mxu0 %v8080_v45  ;;  %v10785_v45 = vpop.permute.xlu0 %8803 }
 0x4ed   :  { %11991 = vst [vmem:[#allocation76_spill] sm:$0xff] %v10759_v48  ;;  %6707 = vmatprep.mubr.msk.f32.mxu1 %vm1733_vm4, %v10759_v48  ;;  %6743 = vmatprep.mubr.msk.f32.mxu0 %vm1733_vm4, %v10759_v48  ;;  %v8088_v22 = vpack.c.bf16 %v8726_v31, %v8725_v52  ;;  %v11993_v31 = vld [vmem:[#allocation41_spill] sm:$0xff] }
 0x4ee   :  { %v8082_v17 = vpack.c.bf16 %v8711_v46, %v8710_v21  ;;  %6708 = vmatmul.mubr.msk.f32.gmra.mrb[20].mxu1 %vm1733_vm4, %v10759_v48  ;;  %6744 = vmatmul.mubr.msk.f32.gmra.mrb[80].mxu0 %vm1733_vm4, %v10759_v48  ;;  %v8735_v46 = vunpack.i.l.bf16 %v10720_v40  ;;  %v8746_v40 = vunpack.i.h.bf16 %v10724_v13 }
 0x4ef   :  { %7463 = vmatprep.mubr.msk.f32.mxu1 %vm1733_vm4, %v10746_v58  ;;  %v8719_v34 = vpop.permute.xlu1 %8718  ;;  %8060 = vmatprep.subr.msk.bf16.mxu1 %vm10484_vm5, %v10412_v33 }
 0x4f0   :  { %9033 = vrot.lane.b32.xlu1 %v10000_v29, %s9351_s24  ;;  %v8721_v21 = vunpack.i.h.bf16 %v8719_v34  ;;  %v8720_v41 = vunpack.i.l.bf16 %v8719_v34  ;;  %8083 = vmatpush3.bf16.msra.mxu0 %v8082_v17  ;;  %v11992_v17 = vld [vmem:[#allocation70_spill] sm:$0xff]  ;;  %v8092_v29 = vpack.c.bf16 %v8736_v54, %v8735_v46  ;;  %v10799_v18 = vpop.permute.xlu0 %8813 }
 0x4f1   :  { %8085 = vmatprep.subr.bf16.mxu0 %v8084_v28 }
 0x4f2   :  { %v8086_v53 = vpack.c.bf16 %v8721_v21, %v8720_v41  ;;  %v8745_v21 = vunpack.i.l.bf16 %v10724_v13 }
 0x4f3   :  { %8063 = vmatpush3.bf16.xpose.msk.msra.mxu1 %vm10484_vm5, %v10412_v33  ;;  %v8729_v58 = vpop.permute.xlu1 %8728 }
 0x4f4   :  { %9043 = vrot.lane.b32.xlu1 %v11988_v0, %s9351_s24  ;;  %v8731_v44 = vunpack.i.h.bf16 %v8729_v58  ;;  %v8730_v34 = vunpack.i.l.bf16 %v8729_v58  ;;  %8087 = vmatpush3.bf16.msra.mxu0 %v8086_v53  ;;  %v8096_v54 = vpack.c.bf16 %v8746_v40, %v8745_v21  ;;  %v11994_v0 = vld [vmem:[#allocation71_spill] sm:$0xff]  ;;  %v8776_v21 = vunpack.i.h.bf16 %v10740_v55 }
 0x4f5   :  { %8089 = vmatprep.subr.bf16.mxu0 %v8088_v22  ;;  %8066 = vmatprep.subr.msk.bf16.mxu1 %vm10484_vm5, %v11992_v17  ;;  %v8756_v22 = vunpack.i.h.bf16 %v10730_v5 }
 0x4f6   :  { %v8090_v28 = vpack.c.bf16 %v8731_v44, %v8730_v34  ;;  %v8755_v44 = vunpack.i.l.bf16 %v10730_v5  ;;  %v8765_v5 = vunpack.i.l.bf16 %v10734_v20 }
 0x4f7   :  { %v8739_v41 = vpop.permute.xlu1 %8738 }
 0x4f8   :  { %2666 = vrot.lane.b32.xlu1 %v11993_v31, %s9351_s24  ;;  %v8741_v52 = vunpack.i.h.bf16 %v8739_v41  ;;  %v8740_v58 = vunpack.i.l.bf16 %v8739_v41  ;;  %8091 = vmatpush3.bf16.msra.mxu0 %v8090_v28  ;;  %v8766_v41 = vunpack.i.h.bf16 %v10734_v20 }
 0x4f9   :  { %8093 = vmatprep.subr.bf16.mxu0 %v8092_v29  ;;  %v10811_v29 = vpop.permute.xlu0 %8823 }
 0x4fa   :  { %v8094_v53 = vpack.c.bf16 %v8741_v52, %v8740_v58  ;;  %v8100_v52 = vpack.c.bf16 %v8756_v22, %v8755_v44 }
 0x4fb   :  { %8069 = vmatpush3.bf16.xpose.msk.msra.mxu1 %vm10484_vm5, %v11992_v17  ;;  %v8749_v13 = vpop.permute.xlu1 %8748 }
 0x4fc   :  { %v8751_v46 = vunpack.i.h.bf16 %v8749_v13  ;;  %v8750_v34 = vunpack.i.l.bf16 %v8749_v13  ;;  %8095 = vmatpush3.bf16.msra.mxu0 %v8094_v53  ;;  %8072 = vmatprep.subr.msk.bf16.mxu1 %vm10484_vm5, %v11994_v0  ;;  %v8775_v53 = vunpack.i.l.bf16 %v10740_v55 }
 0x4fd   :  { %8097 = vmatprep.subr.bf16.mxu0 %v8096_v54  ;;  %v8104_v54 = vpack.c.bf16 %v8766_v41, %v8765_v5 }
 0x4fe   :  { %v8098_v28 = vpack.c.bf16 %v8751_v46, %v8750_v34  ;;  %v8834_v46 = vpop.permute.xlu0 %8833 }
 0x4ff   :  { %v8759_v31 = vpop.permute.xlu1 %8758 }
 0x500   :  { %v8761_v58 = vunpack.i.h.bf16 %v8759_v31  ;;  %v8760_v24 = vunpack.i.l.bf16 %v8759_v31  ;;  %8099 = vmatpush3.bf16.msra.mxu0 %v8098_v28  ;;  %v10822_v28 = vpack.c.bf16 %v8776_v21, %v8775_v53 }
 0x501   :  { %8101 = vmatprep.subr.bf16.mxu0 %v8100_v52  ;;  %v8806_v52 = vunpack.i.h.bf16 %v10785_v45 }
 0x502   :  { %v8102_v40 = vpack.c.bf16 %v8761_v58, %v8760_v24  ;;  %v8844_v24 = vpop.permute.xlu0 %8843  ;;  %v8805_v58 = vunpack.i.l.bf16 %v10785_v45  ;;  %v8836_v45 = vunpack.i.h.bf16 %v8834_v46 }
 0x503   :  { %8075 = vmatpush3.bf16.xpose.msk.msra.mxu1 %vm10484_vm5, %v11994_v0  ;;  %v8769_v13 = vpop.permute.xlu1 %8768  ;;  %v8835_v0 = vunpack.i.l.bf16 %v8834_v46 }
 0x504   :  { %v8771_v34 = vunpack.i.h.bf16 %v8769_v13  ;;  %v8770_v20 = vunpack.i.l.bf16 %v8769_v13  ;;  %8103 = vmatpush3.bf16.msra.mxu0 %v8102_v40 }
 0x505   :  { %8105 = vmatprep.subr.bf16.mxu0 %v8104_v54 }
 0x506   :  { %v8106_v22 = vpack.c.bf16 %v8771_v34, %v8770_v20  ;;  %v10829_v13 = vpop.permute.xlu0 %8853  ;;  %v8816_v34 = vunpack.i.h.bf16 %v10799_v18  ;;  %v8815_v20 = vunpack.i.l.bf16 %v10799_v18  ;;  %v8120_v18 = vpack.c.bf16 %v8836_v45, %v8835_v0 }
 0x507   :  { %v10820_v44 = vpop.permute.xlu1 %8778 }
 0x508   :  { %8107 = vmatpush3.bf16.msra.mxu0 %v8106_v22  ;;  %v8116_v33 = vpack.c.bf16 %v8816_v34, %v8815_v20  ;;  %v8781_v27 = vunpack.i.h.bf16 %v10820_v44  ;;  %v8780_v51 = vunpack.i.l.bf16 %v10820_v44 }
 0x509   :  { %8141 = vmatprep.subr.bf16.mxu0 %v10822_v28 }
 0x50a   :  { %7464 = vmatmul.mubr.msk.f32.vlgmr.msra.gmra.mrb[22].mxu1 %vm1733_vm4, %v10759_v48  ;;  %v8112_v48 = vpack.c.bf16 %v8806_v52, %v8805_v58  ;;  %v8846_v52 = vunpack.i.h.bf16 %v8844_v24  ;;  %v8845_v58 = vunpack.i.l.bf16 %v8844_v24 }
 0x50b   :  { %v8789_v55 = vpop.permute.xlu1 %8788 }
 0x50c   :  { %v8791_v31 = vunpack.i.h.bf16 %v8789_v55  ;;  %v8790_v41 = vunpack.i.l.bf16 %v8789_v55 }
 0x50e   :  { %v8108_v5 = vpack.c.bf16 %v8791_v31, %v8790_v41  ;;  %v8864_v31 = vpop.permute.xlu0 %8863 }
 0x50f   :  { %v8799_v40 = vpop.permute.xlu1 %8798  ;;  %v8866_v34 = vunpack.i.h.bf16 %v8864_v31  ;;  %v8865_v20 = vunpack.i.l.bf16 %v8864_v31 }
 0x510   :  { %v8801_v21 = vunpack.i.h.bf16 %v8799_v40  ;;  %v8800_v53 = vunpack.i.l.bf16 %v8799_v40  ;;  %8109 = vmatprep.subr.bf16.mxu1 %v8108_v5 }
 0x511   :  { %v8128_v45 = vpack.c.bf16 %v8866_v34, %v8865_v20 }
 0x512   :  { %v8110_v54 = vpack.c.bf16 %v8801_v21, %v8800_v53  ;;  %v8874_v53 = vpop.permute.xlu0 %8873 }
 0x513   :  { %v8809_v22 = vpop.permute.xlu1 %8808  ;;  %v8876_v24 = vunpack.i.h.bf16 %v8874_v53 }
 0x514   :  { %v8811_v25 = vunpack.i.h.bf16 %v8809_v22  ;;  %v8810_v55 = vunpack.i.l.bf16 %v8809_v22  ;;  %8111 = vmatpush3.bf16.msra.mxu1 %v8110_v54 }
 0x515   :  { %8113 = vmatprep.subr.bf16.mxu1 %v8112_v48 }
 0x516   :  { %v8114_v41 = vpack.c.bf16 %v8811_v25, %v8810_v55  ;;  %v10835_v22 = vpop.permute.xlu0 %8883  ;;  %v8124_v55 = vpack.c.bf16 %v8846_v52, %v8845_v58 }
 0x517   :  { %v8819_v17 = vpop.permute.xlu1 %8818 }
 0x518   :  { %v8821_v23 = vunpack.i.h.bf16 %v8819_v17  ;;  %v8820_v40 = vunpack.i.l.bf16 %v8819_v17  ;;  %8115 = vmatpush3.bf16.msra.mxu1 %v8114_v41 }
 0x519   :  { %8117 = vmatprep.subr.bf16.mxu1 %v8116_v33 }
 0x51a   :  { %v8118_v5 = vpack.c.bf16 %v8821_v23, %v8820_v40  ;;  %v8894_v40 = vpop.permute.xlu0 %8893 }
 0x51b   :  { %v10833_v21 = vpop.permute.xlu1 %8828  ;;  %v8896_v52 = vunpack.i.h.bf16 %v8894_v40  ;;  %v8895_v58 = vunpack.i.l.bf16 %v8894_v40 }
 0x51c   :  { %8119 = vmatpush3.bf16.msra.mxu1 %v8118_v5  ;;  %v8875_v5 = vunpack.i.l.bf16 %v8874_v53 }
 0x51d   :  { %8121 = vmatprep.subr.bf16.mxu1 %v8120_v18 }
 0x51f   :  { %v8839_v48 = vpop.permute.xlu1 %8838 }
 0x520   :  { %v8841_v54 = vunpack.i.h.bf16 %v8839_v48  ;;  %v8840_v25 = vunpack.i.l.bf16 %v8839_v48 }
 0x522   :  { %v8122_v46 = vpack.c.bf16 %v8841_v54, %v8840_v25  ;;  %v10839_v25 = vpop.permute.xlu0 %8903 }
 0x523   :  { %v8849_v17 = vpop.permute.xlu1 %8848 }
 0x524   :  { %v8851_v33 = vunpack.i.h.bf16 %v8849_v17  ;;  %v8850_v23 = vunpack.i.l.bf16 %v8849_v17  ;;  %8123 = vmatpush3.bf16.msra.mxu1 %v8122_v46  ;;  %v8132_v46 = vpack.c.bf16 %v8876_v24, %v8875_v5 }
 0x525   :  { %8125 = vmatprep.subr.bf16.mxu1 %v8124_v55 }
 0x526   :  { %v8126_v0 = vpack.c.bf16 %v8851_v33, %v8850_v23  ;;  %v8136_v23 = vpack.c.bf16 %v8896_v52, %v8895_v58 }
 0x527   :  { %v10837_v41 = vpop.permute.xlu1 %8858 }
 0x528   :  { %8127 = vmatpush3.bf16.msra.mxu1 %v8126_v0  ;;  %v8914_v0 = vpop.permute.xlu0 %8913 }
 0x529   :  { %8129 = vmatprep.subr.bf16.mxu1 %v8128_v45  ;;  %v8916_v53 = vunpack.i.h.bf16 %v8914_v0  ;;  %v8915_v45 = vunpack.i.l.bf16 %v8914_v0 }
 0x52b   :  { %v8869_v18 = vpop.permute.xlu1 %8868  ;;  %v8204_v40 = vpack.c.bf16 %v8916_v53, %v8915_v45 }
 0x52c   :  { %v8871_v48 = vunpack.i.h.bf16 %v8869_v18  ;;  %v8870_v54 = vunpack.i.l.bf16 %v8869_v18  ;;  %v10851_v58 = vpop.permute.xlu0 %8923 }
 0x52e   :  { %v8130_v31 = vpack.c.bf16 %v8871_v48, %v8870_v54 }
 0x52f   :  { %v8879_v17 = vpop.permute.xlu1 %8878 }
 0x530   :  { %v8881_v55 = vunpack.i.h.bf16 %v8879_v17  ;;  %v8880_v33 = vunpack.i.l.bf16 %v8879_v17  ;;  %8131 = vmatpush3.bf16.msra.mxu1 %v8130_v31 }
 0x531   :  { %8133 = vmatprep.subr.bf16.mxu1 %v8132_v46 }
 0x532   :  { %v8134_v34 = vpack.c.bf16 %v8881_v55, %v8880_v33  ;;  %v8934_v55 = vpop.permute.xlu0 %8933 }
 0x533   :  { %v10841_v20 = vpop.permute.xlu1 %8888  ;;  %v8936_v56 = vunpack.i.h.bf16 %v8934_v55  ;;  %v8935_v59 = vunpack.i.l.bf16 %v8934_v55  ;;  %v8785_v55 = vunpack.i.l.bf16 %v10744_v36  ;;  %v12001_v36 = vld [vmem:[#allocation68_spill] sm:$0xff] }
 0x534   :  { %8135 = vmatpush3.bf16.msra.mxu1 %v8134_v34 }
 0x535   :  { %8137 = vmatprep.subr.bf16.mxu1 %v8136_v23  ;;  %v8210_v32 = vpack.c.bf16 %v8936_v56, %v8935_v59 }
 0x537   :  { %v8899_v18 = vpop.permute.xlu1 %8898 }
 0x538   :  { %v8901_v37 = vunpack.i.h.bf16 %v8899_v18  ;;  %v8900_v48 = vunpack.i.l.bf16 %v8899_v18 }
 0x53a   :  { %v8138_v54 = vpack.c.bf16 %v8901_v37, %v8900_v48  ;;  %v10857_v37 = vpop.permute.xlu0 %8943 }
 0x53b   :  { %v10845_v5 = vpop.permute.xlu1 %8908 }
 0x53c   :  { %8139 = vmatpush3.bf16.msra.mxu1 %v8138_v54 }
 0x53d   :  { %8206 = vmatprep.subr.msk.bf16.mxu1 %vm9831_vm2, %v8204_v40 }
 0x53e   :  { %v8954_v23 = vpop.permute.xlu0 %8953 }
 0x53f   :  { %v8919_v31 = vpop.permute.xlu1 %8918 }
 0x540   :  { %v8921_v18 = vunpack.i.h.bf16 %v8919_v31  ;;  %v8920_v48 = vunpack.i.l.bf16 %v8919_v31  ;;  %v11999_v31 = vld [vmem:[#allocation74_spill] sm:$0xff] }
 0x542   :  { %v10863_v53 = vpop.permute.xlu0 %8963  ;;  %v8207_v47 = vpack.c.bf16 %v8921_v18, %v8920_v48 }
 0x543   :  { %v10847_v17 = vpop.permute.xlu1 %8928 }
 0x546   :  { %v8974_v8 = vpop.permute.xlu0 %8973 }
 0x547   :  { %v10849_v52 = vpop.permute.xlu1 %8938  ;;  %v8975_v48 = vunpack.i.l.bf16 %v8974_v8 }
 0x548   :  { %v8941_v59 = vunpack.i.h.bf16 %v10849_v52 }
 0x54b   :  { %v10853_v46 = vpop.permute.xlu1 %8948 }
 0x54f   :  { %v10855_v33 = vpop.permute.xlu1 %8958 }
 0x553   :  { %v10859_v34 = vpop.permute.xlu1 %8968 }
 0x557   :  { %v10861_v0 = vpop.permute.xlu1 %8978 }
 0x55b   :  { %v10865_v45 = vpop.permute.xlu1 %8988 }
 0x55f   :  { %v10871_v1 = vpop.permute.xlu1 %8998 }
 0x5bd   :  { %v2044_v54 = vpop.f32.mrb[18].mxu1  ;;  %v2121_v40 = vpop.f32.mrb[78].mxu0 }
 0x5be   :  { %v2046_v43 = vpop.f32.mrb[19].mxu1  ;;  %v2123_v3 = vpop.f32.mrb[79].mxu0  ;;  %v2207_v19 = vmul.f32 %v2044_v54, %v11998_v39  ;;  %v2209_v10 = vmul.f32 %v2121_v40, %v11999_v31 }
 0x5bf   :  { %v2208_v15 = vmul.f32 %v2046_v43, %v11996_v62  ;;  %v2210_v4 = vmul.f32 %v2123_v3, %v11997_v50  ;;  %v8144_v50 = vpack.c.bf16 %v8781_v27, %v8780_v51  ;;  %v12000_v3 = vld [vmem:[#allocation66_spill] sm:$0xff]  ;;  %v8795_v51 = vunpack.i.l.bf16 %v10764_v63 }
 0x5c0   :  { %v8955_v27 = vunpack.i.l.bf16 %v8954_v23 }
 0x5c1   :  { %v2050_v35 = vpop.f32.mrb[20].mxu1  ;;  %v2127_v44 = vpop.f32.mrb[80].mxu0  ;;  %2503 = vmatprep.mubr.f32.mxu0 %v2208_v15  ;;  %2578 = vmatprep.mubr.f32.mxu1 %v2210_v4  ;;  %v8796_v4 = vunpack.i.h.bf16 %v10764_v63  ;;  %v8961_v63 = vunpack.i.h.bf16 %v10855_v33 }
 0x5c2   :  { %v2052_v62 = vpop.f32.mrb[21].mxu1  ;;  %v2129_v43 = vpop.f32.mrb[81].mxu0  ;;  %2504 = vmatmul.mubr.f32.vlgmr.msra.gmra.mrb[82].mxu0 %v2207_v19  ;;  %2579 = vmatmul.mubr.f32.vlgmr.msra.gmra.mrb[24].mxu1 %v2209_v10  ;;  %v2212_v18 = vmul.f32 %v2050_v35, %v12001_v36  ;;  %v2214_v15 = vmul.f32 %v2127_v44, %v10478_v9  ;;  %v8940_v10 = vunpack.i.l.bf16 %v10849_v52  ;;  %v8148_v19 = vpack.c.bf16 %v8786_v49, %v8785_v55 }
 0x5c3   :  { %v2213_v16 = vmul.f32 %v2052_v62, %v12000_v3  ;;  %v2215_v39 = vmul.f32 %v2129_v43, %v10473_v57  ;;  %8143 = vmatpush3.bf16.msra.mxu0 %v10822_v28  ;;  %8209 = vmatpush3.bf16.xpose.msk.msra.mxu1 %vm9831_vm2, %v8207_v47  ;;  %v8956_v47 = vunpack.i.h.bf16 %v8954_v23  ;;  %v10890_v35 = vpop.permute.xlu1 %2664  ;;  %v10894_v9 = vpop.permute.xlu0 %8983  ;;  %v8825_v49 = vunpack.i.l.bf16 %v10811_v29 }
 0x5c4   :  { %8145 = vmatprep.subr.bf16.mxu0 %v8144_v50  ;;  %8212 = vmatprep.subr.msk.bf16.mxu1 %vm9831_vm2, %v8210_v32  ;;  %v8826_v32 = vunpack.i.h.bf16 %v10811_v29  ;;  %v8152_v57 = vpack.c.bf16 %v8796_v4, %v8795_v51  ;;  %v8960_v28 = vunpack.i.l.bf16 %v10855_v33  ;;  %v8976_v23 = vunpack.i.h.bf16 %v8974_v8 }
 0x5c5   :  { %2508 = vmatprep.mubr.f32.mxu0 %v2213_v16  ;;  %2583 = vmatprep.mubr.f32.mxu1 %v2215_v39  ;;  %v8213_v16 = vpack.c.bf16 %v8941_v59, %v8940_v10  ;;  %v8216_v56 = vpack.c.bf16 %v8956_v47, %v8955_v27  ;;  %v8981_v33 = vunpack.i.h.bf16 %v10861_v0  ;;  %v8980_v55 = vunpack.i.l.bf16 %v10861_v0  ;;  %v12002_v47 = vld [vmem:[#allocation69_spill] sm:$0xff] }
 0x5c6   :  { %2509 = vmatmul.mubr.f32.gmra.mrb[84].mxu0 %v2212_v18  ;;  %2584 = vmatmul.mubr.f32.gmra.mrb[26].mxu1 %v2214_v15  ;;  %v8156_v52 = vpack.c.bf16 %v8826_v32, %v8825_v49  ;;  %v8219_v29 = vpack.c.bf16 %v8961_v63, %v8960_v28  ;;  %v8222_v40 = vpack.c.bf16 %v8976_v23, %v8975_v48  ;;  %v8831_v3 = vunpack.i.h.bf16 %v10833_v21  ;;  %v12003_v32 = vld [vmem:[#allocation72_spill] sm:$0xff] }
 0x5c7   :  { %8147 = vmatpush3.bf16.msra.mxu0 %v8144_v50  ;;  %6909 = vmatprep.mubr.msk.f32.mxu1 %vm1029_vm1, %v10890_v35  ;;  %v8994_v54 = vpop.permute.xlu0 %8993  ;;  %v8225_v62 = vpack.c.bf16 %v8981_v33, %v8980_v55  ;;  %v8830_v39 = vunpack.i.l.bf16 %v10833_v21  ;;  %v8856_v18 = vunpack.i.h.bf16 %v10829_v13  ;;  %v8855_v0 = vunpack.i.l.bf16 %v10829_v13  ;;  %v9014_v10 = vpop.permute.xlu1 %9013 }
 0x5c8   :  { %8149 = vmatprep.subr.bf16.mxu0 %v8148_v19  ;;  %v8996_v8 = vunpack.i.h.bf16 %v8994_v54  ;;  %v8995_v44 = vunpack.i.l.bf16 %v8994_v54  ;;  %v9001_v15 = vunpack.i.h.bf16 %v10871_v1  ;;  %v9000_v59 = vunpack.i.l.bf16 %v10871_v1 }
 0x5c9   :  { %v8159_v21 = vpack.c.bf16 %v8831_v3, %v8830_v39  ;;  %v8861_v63 = vunpack.i.h.bf16 %v10837_v41  ;;  %v8860_v28 = vunpack.i.l.bf16 %v10837_v41  ;;  %v8885_v23 = vunpack.i.l.bf16 %v10835_v22 }
 0x5ca   :  { %v8228_v43 = vpack.c.bf16 %v8996_v8, %v8995_v44  ;;  %v9016_v54 = vunpack.i.h.bf16 %v9014_v10  ;;  %v8906_v3 = vunpack.i.h.bf16 %v10839_v25  ;;  %v8905_v39 = vunpack.i.l.bf16 %v10839_v25 }
 0x5cb   :  { %8151 = vmatpush3.bf16.msra.mxu0 %v8148_v19  ;;  %8215 = vmatpush3.bf16.xpose.msk.msra.mxu1 %vm9831_vm2, %v8213_v16  ;;  %v10908_v31 = vpop.permute.xlu0 %9003  ;;  %v9024_v1 = vpop.permute.xlu1 %9023  ;;  %v8165_v55 = vpack.c.bf16 %v8861_v63, %v8860_v28  ;;  %v8911_v25 = vunpack.i.h.bf16 %v10845_v5 }
 0x5cc   :  { %8153 = vmatprep.subr.bf16.mxu0 %v8152_v57  ;;  %8218 = vmatprep.subr.msk.bf16.mxu1 %vm9831_vm2, %v8216_v56  ;;  %v8162_v56 = vpack.c.bf16 %v8856_v18, %v8855_v0  ;;  %v9025_v33 = vunpack.i.l.bf16 %v9024_v1 }
 0x5cf   :  { %8155 = vmatpush3.bf16.msra.mxu0 %v8152_v57  ;;  %v9009_v50 = vpop.permute.xlu0 %9008  ;;  %v8231_v57 = vpack.c.bf16 %v9001_v15, %v9000_v59 }
 0x5d0   :  { %8158 = vmatprep.subr.msk.bf16.mxu0 %vm9831_vm2, %v8156_v52  ;;  %v9011_v4 = vunpack.i.h.bf16 %v9009_v50  ;;  %v9010_v51 = vunpack.i.l.bf16 %v9009_v50  ;;  %v8886_v52 = vunpack.i.h.bf16 %v10835_v22  ;;  %v8891_v22 = vunpack.i.h.bf16 %v10841_v20  ;;  %v10952_v50 = vpop.permute.xlu1 %9033 }
 0x5d2   :  { %v8234_v13 = vpack.c.bf16 %v9011_v4, %v9010_v51  ;;  %v8168_v8 = vpack.c.bf16 %v8886_v52, %v8885_v23  ;;  %v8966_v23 = vunpack.i.h.bf16 %v10863_v53 }
 0x5d3   :  { %8221 = vmatpush3.bf16.xpose.msk.msra.mxu1 %vm9831_vm2, %v8219_v29  ;;  %v10925_v16 = vpop.permute.xlu0 %9018  ;;  %v9015_v29 = vunpack.i.l.bf16 %v9014_v10  ;;  %v8174_v10 = vpack.c.bf16 %v8906_v3, %v8905_v39  ;;  %v12006_v39 = vld [vmem:[#allocation45_spill] sm:$0xff] }
 0x5d4   :  { %8224 = vmatprep.subr.msk.bf16.mxu1 %vm9831_vm2, %v8222_v40  ;;  %v9026_v40 = vunpack.i.h.bf16 %v9024_v1  ;;  %v9044_v51 = vpop.permute.xlu1 %9043  ;;  %v8945_v1 = vunpack.i.l.bf16 %v10857_v37  ;;  %v9021_v3 = vunpack.i.h.bf16 %v10925_v16 }
 0x5d5   :  { %v8237_v44 = vpack.c.bf16 %v9016_v54, %v9015_v29 }
 0x5d7   :  { %v9029_v48 = vpop.permute.xlu0 %9028 }
 0x5d8   :  { %v9030_v18 = vunpack.i.l.bf16 %v9029_v48  ;;  %v10981_v52 = vpop.permute.xlu1 %2666 }
 0x5db   :  { %8227 = vmatpush3.bf16.xpose.msk.msra.mxu1 %vm9831_vm2, %v8225_v62  ;;  %v8240_v62 = vpack.c.bf16 %v9026_v40, %v9025_v33  ;;  %v9039_v41 = vpop.permute.xlu0 %9038  ;;  %v8986_v40 = vunpack.i.h.bf16 %v10894_v9  ;;  %v8985_v33 = vunpack.i.l.bf16 %v10894_v9  ;;  %v9006_v9 = vunpack.i.h.bf16 %v10908_v31 }
 0x5dc   :  { %8230 = vmatprep.subr.msk.bf16.mxu1 %vm9831_vm2, %v8228_v43  ;;  %v8890_v43 = vunpack.i.l.bf16 %v10841_v20  ;;  %v9041_v0 = vunpack.i.h.bf16 %v9039_v41  ;;  %v9040_v15 = vunpack.i.l.bf16 %v9039_v41  ;;  %v8910_v20 = vunpack.i.l.bf16 %v10845_v5 }
 0x5dd   :  { %v7465_v36 = vpop.f32.mrb[22].mxu1  ;;  %v8931_v5 = vunpack.i.h.bf16 %v10847_v17 }
 0x5de   :  { %v2198_v19 = vpop.f32.mrb[23].mxu1  ;;  %v2216_v49 = vmul.f32 %v7465_v36, %v12003_v32  ;;  %v9031_v36 = vunpack.i.h.bf16 %v9029_v48  ;;  %v8171_v59 = vpack.c.bf16 %v8891_v22, %v8890_v43  ;;  %v8246_v4 = vpack.c.bf16 %v9041_v0, %v9040_v15  ;;  %v12004_v43 = vld [vmem:[#allocation43_spill] sm:$0xff] }
 0x5df   :  { %v2211_v27 = vmul.f32 %v2198_v19, %v12002_v47  ;;  %v8926_v47 = vunpack.i.h.bf16 %v10851_v58  ;;  %v9046_v32 = vunpack.i.h.bf16 %v9044_v51  ;;  %v8965_v48 = vunpack.i.l.bf16 %v10863_v53  ;;  %v12008_v0 = vld [vmem:[#allocation47_spill] sm:$0xff] }
 0x5e0   :  { %v8243_v19 = vpack.c.bf16 %v9031_v36, %v9030_v18  ;;  %v8970_v53 = vunpack.i.l.bf16 %v10859_v34  ;;  %v12007_v36 = vld [vmem:[#allocation46_spill] sm:$0xff]  ;;  %v9035_v15 = vunpack.i.l.bf16 %v10952_v50 }
 0x5e1   :  { %7482 = vmatprep.mubr.msk.f32.mxu0 %vm1501_vm3, %v2211_v27  ;;  %v8925_v27 = vunpack.i.l.bf16 %v10851_v58  ;;  %v8946_v58 = vunpack.i.h.bf16 %v10857_v37  ;;  %v8950_v37 = vunpack.i.l.bf16 %v10853_v46  ;;  %v8192_v29 = vpack.c.bf16 %v8966_v23, %v8965_v48 }
 0x5e2   :  { %7483 = vmatmul.mubr.msk.f32.vlgmr.msra.gmra.mrb[86].mxu0 %vm1501_vm3, %v2216_v49  ;;  %v9045_v49 = vunpack.i.l.bf16 %v9044_v51 }
 0x5e3   :  { %8161 = vmatpush3.bf16.xpose.msk.msra.mxu0 %vm9831_vm2, %v8159_v21  ;;  %6873 = vmatprep.mubr.msk.f32.mxu0 %vm1029_vm1, %v10890_v35  ;;  %v8177_v21 = vpack.c.bf16 %v8911_v25, %v8910_v20  ;;  %v8186_v28 = vpack.c.bf16 %v8946_v58, %v8945_v1  ;;  %v12011_v25 = vld [vmem:[#allocation50_spill] sm:$0xff]  ;;  %v12012_v20 = vld [vmem:[#allocation51_spill] sm:$0xff]  ;;  %v12022_v58 = vld [vmem:[#allocation61_spill] sm:$0xff] }
 0x5e4   :  { %8164 = vmatprep.subr.msk.bf16.mxu0 %vm9831_vm2, %v8162_v56  ;;  %8233 = vmatpush3.bf16.xpose.msk.msra.mxu1 %vm9831_vm2, %v8231_v57  ;;  %v8180_v56 = vpack.c.bf16 %v8926_v47, %v8925_v27  ;;  %v8249_v57 = vpack.c.bf16 %v9046_v32, %v9045_v49  ;;  %v12013_v47 = vld [vmem:[#allocation52_spill] sm:$0xff]  ;;  %v12014_v27 = vld [vmem:[#allocation53_spill] sm:$0xff]  ;;  %v12015_v32 = vld [vmem:[#allocation54_spill] sm:$0xff] }
 0x5e5   :  { %8236 = vmatprep.subr.msk.bf16.mxu1 %vm9831_vm2, %v8234_v13  ;;  %v8930_v13 = vunpack.i.l.bf16 %v10847_v17  ;;  %v8951_v17 = vunpack.i.h.bf16 %v10853_v46  ;;  %v8971_v46 = vunpack.i.h.bf16 %v10859_v34  ;;  %v8991_v34 = vunpack.i.h.bf16 %v10865_v45  ;;  %v12016_v49 = vld [vmem:[#allocation55_spill] sm:$0xff]  ;;  %v12023_v1 = vld [vmem:[#allocation62_spill] sm:$0xff] }
 0x5e7   :  { %v8183_v63 = vpack.c.bf16 %v8931_v5, %v8930_v13  ;;  %v8189_v54 = vpack.c.bf16 %v8951_v17, %v8950_v37  ;;  %v12020_v5 = vld [vmem:[#allocation59_spill] sm:$0xff]  ;;  %v12021_v13 = vld [vmem:[#allocation60_spill] sm:$0xff] }
 0x5eb   :  { %8167 = vmatpush3.bf16.xpose.msk.msra.mxu0 %vm9831_vm2, %v8165_v55  ;;  %v8195_v55 = vpack.c.bf16 %v8971_v46, %v8970_v53 }
 0x5ec   :  { %8170 = vmatprep.subr.msk.bf16.mxu0 %vm9831_vm2, %v8168_v8  ;;  %8239 = vmatpush3.bf16.xpose.msk.msra.mxu1 %vm9831_vm2, %v8237_v44  ;;  %v8198_v8 = vpack.c.bf16 %v8986_v40, %v8985_v33  ;;  %v8990_v44 = vunpack.i.l.bf16 %v10865_v45  ;;  %v12005_v45 = vld [vmem:[#allocation44_spill] sm:$0xff] }
 0x5ed   :  { %8242 = vmatprep.subr.msk.bf16.mxu1 %vm9831_vm2, %v8240_v62  ;;  %v9005_v62 = vunpack.i.l.bf16 %v10908_v31  ;;  %v9020_v31 = vunpack.i.l.bf16 %v10925_v16  ;;  %v9036_v16 = vunpack.i.h.bf16 %v10952_v50  ;;  %v12010_v50 = vld [vmem:[#allocation49_spill] sm:$0xff] }
 0x5ee   :  { %v8201_v41 = vpack.c.bf16 %v8991_v34, %v8990_v44 }
 0x5ef   :  { %v8252_v22 = vpack.c.bf16 %v9006_v9, %v9005_v62  ;;  %v8258_v18 = vpack.c.bf16 %v9021_v3, %v9020_v31 }
 0x5f3   :  { %8173 = vmatpush3.bf16.xpose.msk.msra.mxu0 %vm9831_vm2, %v8171_v59  ;;  %v8264_v59 = vpack.c.bf16 %v9036_v16, %v9035_v15  ;;  %v11087_v16 = vld [vmem:[%s11744_s3 + $0x18] sm:$0xff] }
 0x5f4   :  { %8176 = vmatprep.subr.msk.bf16.mxu0 %vm9831_vm2, %v8174_v10  ;;  %8245 = vmatpush3.bf16.xpose.msk.msra.mxu1 %vm9831_vm2, %v8243_v19  ;;  %v9049_v10 = vpop.permute.xlu0 %9048 }
 0x5f5   :  { %8248 = vmatprep.subr.msk.bf16.mxu1 %vm9831_vm2, %v8246_v4  ;;  %v9051_v19 = vunpack.i.h.bf16 %v9049_v10  ;;  %v9050_v4 = vunpack.i.l.bf16 %v9049_v10  ;;  %v11093_v10 = vld [vmem:[%s11744_s3 + $0x10] sm:$0xff] }
 0x5f7   :  { %v8270_v51 = vpack.c.bf16 %v9051_v19, %v9050_v4 }
 0x5fb   :  { %8179 = vmatpush3.bf16.xpose.msk.msra.mxu0 %vm9831_vm2, %v8177_v21  ;;  %v12017_v21 = vld [vmem:[#allocation56_spill] sm:$0xff] }
 0x5fc   :  { %8182 = vmatprep.subr.msk.bf16.mxu0 %vm9831_vm2, %v8180_v56  ;;  %8251 = vmatpush3.bf16.xpose.msk.msra.mxu1 %vm9831_vm2, %v8249_v57  ;;  %v12018_v56 = vld [vmem:[#allocation57_spill] sm:$0xff]  ;;  %v12019_v57 = vld [vmem:[#allocation58_spill] sm:$0xff] }
 0x5fd   :  { %8277 = vmatprep.subr.bf16.mxu1 %v10087_v2 }
 0x603   :  { %8185 = vmatpush3.bf16.xpose.msk.msra.mxu0 %vm9831_vm2, %v8183_v63  ;;  %6910 = vmatmul.mubr.msk.f32.vlgmr.msra.gmra.mrb[28].mxu1 %vm1029_vm1, %v10890_v35  ;;  %v12024_v63 = vld [vmem:[#allocation63_spill] sm:$0xff] }
 0x604   :  { %8188 = vmatprep.subr.msk.bf16.mxu0 %vm9831_vm2, %v8186_v28  ;;  %6911 = vmatprep.mubr.msk.f32.mxu1 %vm1029_vm1, %v10981_v52 }
 0x605   :  { %8279 = vmatpush3.bf16.msra.mxu1 %v10107_v12 }
 0x606   :  { %8281 = vmatprep.subr.bf16.mxu1 %v10109_v14 }
 0x607   :  { %6912 = vmatmul.mubr.msk.f32.gmra.mrb[30].mxu1 %vm1029_vm1, %v10981_v52 }
 0x609   :  { %8283 = vmatpush3.bf16.msra.mxu1 %v10128_v30 }
 0x60a   :  { %8285 = vmatprep.subr.bf16.mxu1 %v10131_v26 }
 0x60b   :  { %8191 = vmatpush3.bf16.xpose.msk.msra.mxu0 %vm9831_vm2, %v8189_v54 }
 0x60c   :  { %8194 = vmatprep.subr.msk.bf16.mxu0 %vm9831_vm2, %v8192_v29 }
 0x60d   :  { %8287 = vmatpush3.bf16.msra.mxu1 %v10148_v61 }
 0x60e   :  { %8289 = vmatprep.subr.bf16.mxu1 %v10151_v11 }
 0x611   :  { %8291 = vmatpush3.bf16.msra.mxu1 %v10166_v38 }
 0x612   :  { %8293 = vmatprep.subr.bf16.mxu1 %v10169_v42 }
 0x613   :  { %8197 = vmatpush3.bf16.xpose.msk.msra.mxu0 %vm9831_vm2, %v8195_v55 }
 0x614   :  { %8200 = vmatprep.subr.msk.bf16.mxu0 %vm9831_vm2, %v8198_v8 }
 0x615   :  { %8295 = vmatpush3.bf16.msra.mxu1 %v10184_v6 }
 0x616   :  { %8297 = vmatprep.subr.bf16.mxu1 %v10187_v7 }
 0x619   :  { %8299 = vmatpush3.bf16.msra.mxu1 %v10202_v60 }
 0x61a   :  { %8301 = vmatprep.subr.bf16.mxu1 %v12004_v43 }
 0x61b   :  { %8203 = vmatpush3.bf16.xpose.msk.msra.mxu0 %vm9831_vm2, %v8201_v41 }
 0x61c   :  { %8254 = vmatprep.subr.msk.bf16.mxu0 %vm9831_vm2, %v8252_v22 }
 0x61d   :  { %8303 = vmatpush3.bf16.msra.mxu1 %v12005_v45 }
 0x61e   :  { %8305 = vmatprep.subr.bf16.mxu1 %v12006_v39 }
 0x621   :  { %8307 = vmatpush3.bf16.msra.mxu1 %v12007_v36 }
 0x622   :  { %6874 = vmatmul.mubr.msk.f32.vlgmr.msra.gmra.mrb[88].mxu0 %vm1029_vm1, %v10890_v35  ;;  %8341 = vmatprep.subr.bf16.mxu1 %v12008_v0 }
 0x623   :  { %6875 = vmatprep.mubr.msk.f32.mxu0 %vm1029_vm1, %v10981_v52  ;;  %8257 = vmatpush3.bf16.xpose.msk.msra.mxu0 %vm9831_vm2, %v8252_v22 }
 0x624   :  { %8260 = vmatprep.subr.msk.bf16.mxu0 %vm9831_vm2, %v8258_v18 }
 0x626   :  { %6876 = vmatmul.mubr.msk.f32.gmra.mrb[90].mxu0 %vm1029_vm1, %v10981_v52 }
 0x627   :  { %7501 = vmatprep.mubr.msk.f32.mxu0 %vm1029_vm1, %v10890_v35  ;;  %v12009_v35 = vld [vmem:[#allocation48_spill] sm:$0xff] }
 0x62b   :  { %8263 = vmatpush3.bf16.xpose.msk.msra.mxu0 %vm9831_vm2, %v8258_v18 }
 0x62c   :  { %8266 = vmatprep.subr.msk.bf16.mxu0 %vm9831_vm2, %v8264_v59 }
 0x633   :  { %8269 = vmatpush3.bf16.xpose.msk.msra.mxu0 %vm9831_vm2, %v8264_v59 }
 0x634   :  { %8272 = vmatprep.subr.msk.bf16.mxu0 %vm9831_vm2, %v8270_v51 }
 0x63b   :  { %8275 = vmatpush3.bf16.xpose.msk.msra.mxu0 %vm9831_vm2, %v8270_v51 }
 0x63c   :  { %8309 = vmatprep.subr.bf16.mxu0 %v12009_v35 }
 0x642   :  { %7502 = vmatmul.mubr.msk.f32.vlgmr.msra.gmra.mrb[92].mxu0 %vm1029_vm1, %v10981_v52 }
 0x643   :  { %8311 = vmatpush3.bf16.msra.mxu0 %v12010_v50 }
 0x644   :  { %8313 = vmatprep.subr.bf16.mxu0 %v12011_v25 }
 0x647   :  { %8315 = vmatpush3.bf16.msra.mxu0 %v12012_v20 }
 0x648   :  { %8317 = vmatprep.subr.bf16.mxu0 %v12013_v47 }
 0x64b   :  { %8319 = vmatpush3.bf16.msra.mxu0 %v12014_v27 }
 0x64c   :  { %8321 = vmatprep.subr.bf16.mxu0 %v12015_v32 }
 0x64f   :  { %8323 = vmatpush3.bf16.msra.mxu0 %v12016_v49 }
 0x650   :  { %8325 = vmatprep.subr.bf16.mxu0 %v12017_v21 }
 0x653   :  { %8327 = vmatpush3.bf16.msra.mxu0 %v12018_v56 }
 0x654   :  { %8329 = vmatprep.subr.bf16.mxu0 %v12019_v57 }
 0x657   :  { %8331 = vmatpush3.bf16.msra.mxu0 %v12020_v5 }
 0x658   :  { %8333 = vmatprep.subr.bf16.mxu0 %v12021_v13 }
 0x65b   :  { %8335 = vmatpush3.bf16.msra.mxu0 %v12022_v58 }
 0x65c   :  { %8337 = vmatprep.subr.bf16.mxu0 %v12023_v1 }
 0x65f   :  { %8339 = vmatpush3.bf16.msra.mxu0 %v12024_v63 }
 0x660   :  { %8406 = vmatprep.subr.msk.bf16.mxu0 %vm10484_vm5, %v12009_v35 }
 0x695   :  { %v6787_v52 = vpop.f32.mrb[82].mxu0  ;;  %v6825_v17 = vpop.f32.mrb[24].mxu1 }
 0x696   :  { %v6788_v37 = vpop.f32.mrb[83].mxu0  ;;  %v6826_v23 = vpop.f32.mrb[25].mxu1 }
 0x697   :  { %v6789_v48 = vadd.f32 %v6788_v37, %v6787_v52  ;;  %v6827_v54 = vadd.f32 %v6826_v23, %v6825_v17  ;;  %v11099_v52 = vld [vmem:[%s11744_s3 + $0x40] sm:$0xff]  ;;  %v11108_v37 = vld [vmem:[%s11744_s3 + $0x38] sm:$0xff] }
 0x699   :  { %v6790_v29 = vpop.f32.mrb[84].mxu0  ;;  %v6828_v46 = vpop.f32.mrb[26].mxu1  ;;  %v2581_v53 = vadd.f32 %v6827_v54, %v6789_v48  ;;  %v11141_v54 = vld [vmem:[%s11744_s3] sm:$0xff] }
 0x69a   :  { %v6791_v40 = vpop.f32.mrb[85].mxu0  ;;  %v6829_v33 = vpop.f32.mrb[27].mxu1 }
 0x69b   :  { %v6792_v55 = vadd.f32 %v6791_v40, %v6790_v29  ;;  %v6830_v8 = vadd.f32 %v6829_v33, %v6828_v46  ;;  %v11154_v33 = vld [vmem:[%s11744_s3 + $0x28] sm:$0xff] }
 0x69d   :  { %v2586_v34 = vadd.f32 %v6830_v8, %v6792_v55  ;;  %v12026_v8 = vld [vmem:[#allocation67_spill] sm:$0xff] }
 0x6b5   :  { %v7484_v44 = vpop.f32.mrb[86].mxu0 }
 0x6b6   :  { %v11080_v9 = vadd.f32 %v7484_v44, %v2586_v34  ;;  %v2655_v62 = vpop.f32.mrb[87].mxu0  ;;  %v12027_v34 = vld [vmem:[#allocation70_spill] sm:$0xff]  ;;  %v12028_v44 = vld [vmem:[#allocation71_spill] sm:$0xff] }
 0x6b7   :  { %v11082_v41 = vadd.f32 %v2655_v62, %v2581_v53 }
 0x6d6   :  { %v3103_v22 = vpop.f32.mrb[28].mxu1 }
 0x6d7   :  { %v3191_v3 = vmul.f32 0.25, %v3103_v22  ;;  %v3105_v31 = vpop.f32.mrb[29].mxu1 }
 0x6d8   :  { %v3192_v18 = vmul.f32 0.25, %v3105_v31 }
 0x6d9   :  { %v3201_v19 = vmul.f32 %v11093_v10, %v3191_v3 }
 0x6da   :  { %v3202_v15 = vmul.f32 %v11087_v16, %v3192_v18  ;;  %v3109_v59 = vpop.f32.mrb[30].mxu1 }
 0x6db   :  { %v3196_v4 = vmul.f32 0.25, %v3109_v59  ;;  %v3111_v51 = vpop.f32.mrb[31].mxu1  ;;  %v12030_v59 = vld [vmem:[#allocation14_spill] sm:$0xff] }
 0x6dc   :  { %v3197_v35 = vmul.f32 0.25, %v3111_v51  ;;  %3354 = vmatprep.mubr.f32.mxu0 %v3202_v15  ;;  %v12029_v15 = vld [vmem:[#allocation4_spill] sm:$0xff]  ;;  %v12033_v51 = vld [vmem:[#allocation21_spill] sm:$0xff] }
 0x6dd   :  { %3355 = vmatmul.mubr.f32.vlgmr.msra.gmra.mrb[94].mxu0 %v3201_v19  ;;  %v3206_v23 = vmul.f32 %v11108_v37, %v3196_v4  ;;  %v12031_v19 = vld [vmem:[#allocation5_spill] sm:$0xff]  ;;  %v12032_v4 = vld [vmem:[#allocation6_spill] sm:$0xff] }
 0x6de   :  { %v3207_v17 = vmul.f32 %v11099_v52, %v3197_v35  ;;  %8409 = vmatpush3.bf16.xpose.msk.msra.mxu0 %vm10484_vm5, %v12010_v50  ;;  %v12034_v35 = vld [vmem:[#allocation7_spill] sm:$0xff] }
 0x6df   :  { %8412 = vmatprep.subr.msk.bf16.mxu0 %vm10484_vm5, %v12011_v25 }
 0x6e0   :  { %3359 = vmatprep.mubr.f32.mxu0 %v3207_v17  ;;  %v12035_v17 = vld [vmem:[#allocation22_spill] sm:$0xff] }
 0x6e1   :  { %3360 = vmatmul.mubr.f32.gmra.mrb[96].mxu0 %v3206_v23  ;;  %v12036_v23 = vld [vmem:[#allocation8_spill] sm:$0xff] }
 0x6e6   :  { %8415 = vmatpush3.bf16.xpose.msk.msra.mxu0 %vm10484_vm5, %v12012_v20 }
 0x6e7   :  { %8418 = vmatprep.subr.msk.bf16.mxu0 %vm10484_vm5, %v12013_v47  ;;  %v11135_v47 = vld [vmem:[%s11744_s3 + $0x8] sm:$0xff] }
 0x6ee   :  { %8421 = vmatpush3.bf16.xpose.msk.msra.mxu0 %vm10484_vm5, %v12014_v27 }
 0x6ef   :  { %8424 = vmatprep.subr.msk.bf16.mxu0 %vm10484_vm5, %v12015_v32 }
 0x6f5   :  { %v3026_v50 = vpop.f32.mrb[88].mxu0 }
 0x6f6   :  { %v3189_v25 = vmul.f32 0.25, %v3026_v50  ;;  %v3028_v48 = vpop.f32.mrb[89].mxu0  ;;  %8427 = vmatpush3.bf16.xpose.msk.msra.mxu0 %vm10484_vm5, %v12016_v49  ;;  %v12037_v50 = vld [vmem:[#allocation23_spill] sm:$0xff] }
 0x6f7   :  { %v3190_v20 = vmul.f32 0.25, %v3028_v48  ;;  %8430 = vmatprep.subr.msk.bf16.mxu0 %vm10484_vm5, %v12017_v21  ;;  %v11147_v21 = vld [vmem:[%s11744_s3 + $0x30] sm:$0xff] }
 0x6f8   :  { %v3199_v49 = vmul.f32 %v11141_v54, %v3189_v25  ;;  %v12038_v25 = vld [vmem:[#allocation9_spill] sm:$0xff]  ;;  %v12039_v48 = vld [vmem:[#allocation24_spill] sm:$0xff] }
 0x6f9   :  { %v3200_v27 = vmul.f32 %v11135_v47, %v3190_v20  ;;  %v3032_v32 = vpop.f32.mrb[90].mxu0  ;;  %v12040_v20 = vld [vmem:[#allocation10_spill] sm:$0xff] }
 0x6fa   :  { %v3194_v29 = vmul.f32 0.25, %v3032_v32  ;;  %v3034_v46 = vpop.f32.mrb[91].mxu0  ;;  %v12042_v32 = vld [vmem:[#allocation11_spill] sm:$0xff] }
 0x6fb   :  { %v3195_v53 = vmul.f32 0.25, %v3034_v46  ;;  %3279 = vmatprep.mubr.f32.mxu1 %v3200_v27  ;;  %v12041_v27 = vld [vmem:[#allocation25_spill] sm:$0xff]  ;;  %v12045_v46 = vld [vmem:[#allocation38_spill] sm:$0xff] }
 0x6fc   :  { %3280 = vmatmul.mubr.f32.vlgmr.msra.gmra.mrb[32].mxu1 %v3199_v49  ;;  %v3204_v55 = vmul.f32 %v11154_v33, %v3194_v29  ;;  %v12043_v49 = vld [vmem:[#allocation26_spill] sm:$0xff]  ;;  %v12044_v29 = vld [vmem:[#allocation35_spill] sm:$0xff] }
 0x6fd   :  { %v3205_v40 = vmul.f32 %v11147_v21, %v3195_v53  ;;  %8343 = vmatpush3.bf16.msra.mxu1 %v12008_v0  ;;  %v12046_v53 = vld [vmem:[#allocation28_spill] sm:$0xff] }
 0x6fe   :  { %8345 = vmatprep.subr.bf16.mxu1 %v12026_v8  ;;  %8433 = vmatpush3.bf16.xpose.msk.msra.mxu0 %vm10484_vm5, %v12018_v56 }
 0x6ff   :  { %3284 = vmatprep.mubr.f32.mxu1 %v3205_v40  ;;  %8436 = vmatprep.subr.msk.bf16.mxu0 %vm10484_vm5, %v12019_v57  ;;  %v12047_v40 = vld [vmem:[#allocation40_spill] sm:$0xff] }
 0x700   :  { %3285 = vmatmul.mubr.f32.gmra.mrb[34].mxu1 %v3204_v55 }
 0x701   :  { %8347 = vmatpush3.bf16.msra.mxu1 %v12026_v8 }
 0x702   :  { %8349 = vmatprep.subr.bf16.mxu1 %v12027_v34 }
 0x705   :  { %8351 = vmatpush3.bf16.msra.mxu1 %v12027_v34 }
 0x706   :  { %8353 = vmatprep.subr.bf16.mxu1 %v12028_v44  ;;  %8439 = vmatpush3.bf16.xpose.msk.msra.mxu0 %vm10484_vm5, %v12020_v5 }
 0x707   :  { %8442 = vmatprep.subr.msk.bf16.mxu0 %vm10484_vm5, %v12021_v13 }
 0x709   :  { %8355 = vmatpush3.bf16.msra.mxu1 %v12028_v44 }
 0x70a   :  { %8358 = vmatprep.subr.msk.bf16.mxu1 %vm10484_vm5, %v10087_v2  ;;  %v11190_v2 = vld [vmem:[%s11744_s3 + $0x20] sm:$0xff] }
 0x70e   :  { %8445 = vmatpush3.bf16.xpose.msk.msra.mxu0 %vm10484_vm5, %v12022_v58  ;;  %v11196_v58 = vld [vmem:[%s11744_s3 + $0x48] sm:$0xff]  ;;  %s9352_s3 = smov 80  }
 0x70f   :  { %8448 = vmatprep.subr.msk.bf16.mxu0 %vm10484_vm5, %v12023_v1 }
 0x715   :  { %v7503_v56 = vpop.f32.mrb[92].mxu0 }
 0x716   :  { %v3198_v57 = vmul.f32 0.25, %v7503_v56  ;;  %v3180_v5 = vpop.f32.mrb[93].mxu0  ;;  %8451 = vmatpush3.bf16.xpose.msk.msra.mxu0 %vm10484_vm5, %v12024_v63 }
 0x717   :  { %v3193_v13 = vmul.f32 0.25, %v3180_v5 }
 0x718   :  { %v3208_v1 = vmul.f32 %v11196_v58, %v3198_v57 }
 0x719   :  { %v3203_v62 = vmul.f32 %v11190_v2, %v3193_v13 }
 0x71b   :  { %7520 = vmatprep.mubr.msk.f32.mxu1 %vm1501_vm3, %v3203_v62 }
 0x71c   :  { %7521 = vmatmul.mubr.msk.f32.vlgmr.msra.gmra.mrb[36].mxu1 %vm1501_vm3, %v3208_v1 }
 0x71d   :  { %8361 = vmatpush3.bf16.xpose.msk.msra.mxu1 %vm10484_vm5, %v10107_v12 }
 0x71e   :  { %8364 = vmatprep.subr.msk.bf16.mxu1 %vm10484_vm5, %v10109_v14 }
 0x725   :  { %8367 = vmatpush3.bf16.xpose.msk.msra.mxu1 %vm10484_vm5, %v10128_v30 }
 0x726   :  { %8370 = vmatprep.subr.msk.bf16.mxu1 %vm10484_vm5, %v10131_v26 }
 0x72d   :  { %8373 = vmatpush3.bf16.xpose.msk.msra.mxu1 %vm10484_vm5, %v10148_v61 }
 0x72e   :  { %8376 = vmatprep.subr.msk.bf16.mxu1 %vm10484_vm5, %v10151_v11 }
 0x735   :  { %8379 = vmatpush3.bf16.xpose.msk.msra.mxu1 %vm10484_vm5, %v10166_v38 }
 0x736   :  { %8382 = vmatprep.subr.msk.bf16.mxu1 %vm10484_vm5, %v10169_v42 }
 0x73d   :  { %8385 = vmatpush3.bf16.xpose.msk.msra.mxu1 %vm10484_vm5, %v10184_v6 }
 0x73e   :  { %8388 = vmatprep.subr.msk.bf16.mxu1 %vm10484_vm5, %v10187_v7 }
 0x745   :  { %8391 = vmatpush3.bf16.xpose.msk.msra.mxu1 %vm10484_vm5, %v10202_v60 }
 0x746   :  { %8394 = vmatprep.subr.msk.bf16.mxu1 %vm10484_vm5, %v12004_v43 }
 0x74d   :  { %8397 = vmatpush3.bf16.xpose.msk.msra.mxu1 %vm10484_vm5, %v12005_v45 }
 0x74e   :  { %8400 = vmatprep.subr.msk.bf16.mxu1 %vm10484_vm5, %v12006_v39 }
 0x755   :  { %8403 = vmatpush3.bf16.xpose.msk.msra.mxu1 %vm10484_vm5, %v12007_v36 }
 0x756   :  { %8454 = vmatprep.subr.msk.bf16.mxu1 %vm10484_vm5, %v12008_v0 }
 0x7b0   :  { %v6993_v12 = vpop.f32.mrb[94].mxu0 }
 0x7b1   :  { %v6994_v14 = vpop.f32.mrb[95].mxu0 }
 0x7b2   :  { %v6995_v30 = vadd.f32 %v6994_v14, %v6993_v12 }
 0x7b4   :  { %v6996_v26 = vpop.f32.mrb[96].mxu0 }
 0x7b5   :  { %v6997_v61 = vpop.f32.mrb[97].mxu0 }
 0x7b6   :  { %v6998_v11 = vadd.f32 %v6997_v61, %v6996_v26  ;;  %v12048_v26 = vld [vmem:[#allocation13_spill] sm:$0xff]  ;;  %v12049_v61 = vld [vmem:[#allocation15_spill] sm:$0xff] }
 0x7cf   :  { %v6955_v38 = vpop.f32.mrb[32].mxu1 }
 0x7d0   :  { %v6956_v42 = vpop.f32.mrb[33].mxu1 }
 0x7d1   :  { %v6957_v6 = vadd.f32 %v6956_v42, %v6955_v38  ;;  %v12051_v38 = vld [vmem:[#allocation16_spill] sm:$0xff]  ;;  %v12052_v42 = vld [vmem:[#allocation30_spill] sm:$0xff] }
 0x7d3   :  { %v6958_v7 = vpop.f32.mrb[34].mxu1  ;;  %v3357_v60 = vadd.f32 %v6995_v30, %v6957_v6  ;;  %v12053_v6 = vld [vmem:[#allocation17_spill] sm:$0xff] }
 0x7d4   :  { %v6959_v43 = vpop.f32.mrb[35].mxu1 }
 0x7d5   :  { %v6960_v45 = vadd.f32 %v6959_v43, %v6958_v7  ;;  %v12054_v7 = vld [vmem:[#allocation31_spill] sm:$0xff]  ;;  %v12056_v43 = vld [vmem:[#allocation32_spill] sm:$0xff] }
 0x7d7   :  { %v3362_v39 = vadd.f32 %v6998_v11, %v6960_v45  ;;  %v12050_v11 = vld [vmem:[#allocation29_spill] sm:$0xff]  ;;  %v12057_v45 = vld [vmem:[#allocation19_spill] sm:$0xff] }
 0x7ef   :  { %v7522_v63 = vpop.f32.mrb[36].mxu1 }
 0x7f0   :  { %v3437_v36 = vadd.f32 %v7522_v63, %v3362_v39  ;;  %v3431_v22 = vpop.f32.mrb[37].mxu1  ;;  %v12058_v39 = vld [vmem:[#allocation33_spill] sm:$0xff]  ;;  %v12059_v63 = vld [vmem:[#allocation20_spill] sm:$0xff] }
 0x7f1   :  { %v3432_v3 = vadd.f32 %v3431_v22, %v3357_v60  ;;  %v12055_v60 = vld [vmem:[#allocation18_spill] sm:$0xff]  ;;  %v12061_v22 = vld [vmem:[#allocation37_spill] sm:$0xff] }
 0x7f2   :  { %v3443_v31 = vsel %vm1733_vm4, %v3437_v36, -inf }
 0x7f3   :  { %3444 = vmax.xlane.f32.xlu1 %v3443_v31  ;;  %v3440_v18 = vsel %vm1733_vm4, %v3432_v3, -inf  ;;  %v12063_v31 = vld [vmem:[#allocation36_spill] sm:$0xff] }
 0x7f4   :  { %3441 = vmax.xlane.f32.xlu0 %v3440_v18  ;;  %v12064_v18 = vld [vmem:[#allocation39_spill] sm:$0xff] }
 0x804   :  { %9058 = vrot.lane.b32.xlu1 %v12029_v15, %s9352_s3 }
 0x808   :  { %9063 = vrot.lane.b32.xlu1 %v12030_v59, %s9352_s3 }
 0x80c   :  { %9068 = vrot.lane.b32.xlu1 %v12031_v19, %s9352_s3 }
 0x810   :  { %9078 = vrot.lane.b32.xlu1 %v12032_v4, %s9352_s3 }
 0x814   :  { %9088 = vrot.lane.b32.xlu1 %v12033_v51, %s9352_s3 }
 0x818   :  { %9098 = vrot.lane.b32.xlu1 %v12034_v35, %s9352_s3 }
 0x81c   :  { %9108 = vrot.lane.b32.xlu1 %v12035_v17, %s9352_s3 }
 0x820   :  { %9118 = vrot.lane.b32.xlu1 %v12036_v23, %s9352_s3 }
 0x824   :  { %9128 = vrot.lane.b32.xlu1 %v12037_v50, %s9352_s3 }
 0x828   :  { %9138 = vrot.lane.b32.xlu1 %v12038_v25, %s9352_s3 }
 0x82c   :  { %9148 = vrot.lane.b32.xlu1 %v12039_v48, %s9352_s3 }
 0x830   :  { %9158 = vrot.lane.b32.xlu1 %v12040_v20, %s9352_s3 }
 0x834   :  { %9168 = vrot.lane.b32.xlu1 %v12041_v27, %s9352_s3 }
 0x838   :  { %9178 = vrot.lane.b32.xlu1 %v12042_v32, %s9352_s3 }
 0x83c   :  { %9188 = vrot.lane.b32.xlu1 %v12043_v49, %s9352_s3 }
 0x840   :  { %9198 = vrot.lane.b32.xlu1 %v12044_v29, %s9352_s3 }
 0x844   :  { %9208 = vrot.lane.b32.xlu1 %v12045_v46, %s9352_s3 }
 0x848   :  { %9218 = vrot.lane.b32.xlu1 %v12046_v53, %s9352_s3 }
 0x84c   :  { %9228 = vrot.lane.b32.xlu1 %v12047_v40, %s9352_s3 }
 0x880   :  { %v3445_v55 = vpop.xlane.xlu1 %3444 }
 0x881   :  { %v3447_v56 = vsub.f32 %v3437_v36, %v3445_v55  ;;  %v3442_v57 = vpop.xlane.xlu0 %3441  ;;  %v12060_v36 = vld [vmem:[#allocation34_spill] sm:$0xff] }
 0x882   :  { %v3446_v5 = vsub.f32 %v3432_v3, %v3442_v57  ;;  %v12062_v3 = vld [vmem:[#allocation27_spill] sm:$0xff] }
 0x883   :  { %v3450_v13 = vmul.f32 1.442695, %v3447_v56 }
 0x884   :  { %v3448_v62 = vmul.f32 1.442695, %v3446_v5  ;;  %v9059_v15 = vpop.permute.xlu1 %9058 }
 0x885   :  { %v9061_v32 = vunpack.i.h.bf16 %v9059_v15  ;;  %v9060_v49 = vunpack.i.l.bf16 %v9059_v15 }
 0x886   :  { %9280 = vpow2.f32 %v3448_v62 }
 0x887   :  { %9282 = vpow2.f32 %v3450_v13  ;;  %v8478_v5 = vpack.c.bf16 %v9061_v32, %v9060_v49 }
 0x888   :  { %v9064_v59 = vpop.permute.xlu1 %9063 }
 0x889   :  { %v9066_v46 = vunpack.i.h.bf16 %v9064_v59  ;;  %v9065_v53 = vunpack.i.l.bf16 %v9064_v59 }
 0x88c   :  { %v9069_v19 = vpop.permute.xlu1 %9068 }
 0x88d   :  { %v9071_v13 = vunpack.i.h.bf16 %v9069_v19  ;;  %v9070_v62 = vunpack.i.l.bf16 %v9069_v19 }
 0x890   :  { %v9281_v1 = vpop.eup %9280  ;;  %v9079_v4 = vpop.permute.xlu1 %9078 }
 0x891   :  { %v3452_v12 = vsel %vm1733_vm4, %v9281_v1, 0.0  ;;  %v9283_v14 = vpop.eup %9282 }
 0x892   :  { %3453 = vadd.xlane.f32.xlu0 %v3452_v12  ;;  %v3455_v30 = vsel %vm1733_vm4, %v9283_v14, 0.0 }
 0x894   :  { %v11325_v51 = vpop.permute.xlu1 %9088 }
 0x896   :  { %3456 = vadd.xlane.f32.xlu0 %v3455_v30  ;;  %v8480_v30 = vpack.c.bf16 %v9066_v46, %v9065_v53 }
 0x898   :  { %v11327_v35 = vpop.permute.xlu1 %9098 }
 0x89c   :  { %v11329_v23 = vpop.permute.xlu1 %9108 }
 0x89d   :  { %v9111_v28 = vunpack.i.h.bf16 %v11329_v23 }
 0x8a0   :  { %v11331_v25 = vpop.permute.xlu1 %9118 }
 0x8a1   :  { %v9120_v15 = vunpack.i.l.bf16 %v11331_v25 }
 0x8a4   :  { %v11335_v57 = vpop.permute.xlu1 %9128 }
 0x8ac   :  { %9053 = vrot.lane.b32.xlu0 %v12048_v26, %s9352_s3 }
 0x8b0   :  { %9073 = vrot.lane.b32.xlu0 %v12049_v61, %s9352_s3 }
 0x8b4   :  { %9083 = vrot.lane.b32.xlu0 %v12050_v11, %s9352_s3 }
 0x8b8   :  { %9093 = vrot.lane.b32.xlu0 %v12051_v38, %s9352_s3  ;;  %v8482_v38 = vpack.c.bf16 %v9071_v13, %v9070_v62  ;;  %v9090_v13 = vunpack.i.l.bf16 %v11325_v51 }
 0x8bc   :  { %9103 = vrot.lane.b32.xlu0 %v12052_v42, %s9352_s3  ;;  %v9081_v42 = vunpack.i.h.bf16 %v9079_v4 }
 0x8c0   :  { %9113 = vrot.lane.b32.xlu0 %v12053_v6, %s9352_s3  ;;  %v9080_v6 = vunpack.i.l.bf16 %v9079_v4 }
 0x8c4   :  { %9123 = vrot.lane.b32.xlu0 %v12054_v7, %s9352_s3 }
 0x8c8   :  { %9133 = vrot.lane.b32.xlu0 %v12055_v60, %s9352_s3 }
 0x8cc   :  { %9143 = vrot.lane.b32.xlu0 %v12056_v43, %s9352_s3 }
 0x8d0   :  { %9153 = vrot.lane.b32.xlu0 %v12057_v45, %s9352_s3  ;;  %v8486_v45 = vpack.c.bf16 %v9081_v42, %v9080_v6 }
 0x8d4   :  { %9163 = vrot.lane.b32.xlu0 %v12058_v39, %s9352_s3  ;;  %v9101_v39 = vunpack.i.h.bf16 %v11327_v35 }
 0x8d8   :  { %9173 = vrot.lane.b32.xlu0 %v12059_v63, %s9352_s3  ;;  %v9100_v63 = vunpack.i.l.bf16 %v11327_v35 }
 0x8dc   :  { %9183 = vrot.lane.b32.xlu0 %v12060_v36, %s9352_s3 }
 0x8e0   :  { %9193 = vrot.lane.b32.xlu0 %v12061_v22, %s9352_s3 }
 0x8e4   :  { %9203 = vrot.lane.b32.xlu0 %v12062_v3, %s9352_s3 }
 0x8e8   :  { %9213 = vrot.lane.b32.xlu0 %v12063_v31, %s9352_s3  ;;  %v8490_v31 = vpack.c.bf16 %v9101_v39, %v9100_v63  ;;  %v9131_v63 = vunpack.i.h.bf16 %v11335_v57 }
 0x8ec   :  { %9223 = vrot.lane.b32.xlu0 %v12064_v18, %s9352_s3  ;;  %v9121_v18 = vunpack.i.h.bf16 %v11331_v25 }
 0x91f   :  { %v3454_v17 = vpop.xlane.xlu0 %3453 }
 0x920   :  { %9284 = vrcp.f32 %v3454_v17  ;;  %v8494_v17 = vpack.c.bf16 %v9121_v18, %v9120_v15 }
 0x923   :  { %v3457_v50 = vpop.xlane.xlu0 %3456 }
 0x924   :  { %9286 = vrcp.f32 %v3457_v50 }
 0x927   :  { %v9054_v48 = vpop.permute.xlu0 %9053 }
 0x928   :  { %v9056_v20 = vunpack.i.h.bf16 %v9054_v48  ;;  %v9055_v27 = vunpack.i.l.bf16 %v9054_v48 }
 0x92a   :  { %v9285_v29 = vpop.eup %9284  ;;  %v8476_v40 = vpack.c.bf16 %v9056_v20, %v9055_v27 }
 0x92b   :  { %v11333_v55 = vmul.f32 %v9285_v29, %v9281_v1  ;;  %v9074_v56 = vpop.permute.xlu0 %9073 }
 0x92c   :  { %8477 = vmatprep.subr.bf16.mxu0 %v8476_v40  ;;  %v9076_v26 = vunpack.i.h.bf16 %v9074_v56  ;;  %v9075_v61 = vunpack.i.l.bf16 %v9074_v56 }
 0x92d   :  { %7041 = vmatprep.mubr.msk.f32.mxu1 %vm1733_vm4, %v11333_v55  ;;  %7077 = vmatprep.mubr.msk.f32.mxu0 %vm1733_vm4, %v11333_v55 }
 0x92e   :  { %v9287_v12 = vpop.eup %9286  ;;  %7042 = vmatmul.mubr.msk.f32.vlgmr.msra.gmra.mrb[38].mxu1 %vm1733_vm4, %v11333_v55  ;;  %7078 = vmatmul.mubr.msk.f32.vlgmr.msra.gmra.mrb[98].mxu0 %vm1733_vm4, %v11333_v55  ;;  %v8484_v7 = vpack.c.bf16 %v9076_v26, %v9075_v61 }
 0x92f   :  { %v11345_v1 = vmul.f32 %v9287_v12, %v9283_v14  ;;  %8457 = vmatpush3.bf16.xpose.msk.msra.mxu1 %vm10484_vm5, %v12008_v0  ;;  %8479 = vmatpush3.bf16.msra.mxu0 %v8478_v5  ;;  %v9084_v11 = vpop.permute.xlu0 %9083  ;;  %v9139_v14 = vpop.permute.xlu1 %9138  ;;  %v9091_v5 = vunpack.i.h.bf16 %v11325_v51 }
 0x930   :  { %8481 = vmatprep.subr.bf16.mxu0 %v8480_v30  ;;  %8460 = vmatprep.subr.msk.bf16.mxu1 %vm10484_vm5, %v12026_v8  ;;  %v9086_v48 = vunpack.i.h.bf16 %v9084_v11  ;;  %v9085_v25 = vunpack.i.l.bf16 %v9084_v11  ;;  %v9141_v20 = vunpack.i.h.bf16 %v9139_v14  ;;  %v9140_v27 = vunpack.i.l.bf16 %v9139_v14 }
 0x931   :  { %7043 = vmatprep.mubr.msk.f32.mxu1 %vm1733_vm4, %v11345_v1  ;;  %7079 = vmatprep.mubr.msk.f32.mxu0 %vm1733_vm4, %v11345_v1  ;;  %v8510_v6 = vpack.c.bf16 %v9091_v5, %v9090_v13 }
 0x932   :  { %7044 = vmatmul.mubr.msk.f32.gmra.mrb[40].mxu1 %vm1733_vm4, %v11345_v1  ;;  %7080 = vmatmul.mubr.msk.f32.gmra.mrb[100].mxu0 %vm1733_vm4, %v11345_v1  ;;  %v8508_v53 = vpack.c.bf16 %v9086_v48, %v9085_v25  ;;  %v8498_v56 = vpack.c.bf16 %v9141_v20, %v9140_v27 }
 0x933   :  { %8483 = vmatpush3.bf16.msra.mxu0 %v8482_v38  ;;  %7539 = vmatprep.mubr.msk.f32.mxu1 %vm1733_vm4, %v11333_v55  ;;  %v9094_v0 = vpop.permute.xlu0 %9093  ;;  %v11368_v3 = vpop.permute.xlu1 %9148 }
 0x934   :  { %v9096_v60 = vunpack.i.h.bf16 %v9094_v0  ;;  %v9095_v43 = vunpack.i.l.bf16 %v9094_v0  ;;  %8485 = vmatprep.subr.bf16.mxu0 %v8484_v7 }
 0x936   :  { %v8488_v36 = vpack.c.bf16 %v9096_v60, %v9095_v43 }
 0x937   :  { %8463 = vmatpush3.bf16.xpose.msk.msra.mxu1 %vm10484_vm5, %v12026_v8  ;;  %8487 = vmatpush3.bf16.msra.mxu0 %v8486_v45  ;;  %v9104_v22 = vpop.permute.xlu0 %9103  ;;  %v9159_v35 = vpop.permute.xlu1 %9158 }
 0x938   :  { %8489 = vmatprep.subr.bf16.mxu0 %v8488_v36  ;;  %8466 = vmatprep.subr.msk.bf16.mxu1 %vm10484_vm5, %v12027_v34  ;;  %v9106_v12 = vunpack.i.h.bf16 %v9104_v22  ;;  %v9105_v30 = vunpack.i.l.bf16 %v9104_v22  ;;  %v9161_v26 = vunpack.i.h.bf16 %v9159_v35  ;;  %v9160_v61 = vunpack.i.l.bf16 %v9159_v35 }
 0x939   :  { %v9130_v36 = vunpack.i.l.bf16 %v11335_v57 }
 0x93a   :  { %v8512_v14 = vpack.c.bf16 %v9106_v12, %v9105_v30  ;;  %v8502_v51 = vpack.c.bf16 %v9161_v26, %v9160_v61 }
 0x93b   :  { %8491 = vmatpush3.bf16.msra.mxu0 %v8490_v31  ;;  %v9114_v59 = vpop.permute.xlu0 %9113  ;;  %v11381_v49 = vpop.permute.xlu1 %9168  ;;  %v8518_v35 = vpack.c.bf16 %v9131_v63, %v9130_v36 }
 0x93c   :  { %v9116_v19 = vunpack.i.h.bf16 %v9114_v59  ;;  %v9115_v4 = vunpack.i.l.bf16 %v9114_v59 }
 0x93e   :  { %v8492_v8 = vpack.c.bf16 %v9116_v19, %v9115_v4 }
 0x93f   :  { %8469 = vmatpush3.bf16.xpose.msk.msra.mxu1 %vm10484_vm5, %v12027_v34  ;;  %v9124_v50 = vpop.permute.xlu0 %9123  ;;  %v9179_v62 = vpop.permute.xlu1 %9178 }
 0x940   :  { %8493 = vmatprep.subr.bf16.mxu0 %v8492_v8  ;;  %8472 = vmatprep.subr.msk.bf16.mxu1 %vm10484_vm5, %v12028_v44  ;;  %v9126_v7 = vunpack.i.h.bf16 %v9124_v50  ;;  %v9125_v0 = vunpack.i.l.bf16 %v9124_v50  ;;  %v9181_v18 = vunpack.i.h.bf16 %v9179_v62  ;;  %v9180_v15 = vunpack.i.l.bf16 %v9179_v62 }
 0x941   :  { %8495 = vmatpush3.bf16.msra.mxu0 %v8494_v17  ;;  %v9151_v8 = vunpack.i.h.bf16 %v11368_v3  ;;  %v9150_v17 = vunpack.i.l.bf16 %v11368_v3 }
 0x942   :  { %v8506_v27 = vpack.c.bf16 %v9181_v18, %v9180_v15 }
 0x943   :  { %v9134_v32 = vpop.permute.xlu0 %9133  ;;  %v9189_v45 = vpop.permute.xlu1 %9188 }
 0x944   :  { %v9136_v29 = vunpack.i.h.bf16 %v9134_v32  ;;  %v9135_v46 = vunpack.i.l.bf16 %v9134_v32  ;;  %v9191_v30 = vunpack.i.h.bf16 %v9189_v45  ;;  %v9190_v26 = vunpack.i.l.bf16 %v9189_v45 }
 0x946   :  { %v8496_v40 = vpack.c.bf16 %v9136_v29, %v9135_v46  ;;  %v8522_v29 = vpack.c.bf16 %v9151_v8, %v9150_v17  ;;  %v9171_v46 = vunpack.i.h.bf16 %v11381_v49 }
 0x947   :  { %8475 = vmatpush3.bf16.xpose.msk.msra.mxu1 %vm10484_vm5, %v12028_v44  ;;  %v9144_v34 = vpop.permute.xlu0 %9143  ;;  %v9110_v44 = vunpack.i.l.bf16 %v11329_v23  ;;  %v8516_v23 = vpack.c.bf16 %v9126_v7, %v9125_v0  ;;  %v9199_v50 = vpop.permute.xlu1 %9198 }
 0x948   :  { %8509 = vmatprep.subr.bf16.mxu1 %v8508_v53  ;;  %8497 = vmatprep.subr.bf16.mxu0 %v8496_v40  ;;  %v9146_v22 = vunpack.i.h.bf16 %v9144_v34  ;;  %v9145_v31 = vunpack.i.l.bf16 %v9144_v34  ;;  %v9170_v53 = vunpack.i.l.bf16 %v11381_v49  ;;  %v9201_v61 = vunpack.i.h.bf16 %v9199_v50 }
 0x949   :  { %8499 = vmatpush3.bf16.msra.mxu0 %v8498_v56  ;;  %v8514_v39 = vpack.c.bf16 %v9111_v28, %v9110_v44  ;;  %v8530_v49 = vpack.c.bf16 %v9191_v30, %v9190_v26 }
 0x94a   :  { %v8520_v48 = vpack.c.bf16 %v9146_v22, %v9145_v31  ;;  %v8526_v12 = vpack.c.bf16 %v9171_v46, %v9170_v53 }
 0x94b   :  { %v9154_v11 = vpop.permute.xlu0 %9153  ;;  %v9209_v5 = vpop.permute.xlu1 %9208 }
 0x94c   :  { %v9156_v38 = vunpack.i.h.bf16 %v9154_v11  ;;  %v9155_v42 = vunpack.i.l.bf16 %v9154_v11  ;;  %v9200_v11 = vunpack.i.l.bf16 %v9199_v50  ;;  %v9211_v31 = vunpack.i.h.bf16 %v9209_v5 }
 0x94d   :  { %v9210_v18 = vunpack.i.l.bf16 %v9209_v5  ;;  %v4166_v5 = vld [vmem:[%s11745_s10 + $0x10] sm:$0xff] }
 0x94e   :  { %v8500_v60 = vpack.c.bf16 %v9156_v38, %v9155_v42  ;;  %7540 = vmatmul.mubr.msk.f32.vlgmr.msra.gmra.mrb[42].mxu1 %vm1733_vm4, %v11345_v1 }
 0x94f   :  { %8511 = vmatpush3.bf16.msra.mxu1 %v8510_v6  ;;  %v9164_v43 = vpop.permute.xlu0 %9163  ;;  %v9219_v7 = vpop.permute.xlu1 %9218 }
 0x950   :  { %8513 = vmatprep.subr.bf16.mxu1 %v8512_v14  ;;  %8501 = vmatprep.subr.bf16.mxu0 %v8500_v60  ;;  %v9166_v25 = vunpack.i.h.bf16 %v9164_v43  ;;  %v9165_v57 = vunpack.i.l.bf16 %v9164_v43  ;;  %v8532_v14 = vpack.c.bf16 %v9201_v61, %v9200_v11  ;;  %v9221_v43 = vunpack.i.h.bf16 %v9219_v7 }
 0x951   :  { %8503 = vmatpush3.bf16.msra.mxu0 %v8502_v51  ;;  %v9220_v45 = vunpack.i.l.bf16 %v9219_v7 }
 0x952   :  { %v8524_v40 = vpack.c.bf16 %v9166_v25, %v9165_v57  ;;  %v8544_v25 = vpack.c.bf16 %v9211_v31, %v9210_v18 }
 0x953   :  { %8515 = vmatpush3.bf16.msra.mxu1 %v8514_v39  ;;  %v9174_v59 = vpop.permute.xlu0 %9173  ;;  %v8538_v36 = vpack.c.bf16 %v9221_v43, %v9220_v45 }
 0x954   :  { %v9176_v19 = vunpack.i.h.bf16 %v9174_v59  ;;  %v9175_v4 = vunpack.i.l.bf16 %v9174_v59  ;;  %8517 = vmatprep.subr.bf16.mxu1 %v8516_v23 }
 0x956   :  { %v8504_v20 = vpack.c.bf16 %v9176_v19, %v9175_v4 }
 0x957   :  { %8519 = vmatpush3.bf16.msra.mxu1 %v8518_v35  ;;  %v9184_v32 = vpop.permute.xlu0 %9183 }
 0x958   :  { %8521 = vmatprep.subr.bf16.mxu1 %v8520_v48  ;;  %8505 = vmatprep.subr.bf16.mxu0 %v8504_v20  ;;  %v9186_v56 = vunpack.i.h.bf16 %v9184_v32  ;;  %v9185_v34 = vunpack.i.l.bf16 %v9184_v32 }
 0x959   :  { %8507 = vmatpush3.bf16.msra.mxu0 %v8506_v27 }
 0x95a   :  { %v8528_v38 = vpack.c.bf16 %v9186_v56, %v9185_v34  ;;  %v4164_v34 = vld [vmem:[%s11745_s10] sm:$0xff] }
 0x95b   :  { %8523 = vmatpush3.bf16.msra.mxu1 %v8522_v29  ;;  %v9194_v3 = vpop.permute.xlu0 %9193  ;;  %v9229_v29 = vpop.permute.xlu1 %9228 }
 0x95c   :  { %v9196_v13 = vunpack.i.h.bf16 %v9194_v3  ;;  %v9195_v62 = vunpack.i.l.bf16 %v9194_v3  ;;  %8525 = vmatprep.subr.bf16.mxu1 %v8524_v40  ;;  %v9231_v46 = vunpack.i.h.bf16 %v9229_v29  ;;  %v9230_v53 = vunpack.i.l.bf16 %v9229_v29  ;;  %v4165_v3 = vld [vmem:[%s11745_s10 + $0x8] sm:$0xff]  ;;  %v4293_v29 = vld [vmem:[%s11746_s11 + $0x10] sm:$0xff] }
 0x95e   :  { %v8540_v42 = vpack.c.bf16 %v9196_v13, %v9195_v62  ;;  %v8552_v56 = vpack.c.bf16 %v9231_v46, %v9230_v53  ;;  %v8556_v13 = vpack.c.bf16 %v4165_v3, %v4164_v34 }
 0x95f   :  { %8527 = vmatpush3.bf16.msra.mxu1 %v8526_v12  ;;  %v9204_v6 = vpop.permute.xlu0 %9203 }
 0x960   :  { %8529 = vmatprep.subr.bf16.mxu1 %v8528_v38  ;;  %8541 = vmatprep.subr.bf16.mxu0 %v8540_v42  ;;  %v9206_v28 = vunpack.i.h.bf16 %v9204_v6  ;;  %v9205_v44 = vunpack.i.l.bf16 %v9204_v6 }
 0x962   :  { %v8534_v39 = vpack.c.bf16 %v9206_v28, %v9205_v44 }
 0x963   :  { %8531 = vmatpush3.bf16.msra.mxu1 %v8530_v49  ;;  %v9214_v0 = vpop.permute.xlu0 %9213 }
 0x964   :  { %v9216_v60 = vunpack.i.h.bf16 %v9214_v0  ;;  %v9215_v51 = vunpack.i.l.bf16 %v9214_v0  ;;  %8533 = vmatprep.subr.bf16.mxu1 %v8532_v14 }
 0x966   :  { %v8536_v63 = vpack.c.bf16 %v9216_v60, %v9215_v51 }
 0x967   :  { %8535 = vmatpush3.bf16.msra.mxu1 %v8534_v39  ;;  %v9224_v19 = vpop.permute.xlu0 %9223 }
 0x968   :  { %8537 = vmatprep.subr.bf16.mxu1 %v8536_v63  ;;  %v9226_v57 = vunpack.i.h.bf16 %v9224_v19  ;;  %v9225_v20 = vunpack.i.l.bf16 %v9224_v19 }
 0x96a   :  { %v8548_v40 = vpack.c.bf16 %v9226_v57, %v9225_v20 }
 0x96b   :  { %8539 = vmatpush3.bf16.msra.mxu1 %v8538_v36 }
 0xa01   :  { %v3534_v23 = vpop.f32.mrb[38].mxu1  ;;  %v3611_v22 = vpop.f32.mrb[98].mxu0 }
 0xa02   :  { %v3536_v15 = vpop.f32.mrb[39].mxu1  ;;  %v3613_v59 = vpop.f32.mrb[99].mxu0  ;;  %v3697_v8 = vmul.f32 %v11141_v54, %v3534_v23  ;;  %v3699_v17 = vmul.f32 %v11093_v10, %v3611_v22  ;;  %v12065_v22 = vld [vmem:[#allocation2_spill] sm:$0xff] }
 0xa03   :  { %v3698_v4 = vmul.f32 %v11135_v47, %v3536_v15  ;;  %v3700_v35 = vmul.f32 %v11087_v16, %v3613_v59  ;;  %v12066_v15 = vld [vmem:[#allocation3_spill] sm:$0xff] }
 0xa05   :  { %v3540_v50 = vpop.f32.mrb[40].mxu1  ;;  %v3617_v48 = vpop.f32.mrb[100].mxu0  ;;  %3993 = vmatprep.mubr.f32.mxu0 %v3698_v4  ;;  %4068 = vmatprep.mubr.f32.mxu1 %v3700_v35 }
 0xa06   :  { %v3542_v27 = vpop.f32.mrb[41].mxu1  ;;  %v3619_v32 = vpop.f32.mrb[101].mxu0  ;;  %3994 = vmatmul.mubr.f32.vlgmr.msra.gmra.mrb[102].mxu0 %v3697_v8  ;;  %4069 = vmatmul.mubr.f32.vlgmr.msra.gmra.mrb[44].mxu1 %v3699_v17  ;;  %v3702_v54 = vmul.f32 %v11154_v33, %v3540_v50  ;;  %v3704_v10 = vmul.f32 %v11108_v37, %v3617_v48 }
 0xa07   :  { %v3703_v47 = vmul.f32 %v11147_v21, %v3542_v27  ;;  %v3705_v16 = vmul.f32 %v11099_v52, %v3619_v32  ;;  %8543 = vmatpush3.bf16.msra.mxu0 %v8540_v42  ;;  %v4291_v27 = vld [vmem:[%s11746_s11] sm:$0xff]  ;;  %v4292_v32 = vld [vmem:[%s11746_s11 + $0x8] sm:$0xff] }
 0xa08   :  { %8545 = vmatprep.subr.bf16.mxu0 %v8544_v25 }
 0xa09   :  { %3998 = vmatprep.mubr.f32.mxu0 %v3703_v47  ;;  %4073 = vmatprep.mubr.f32.mxu1 %v3705_v16  ;;  %v8564_v47 = vpack.c.bf16 %v4292_v32, %v4291_v27  ;;  %v4294_v16 = vld [vmem:[%s11746_s11 + $0x18] sm:$0xff] }
 0xa0a   :  { %3999 = vmatmul.mubr.f32.gmra.mrb[104].mxu0 %v3702_v54  ;;  %4074 = vmatmul.mubr.f32.gmra.mrb[46].mxu1 %v3704_v10  ;;  %v8568_v54 = vpack.c.bf16 %v4294_v16, %v4293_v29 }
 0xa0b   :  { %8547 = vmatpush3.bf16.msra.mxu0 %v8544_v25 }
 0xa0c   :  { %8549 = vmatprep.subr.bf16.mxu0 %v8548_v40 }
 0xa0f   :  { %8551 = vmatpush3.bf16.msra.mxu0 %v8548_v40 }
 0xa10   :  { %8553 = vmatprep.subr.bf16.mxu0 %v8552_v56 }
 0xa13   :  { %8555 = vmatpush3.bf16.msra.mxu0 %v8552_v56 }
 0xa14   :  { %8557 = vmatprep.subr.bf16.mxu0 %v8556_v13 }
 0xa21   :  { %v7541_v52 = vpop.f32.mrb[42].mxu1 }
 0xa22   :  { %v3688_v21 = vpop.f32.mrb[43].mxu1  ;;  %v3706_v37 = vmul.f32 %v11196_v58, %v7541_v52 }
 0xa23   :  { %v3701_v33 = vmul.f32 %v11190_v2, %v3688_v21  ;;  %v4167_v2 = vld [vmem:[%s11745_s10 + $0x18] sm:$0xff]  ;;  %s9353_s10 = smov 16  }
 0xa24   :  { %v8560_v58 = vpack.c.bf16 %v4167_v2, %v4166_v5 }
 0xa25   :  { %7558 = vmatprep.mubr.msk.f32.mxu0 %vm1501_vm3, %v3701_v33  ;;  %v4286_v33 = vld [vmem:[%s11747_s2] sm:$0xff] }
 0xa26   :  { %7559 = vmatmul.mubr.msk.f32.vlgmr.msra.gmra.mrb[106].mxu0 %vm1501_vm3, %v3706_v37 }
 0xa27   :  { %8559 = vmatpush3.bf16.msra.mxu0 %v8556_v13 }
 0xa28   :  { %8561 = vmatprep.subr.bf16.mxu0 %v8560_v58 }
 0xa2b   :  { %8563 = vmatpush3.bf16.msra.mxu0 %v8560_v58 }
 0xa2c   :  { %8565 = vmatprep.subr.bf16.mxu0 %v8564_v47 }
 0xad9   :  { %v7123_v62 = vpop.f32.mrb[102].mxu0  ;;  %v7161_v12 = vpop.f32.mrb[44].mxu1 }
 0xada   :  { %v7124_v30 = vpop.f32.mrb[103].mxu0  ;;  %v7162_v26 = vpop.f32.mrb[45].mxu1 }
 0xadb   :  { %v7125_v61 = vadd.f32 %v7124_v30, %v7123_v62  ;;  %v7163_v11 = vadd.f32 %v7162_v26, %v7161_v12 }
 0xadd   :  { %v7126_v38 = vpop.f32.mrb[104].mxu0  ;;  %v7164_v42 = vpop.f32.mrb[46].mxu1  ;;  %v4071_v6 = vadd.f32 %v7163_v11, %v7125_v61 }
 0xade   :  { %v7127_v49 = vpop.f32.mrb[105].mxu0  ;;  %v7165_v28 = vpop.f32.mrb[47].mxu1 }
 0xadf   :  { %v7128_v44 = vadd.f32 %v7127_v49, %v7126_v38  ;;  %v7166_v14 = vadd.f32 %v7165_v28, %v7164_v42 }
 0xae1   :  { %v4076_v7 = vadd.f32 %v7166_v14, %v7128_v44  ;;  %v11488_v44 = vld [vmem:[%s11748_s5 + $0x8] sm:$0xff] }
 0xaf9   :  { %v7560_v0 = vpop.f32.mrb[106].mxu0 }
 0xafa   :  { %v4151_v60 = vadd.f32 %v7560_v0, %v4076_v7  ;;  %v4145_v51 = vpop.f32.mrb[107].mxu0  ;;  %v11493_v0 = vld [vmem:[%s11748_s5] sm:$0xff]  ;;  %s9354_s5 = smov 48  }
 0xafb   :  { %v4146_v43 = vadd.f32 %v4145_v51, %v4071_v6 }
 0xafc   :  { %4158 = vrot.lane.b32.xlu1 %v4151_v60, %s9353_s10 }
 0xafd   :  { %4156 = vrot.lane.b32.xlu0 %v4146_v43, %s9353_s10 }
 0xb6e   :  { %v4159_v45 = vpop.permute.xlu1 %4158 }
 0xb6f   :  { %v4157_v39 = vpop.permute.xlu0 %4156  ;;  %v4163_v36 = vsel %vm1029_vm1, %v11080_v9, %v4159_v45 }
 0xb70   :  { %v4162_v63 = vsel %vm1029_vm1, %v11082_v41, %v4157_v39 }
 0xb71   :  { %7569 = vmatprep.mubr.msk.f32.mxu0 %vm145_vm0, %v4162_v63 }
 0xb72   :  { %7570 = vmatmul.mubr.msk.f32.vlgmr.msra.gmra.mrb[108].mxu0 %vm145_vm0, %v4163_v36 }
 0xb73   :  { %8567 = vmatpush3.bf16.msra.mxu0 %v8564_v47 }
 0xb74   :  { %8569 = vmatprep.subr.bf16.mxu0 %v8568_v54 }
 0xb77   :  { %8571 = vmatpush3.bf16.msra.mxu0 %v8568_v54 }
 0xc45   :  { %v7571_v23 = vpop.f32.mrb[108].mxu0 }
 0xc46   :  { %v4250_v31 = vadd.f32 %v7571_v23, %v12065_v22  ;;  %v4240_v18 = vpop.f32.mrb[109].mxu0 }
 0xc47   :  { %v4249_v59 = vadd.f32 %v4240_v18, %v12066_v15 }
 0xc48   :  { %v4254_v19 = vsel %vm145_vm0, %v4250_v31, 0.0 }
 0xc49   :  { %4255 = vadd.xlane.f32.xlu1 %v4254_v19  ;;  %v4251_v4 = vsel %vm145_vm0, %v4249_v59, 0.0 }
 0xc4a   :  { %4252 = vadd.xlane.f32.xlu0 %v4251_v4 }
 0xcd6   :  { %v4256_v41 = vpop.xlane.xlu1 %4255 }
 0xcd7   :  { %v4259_v35 = vmul.f32 0.03125, %v4256_v41  ;;  %v4253_v8 = vpop.xlane.xlu0 %4252 }
 0xcd8   :  { %v4258_v9 = vmul.f32 0.03125, %v4253_v8 }
 0xcd9   :  { %v4261_v17 = vsub.f32 %v4250_v31, %v4259_v35 }
 0xcda   :  { %v4260_v50 = vsub.f32 %v4249_v59, %v4258_v9 }
 0xcdb   :  { %v4263_v57 = vmul.f32 %v4261_v17, %v4261_v17 }
 0xcdc   :  { %v4262_v48 = vmul.f32 %v4260_v50, %v4260_v50 }
 0xcdd   :  { %v4267_v20 = vsel %vm145_vm0, %v4263_v57, 0.0 }
 0xcde   :  { %v4264_v25 = vsel %vm145_vm0, %v4262_v48, 0.0 }
 0xcdf   :  { %4265 = vadd.xlane.f32.xlu0 %v4264_v25 }
 0xce3   :  { %4268 = vadd.xlane.f32.xlu0 %v4267_v20 }
 0xd6c   :  { %v4266_v10 = vpop.xlane.xlu0 %4265 }
 0xd6d   :  { %v4270_v46 = vmul.f32 0.03125, %v4266_v10 }
 0xd6f   :  { %v4272_v53 = vadd.f32 1e-05, %v4270_v46 }
 0xd70   :  { %v4269_v40 = vpop.xlane.xlu0 %4268 }
 0xd71   :  { %9288 = vrsqrt.f32 %v4272_v53  ;;  %v4271_v56 = vmul.f32 0.03125, %v4269_v40 }
 0xd73   :  { %v4273_v52 = vadd.f32 1e-05, %v4271_v56 }
 0xd75   :  { %9290 = vrsqrt.f32 %v4273_v52 }
 0xd7b   :  { %v9289_v21 = vpop.eup %9288 }
 0xd7c   :  { %v11451_v37 = vmul.f32 %v9289_v21, %v4260_v50 }
 0xd7e   :  { %v11454_v34 = vadd.f32 %v4286_v33, %v11451_v37 }
 0xd7f   :  { %v9291_v3 = vpop.eup %9290 }
 0xd80   :  { %v11456_v5 = vmul.f32 %v9291_v3, %v4261_v17  ;;  %7580 = vmatprep.mubr.msk.f32.mxu0 %vm145_vm0, %v11454_v34 }
 0xd82   :  { %v11461_v13 = vadd.f32 %v4286_v33, %v11456_v5 }
 0xd84   :  { %7581 = vmatmul.mubr.msk.f32.vlgmr.msra.gmra.mrb[110].mxu0 %vm145_vm0, %v11461_v13 }
 0xe57   :  { %v7582_v2 = vpop.f32.mrb[110].mxu0 }
 0xe58   :  { %v4367_v58 = vpop.f32.mrb[111].mxu0 }
 0xe59   :  { %7587 = vmatprep.mubr.msk.f32.mxu1 %vm1029_vm1, %v4367_v58  ;;  %v11466_v62 = vpack.i.bf16 %v7582_v2, %v4367_v58 }
 0xe5b   :  { %9238 = vrot.lane.b32.xlu1 %v11466_v62, %s9352_s3  ;;  %9233 = vrot.lane.b32.xlu0 %v11466_v62, %s9350_s23 }
 0xe5f   :  { %4578 = vrot.lane.b32.xlu1 %v4367_v58, %s9351_s24 }
 0xe63   :  { %4580 = vrot.lane.b32.xlu1 %v7582_v2, %s9351_s24 }
 0xecd   :  { %v9239_v12 = vpop.permute.xlu1 %9238  ;;  %v9234_v30 = vpop.permute.xlu0 %9233 }
 0xece   :  { %v9241_v26 = vunpack.i.h.bf16 %v9239_v12  ;;  %v9240_v61 = vunpack.i.l.bf16 %v9239_v12  ;;  %v9236_v11 = vunpack.i.h.bf16 %v9234_v30  ;;  %v9235_v38 = vunpack.i.l.bf16 %v9234_v30 }
 0xed0   :  { %v8572_v42 = vpack.c.bf16 %v9236_v11, %v9235_v38  ;;  %v8582_v6 = vpack.c.bf16 %v9241_v26, %v9240_v61 }
 0xed1   :  { %v4579_v49 = vpop.permute.xlu1 %4578 }
 0xed2   :  { %8574 = vmatprep.subr.msk.bf16.mxu1 %vm9831_vm2, %v8572_v42 }
 0xed3   :  { %8577 = vmatpush3.bf16.xpose.msk.msra.mxu1 %vm9831_vm2, %v8572_v42 }
 0xed4   :  { %8584 = vmatprep.subr.msk.bf16.mxu1 %vm9831_vm2, %v8582_v6 }
 0xed5   :  { %v4581_v28 = vpop.permute.xlu1 %4580 }
 0xeda   :  { %7588 = vmatmul.mubr.msk.f32.vlgmr.msra.gmra.mrb[48].mxu1 %vm1029_vm1, %v7582_v2 }
 0xedb   :  { %8587 = vmatpush3.bf16.xpose.msk.msra.mxu1 %vm9831_vm2, %v8582_v6  ;;  %7601 = vmatprep.mubr.msk.f32.mxu1 %vm1029_vm1, %v4579_v49 }
 0xee2   :  { %7602 = vmatmul.mubr.msk.f32.vlgmr.msra.gmra.mrb[50].mxu1 %vm1029_vm1, %v4581_v28 }
 0xfad   :  { %v7589_v14 = vpop.f32.mrb[48].mxu1 }
 0xfae   :  { %v4466_v7 = vmul.f32 0.25, %v7589_v14  ;;  %v4456_v60 = vpop.f32.mrb[49].mxu1 }
 0xfaf   :  { %v4465_v51 = vmul.f32 0.25, %v4456_v60  ;;  %v4793_v60 = vld [vmem:[%s11749_s12 + $0x8] sm:$0xff] }
 0xfb0   :  { %v4468_v43 = vadd.f32 %v4466_v7, %v11488_v44  ;;  %v4792_v7 = vld [vmem:[%s11749_s12] sm:$0xff] }
 0xfb1   :  { %v4467_v45 = vadd.f32 %v4465_v51, %v11493_v0  ;;  %v8592_v51 = vpack.c.bf16 %v4793_v60, %v4792_v7 }
 0xfb2   :  { %v4472_v39 = vsel %vm1029_vm1, %v4468_v43, -inf }
 0xfb3   :  { %4473 = vmax.xlane.f32.xlu1 %v4472_v39  ;;  %v4469_v63 = vsel %vm1029_vm1, %v4467_v45, -inf }
 0xfb4   :  { %4470 = vmax.xlane.f32.xlu0 %v4469_v63 }
 0xfb5   :  { %v7603_v36 = vpop.f32.mrb[50].mxu1 }
 0xfb6   :  { %v4660_v23 = vpop.f32.mrb[51].mxu1  ;;  %v4670_v22 = vmul.f32 0.25, %v7603_v36 }
 0xfb7   :  { %v4669_v31 = vmul.f32 0.25, %v4660_v23 }
 0xfb8   :  { %v4672_v15 = vadd.f32 %v4670_v22, %v11488_v44 }
 0xfb9   :  { %v4671_v18 = vadd.f32 %v4669_v31, %v11493_v0 }
 0xfba   :  { %v4676_v19 = vsel %vm1029_vm1, %v4672_v15, -inf }
 0xfbb   :  { %v4673_v59 = vsel %vm1029_vm1, %v4671_v18, -inf }
 0xfbc   :  { %4674 = vmax.xlane.f32.xlu0 %v4673_v59 }
 0xfc0   :  { %4677 = vmax.xlane.f32.xlu0 %v4676_v19 }
0x1040   :  { %v4474_v4 = vpop.xlane.xlu1 %4473 }
0x1041   :  { %v4476_v41 = vsub.f32 %v4468_v43, %v4474_v4  ;;  %v4471_v35 = vpop.xlane.xlu0 %4470  ;;  %v4794_v43 = vld [vmem:[%s11749_s12 + $0x10] sm:$0xff] }
0x1042   :  { %v4475_v8 = vsub.f32 %v4467_v45, %v4471_v35  ;;  %v4795_v45 = vld [vmem:[%s11749_s12 + $0x18] sm:$0xff] }
0x1043   :  { %v4479_v9 = vmul.f32 1.442695, %v4476_v41  ;;  %v8596_v39 = vpack.c.bf16 %v4795_v45, %v4794_v43 }
0x1044   :  { %v4477_v17 = vmul.f32 1.442695, %v4475_v8 }
0x1045   :  { %9292 = vpow2.f32 %v4479_v9 }
0x1046   :  { %9294 = vpow2.f32 %v4477_v17 }
0x1049   :  { %v4675_v50 = vpop.xlane.xlu0 %4674 }
0x104a   :  { %v4679_v48 = vsub.f32 %v4671_v18, %v4675_v50 }
0x104c   :  { %v4681_v25 = vmul.f32 1.442695, %v4679_v48 }
0x104d   :  { %v4678_v57 = vpop.xlane.xlu0 %4677 }
0x104e   :  { %9296 = vpow2.f32 %v4681_v25  ;;  %v4680_v20 = vsub.f32 %v4672_v15, %v4678_v57 }
0x104f   :  { %v9293_v27 = vpop.eup %9292 }
0x1050   :  { %v9295_v32 = vpop.eup %9294  ;;  %v4683_v29 = vmul.f32 1.442695, %v4680_v20  ;;  %v4484_v47 = vsel %vm1029_vm1, %v9293_v27, 0.0 }
0x1051   :  { %4485 = vadd.xlane.f32.xlu1 %v4484_v47  ;;  %v4481_v16 = vsel %vm1029_vm1, %v9295_v32, 0.0  ;;  %v4906_v47 = vld [vmem:[%s11750_s13 + $0x8] sm:$0xff] }
0x1052   :  { %9298 = vpow2.f32 %v4683_v29  ;;  %4482 = vadd.xlane.f32.xlu0 %v4481_v16  ;;  %v4907_v16 = vld [vmem:[%s11750_s13 + $0x10] sm:$0xff] }
0x1058   :  { %v9297_v54 = vpop.eup %9296 }
0x1059   :  { %v4685_v10 = vsel %vm1029_vm1, %v9297_v54, 0.0 }
0x105a   :  { %4686 = vadd.xlane.f32.xlu0 %v4685_v10  ;;  %v4908_v10 = vld [vmem:[%s11750_s13 + $0x18] sm:$0xff] }
0x105c   :  { %v9299_v46 = vpop.eup %9298 }
0x105d   :  { %v4688_v53 = vsel %vm1029_vm1, %v9299_v46, 0.0 }
0x105e   :  { %4689 = vadd.xlane.f32.xlu1 %v4688_v53  ;;  %v4992_v53 = vld [vmem:[%s11751_s14] sm:$0xff] }
0x106f   :  { %9248 = vrot.lane.b32.xlu1 %v11466_v62, %s9354_s5 }
0x1070   :  { %9243 = vrot.lane.b32.xlu0 %v11466_v62, %s9355_s26 }
0x10de   :  { %v4486_v56 = vpop.xlane.xlu1 %4485 }
0x10df   :  { %v4483_v40 = vpop.xlane.xlu0 %4482 }
0x10e0   :  { %9300 = vrcp.f32 %v4483_v40  ;;  %v4993_v40 = vld [vmem:[%s11751_s14 + $0x8] sm:$0xff] }
0x10e1   :  { %9302 = vrcp.f32 %v4486_v56  ;;  %v4994_v56 = vld [vmem:[%s11751_s14 + $0x10] sm:$0xff] }
0x10e7   :  { %v4687_v52 = vpop.xlane.xlu0 %4686 }
0x10e8   :  { %9304 = vrcp.f32 %v4687_v52  ;;  %v8608_v52 = vpack.c.bf16 %v4993_v40, %v4992_v53 }
0x10ea   :  { %v9301_v21 = vpop.eup %9300 }
0x10eb   :  { %v4690_v33 = vpop.xlane.xlu1 %4689  ;;  %v9244_v3 = vpop.permute.xlu0 %9243  ;;  %v4488_v2 = vmul.f32 %v9301_v21, %v9295_v32  ;;  %v4995_v21 = vld [vmem:[%s11751_s14 + $0x18] sm:$0xff] }
0x10ec   :  { %9306 = vrcp.f32 %v4690_v33  ;;  %v9246_v58 = vunpack.i.h.bf16 %v9244_v3  ;;  %v9245_v12 = vunpack.i.l.bf16 %v9244_v3  ;;  %v9303_v26 = vpop.eup %9302  ;;  %v8612_v33 = vpack.c.bf16 %v4995_v21, %v4994_v56  ;;  %v4996_v3 = vld [vmem:[%s11751_s14 + $0x20] sm:$0xff] }
0x10ed   :  { %7594 = vmatprep.mubr.msk.f32.mxu0 %vm1029_vm1, %v4488_v2  ;;  %v4490_v42 = vmul.f32 %v9303_v26, %v9293_v27  ;;  %v4997_v2 = vld [vmem:[%s11751_s14 + $0x28] sm:$0xff] }
0x10ee   :  { %v8578_v30 = vpack.c.bf16 %v9246_v58, %v9245_v12  ;;  %v8616_v58 = vpack.c.bf16 %v4997_v2, %v4996_v3 }
0x10ef   :  { %v9249_v61 = vpop.permute.xlu1 %9248 }
0x10f0   :  { %v9251_v11 = vunpack.i.h.bf16 %v9249_v61  ;;  %v9250_v62 = vunpack.i.l.bf16 %v9249_v61  ;;  %8579 = vmatprep.subr.bf16.mxu0 %v8578_v30 }
0x10f1   :  { %8581 = vmatpush3.bf16.msra.mxu0 %v8578_v30 }
0x10f2   :  { %v9305_v38 = vpop.eup %9304  ;;  %v8588_v6 = vpack.c.bf16 %v9251_v11, %v9250_v62 }
0x10f3   :  { %v4692_v49 = vmul.f32 %v9305_v38, %v9297_v54 }
0x10f4   :  { %7595 = vmatmul.mubr.msk.f32.vlgmr.msra.gmra.mrb[112].mxu0 %vm1029_vm1, %v4490_v42  ;;  %8589 = vmatprep.subr.bf16.mxu0 %v8588_v6 }
0x10f5   :  { %8591 = vmatpush3.bf16.msra.mxu0 %v8588_v6  ;;  %7608 = vmatprep.mubr.msk.f32.mxu0 %vm1029_vm1, %v4692_v49 }
0x10f6   :  { %v9307_v28 = vpop.eup %9306  ;;  %8593 = vmatprep.subr.bf16.mxu0 %v8592_v51 }
0x10f7   :  { %v4694_v14 = vmul.f32 %v9307_v28, %v9299_v46  ;;  %v8604_v46 = vpack.c.bf16 %v4908_v10, %v4907_v16  ;;  %v4998_v28 = vld [vmem:[%s11751_s14 + $0x30] sm:$0xff] }
0x10f9   :  { %7609 = vmatmul.mubr.msk.f32.vlgmr.msra.gmra.mrb[114].mxu0 %vm1029_vm1, %v4694_v14  ;;  %v4999_v14 = vld [vmem:[%s11751_s14 + $0x38] sm:$0xff] }
0x10fa   :  { %8595 = vmatpush3.bf16.msra.mxu0 %v8592_v51  ;;  %v8620_v7 = vpack.c.bf16 %v4999_v14, %v4998_v28 }
0x10fb   :  { %8597 = vmatprep.subr.bf16.mxu0 %v8596_v39 }
0x10fe   :  { %8599 = vmatpush3.bf16.msra.mxu0 %v8596_v39 }
0x10ff   :  { %8609 = vmatprep.subr.bf16.mxu0 %v8608_v52 }
0x11c7   :  { %v7596_v63 = vpop.f32.mrb[112].mxu0 }
0x11c8   :  { %v4569_v36 = vpop.f32.mrb[113].mxu0 }
0x11cc   :  { %v7610_v23 = vpop.f32.mrb[114].mxu0 }
0x11cd   :  { %v4773_v22 = vpop.f32.mrb[115].mxu0 }
0x11ce   :  { %4784 = vrot.lane.b32.xlu1 %v4773_v22, %s9353_s10 }
0x11d2   :  { %4786 = vrot.lane.b32.xlu1 %v7610_v23, %s9353_s10 }
0x1240   :  { %v4785_v31 = vpop.permute.xlu1 %4784 }
0x1241   :  { %v4790_v18 = vsel %vm1029_vm1, %v4569_v36, %v4785_v31 }
0x1242   :  { %7619 = vmatprep.mubr.msk.f32.mxu0 %vm145_vm0, %v4790_v18 }
0x1244   :  { %v4787_v15 = vpop.permute.xlu1 %4786 }
0x1245   :  { %v4791_v59 = vsel %vm1029_vm1, %v7596_v63, %v4787_v15 }
0x1246   :  { %7620 = vmatmul.mubr.msk.f32.vlgmr.msra.gmra.mrb[116].mxu0 %vm145_vm0, %v4791_v59 }
0x1247   :  { %8611 = vmatpush3.bf16.msra.mxu0 %v8608_v52 }
0x1248   :  { %8613 = vmatprep.subr.bf16.mxu0 %v8612_v33 }
0x124b   :  { %8615 = vmatpush3.bf16.msra.mxu0 %v8612_v33 }
0x124c   :  { %8617 = vmatprep.subr.bf16.mxu0 %v8616_v58 }
0x124f   :  { %8619 = vmatpush3.bf16.msra.mxu0 %v8616_v58 }
0x1250   :  { %8621 = vmatprep.subr.bf16.mxu0 %v8620_v7 }
0x1253   :  { %8623 = vmatpush3.bf16.msra.mxu0 %v8620_v7 }
0x1319   :  { %v7621_v19 = vpop.f32.mrb[116].mxu0 }
0x131a   :  { %v4878_v4 = vadd.f32 %v7621_v19, %v11461_v13  ;;  %v4868_v41 = vpop.f32.mrb[117].mxu0 }
0x131b   :  { %v4877_v35 = vadd.f32 %v4868_v41, %v11454_v34  ;;  %v4905_v34 = vld [vmem:[%s11750_s13] sm:$0xff] }
0x131c   :  { %v4882_v8 = vsel %vm145_vm0, %v4878_v4, 0.0  ;;  %v8600_v54 = vpack.c.bf16 %v4906_v47, %v4905_v34 }
0x131d   :  { %4883 = vadd.xlane.f32.xlu1 %v4882_v8  ;;  %v4879_v9 = vsel %vm145_vm0, %v4877_v35, 0.0 }
0x131e   :  { %4880 = vadd.xlane.f32.xlu0 %v4879_v9  ;;  %8601 = vmatprep.subr.bf16.mxu1 %v8600_v54 }
0x131f   :  { %8603 = vmatpush3.bf16.msra.mxu1 %v8600_v54 }
0x1320   :  { %8605 = vmatprep.subr.bf16.mxu1 %v8604_v46 }
0x1323   :  { %8607 = vmatpush3.bf16.msra.mxu1 %v8604_v46 }
0x13aa   :  { %v4884_v17 = vpop.xlane.xlu1 %4883 }
0x13ab   :  { %v4886_v50 = vmul.f32 0.03125, %v4884_v17  ;;  %v4881_v48 = vpop.xlane.xlu0 %4880 }
0x13ac   :  { %v4885_v25 = vmul.f32 0.03125, %v4881_v48  ;;  %v6378_v48 = vld [vmem:[%s11746_s11 + $0x28] sm:$0xff] }
0x13ad   :  { %v4888_v57 = vsub.f32 %v4878_v4, %v4886_v50  ;;  %v6377_v50 = vld [vmem:[%s11746_s11 + $0x20] sm:$0xff] }
0x13ae   :  { %v4887_v20 = vsub.f32 %v4877_v35, %v4885_v25  ;;  %v6379_v25 = vld [vmem:[%s11746_s11 + $0x30] sm:$0xff] }
0x13af   :  { %v4890_v29 = vmul.f32 %v4888_v57, %v4888_v57 }
0x13b0   :  { %v4889_v27 = vmul.f32 %v4887_v20, %v4887_v20 }
0x13b1   :  { %v4894_v13 = vsel %vm145_vm0, %v4890_v29, 0.0 }
0x13b2   :  { %v4891_v32 = vsel %vm145_vm0, %v4889_v27, 0.0 }
0x13b3   :  { %4892 = vadd.xlane.f32.xlu0 %v4891_v32 }
0x13b7   :  { %4895 = vadd.xlane.f32.xlu0 %v4894_v13 }
0x1440   :  { %v4893_v12 = vpop.xlane.xlu0 %4892 }
0x1441   :  { %v4897_v30 = vmul.f32 0.03125, %v4893_v12 }
0x1443   :  { %v4899_v26 = vadd.f32 1e-05, %v4897_v30 }
0x1444   :  { %v4896_v61 = vpop.xlane.xlu0 %4895 }
0x1445   :  { %9308 = vrsqrt.f32 %v4899_v26  ;;  %v4898_v11 = vmul.f32 0.03125, %v4896_v61 }
0x1447   :  { %v4900_v62 = vadd.f32 1e-05, %v4898_v11 }
0x1449   :  { %9310 = vrsqrt.f32 %v4900_v62 }
0x144f   :  { %v9309_v38 = vpop.eup %9308 }
0x1450   :  { %v4903_v42 = vmul.f32 %v9309_v38, %v4887_v20  ;;  %v6380_v20 = vld [vmem:[%s11746_s11 + $0x38] sm:$0xff] }
0x1451   :  { %v8628_v27 = vpack.c.bf16 %v6380_v20, %v6379_v25 }
0x1452   :  { %7630 = vmatprep.mubr.msk.f32.mxu1 %vm145_vm0, %v4903_v42 }
0x1453   :  { %v9311_v6 = vpop.eup %9310 }
0x1454   :  { %v4904_v49 = vmul.f32 %v9311_v6, %v4888_v57  ;;  %v8624_v57 = vpack.c.bf16 %v6378_v48, %v6377_v50 }
0x1456   :  { %7631 = vmatmul.mubr.msk.f32.vlgmr.msra.gmra.mrb[52].mxu1 %vm145_vm0, %v4904_v49  ;;  %8625 = vmatprep.subr.bf16.mxu1 %v8624_v57 }
0x1457   :  { %8627 = vmatpush3.bf16.msra.mxu1 %v8624_v57 }
0x1458   :  { %8629 = vmatprep.subr.bf16.mxu1 %v8628_v27 }
0x145b   :  { %8631 = vmatpush3.bf16.msra.mxu1 %v8628_v27 }
0x1529   :  { %v7632_v60 = vpop.f32.mrb[52].mxu1 }
0x152a   :  { %v4981_v51 = vpop.f32.mrb[53].mxu1  ;;  %v4991_v45 = vmax.f32 %v7632_v60, 0.0 }
0x152b   :  { %v4990_v43 = vmax.f32 %v4981_v51, 0.0 }
0x152d   :  { %7649 = vmatprep.mubr.msk.f32.mxu0 %vm1501_vm3, %v4990_v43 }
0x152e   :  { %7650 = vmatmul.mubr.msk.f32.vlgmr.msra.gmra.mrb[118].mxu0 %vm1501_vm3, %v4991_v45 }
0x1601   :  { %v7651_v39 = vpop.f32.mrb[118].mxu0 }
0x1602   :  { %v5078_v63 = vadd.f32 %v7651_v39, %v4904_v49  ;;  %v5072_v36 = vpop.f32.mrb[119].mxu0 }
0x1603   :  { %v5073_v23 = vadd.f32 %v5072_v36, %v4903_v42 }
0x1604   :  { %v5084_v22 = vsel %vm145_vm0, %v5078_v63, 0.0 }
0x1605   :  { %5085 = vadd.xlane.f32.xlu1 %v5084_v22  ;;  %v5081_v31 = vsel %vm145_vm0, %v5073_v23, 0.0 }
0x1606   :  { %5082 = vadd.xlane.f32.xlu0 %v5081_v31 }
0x1692   :  { %v5086_v18 = vpop.xlane.xlu1 %5085 }
0x1693   :  { %v5088_v15 = vmul.f32 0.03125, %v5086_v18  ;;  %v5083_v59 = vpop.xlane.xlu0 %5082 }
0x1694   :  { %v5087_v19 = vmul.f32 0.03125, %v5083_v59 }
0x1695   :  { %v5090_v4 = vsub.f32 %v5078_v63, %v5088_v15 }
0x1696   :  { %v5089_v41 = vsub.f32 %v5073_v23, %v5087_v19 }
0x1697   :  { %v5092_v35 = vmul.f32 %v5090_v4, %v5090_v4 }
0x1698   :  { %v5091_v8 = vmul.f32 %v5089_v41, %v5089_v41 }
0x1699   :  { %v5096_v9 = vsel %vm145_vm0, %v5092_v35, 0.0 }
0x169a   :  { %5097 = vadd.xlane.f32.xlu1 %v5096_v9  ;;  %v5093_v17 = vsel %vm145_vm0, %v5091_v8, 0.0 }
0x169b   :  { %5094 = vadd.xlane.f32.xlu0 %v5093_v17 }
0x1727   :  { %v5098_v32 = vpop.xlane.xlu1 %5097 }
0x1728   :  { %v5100_v29 = vmul.f32 0.03125, %v5098_v32  ;;  %v5095_v13 = vpop.xlane.xlu0 %5094 }
0x1729   :  { %v5099_v34 = vmul.f32 0.03125, %v5095_v13 }
0x172a   :  { %v5102_v47 = vadd.f32 1e-05, %v5100_v29 }
0x172b   :  { %v5101_v16 = vadd.f32 1e-05, %v5099_v34 }
0x172c   :  { %9312 = vrsqrt.f32 %v5102_v47 }
0x172d   :  { %9314 = vrsqrt.f32 %v5101_v16 }
0x1736   :  { %v9313_v54 = vpop.eup %9312 }
0x1737   :  { %v9315_v10 = vpop.eup %9314  ;;  %v11597_v53 = vmul.f32 %v9313_v54, %v5090_v4 }
0x1738   :  { %v11595_v46 = vmul.f32 %v9315_v10, %v5089_v41 }
0x173a   :  { %7660 = vmatprep.mubr.msk.f32.mxu1 %vm145_vm0, %v11595_v46 }
0x173b   :  { %7661 = vmatmul.mubr.msk.f32.vlgmr.msra.gmra.mrb[54].mxu1 %vm145_vm0, %v11597_v53 }
0x180e   :  { %v7662_v40 = vpop.f32.mrb[54].mxu1 }
0x180f   :  { %v5184_v56 = vpop.f32.mrb[55].mxu1 }
0x1810   :  { %7667 = vmatprep.mubr.msk.f32.mxu1 %vm1029_vm1, %v5184_v56  ;;  %v11604_v52 = vpack.i.bf16 %v7662_v40, %v5184_v56 }
0x1812   :  { %9258 = vrot.lane.b32.xlu1 %v11604_v52, %s9352_s3  ;;  %9253 = vrot.lane.b32.xlu0 %v11604_v52, %s9350_s23 }
0x1816   :  { %5395 = vrot.lane.b32.xlu1 %v5184_v56, %s9351_s24 }
0x181a   :  { %5397 = vrot.lane.b32.xlu1 %v7662_v40, %s9351_s24 }
0x1884   :  { %v9259_v21 = vpop.permute.xlu1 %9258  ;;  %v9254_v33 = vpop.permute.xlu0 %9253 }
0x1885   :  { %v9261_v3 = vunpack.i.h.bf16 %v9259_v21  ;;  %v9260_v2 = vunpack.i.l.bf16 %v9259_v21  ;;  %v9256_v58 = vunpack.i.h.bf16 %v9254_v33  ;;  %v9255_v12 = vunpack.i.l.bf16 %v9254_v33 }
0x1887   :  { %v8632_v30 = vpack.c.bf16 %v9256_v58, %v9255_v12  ;;  %v8642_v26 = vpack.c.bf16 %v9261_v3, %v9260_v2 }
0x1888   :  { %v5396_v61 = vpop.permute.xlu1 %5395 }
0x1889   :  { %8634 = vmatprep.subr.msk.bf16.mxu1 %vm9831_vm2, %v8632_v30 }
0x188a   :  { %8637 = vmatpush3.bf16.xpose.msk.msra.mxu1 %vm9831_vm2, %v8632_v30 }
0x188b   :  { %8644 = vmatprep.subr.msk.bf16.mxu1 %vm9831_vm2, %v8642_v26 }
0x188c   :  { %v5398_v11 = vpop.permute.xlu1 %5397 }
0x1891   :  { %7668 = vmatmul.mubr.msk.f32.vlgmr.msra.gmra.mrb[56].mxu1 %vm1029_vm1, %v7662_v40 }
0x1892   :  { %8647 = vmatpush3.bf16.xpose.msk.msra.mxu1 %vm9831_vm2, %v8642_v26  ;;  %7681 = vmatprep.mubr.msk.f32.mxu1 %vm1029_vm1, %v5396_v61  ;;  %v6395_v61 = vld [vmem:[%s11749_s12 + $0x20] sm:$0xff] }
0x1899   :  { %7682 = vmatmul.mubr.msk.f32.vlgmr.msra.gmra.mrb[58].mxu1 %vm1029_vm1, %v5398_v11  ;;  %v6396_v11 = vld [vmem:[%s11749_s12 + $0x28] sm:$0xff] }
0x1964   :  { %v7669_v62 = vpop.f32.mrb[56].mxu1 }
0x1965   :  { %v5283_v38 = vmul.f32 0.25, %v7669_v62  ;;  %v5273_v42 = vpop.f32.mrb[57].mxu1  ;;  %v8652_v62 = vpack.c.bf16 %v6396_v11, %v6395_v61 }
0x1966   :  { %v5282_v6 = vmul.f32 0.25, %v5273_v42  ;;  %v6398_v42 = vld [vmem:[%s11749_s12 + $0x38] sm:$0xff] }
0x1967   :  { %v5285_v49 = vadd.f32 %v5283_v38, %v11488_v44  ;;  %v6397_v38 = vld [vmem:[%s11749_s12 + $0x30] sm:$0xff] }
0x1968   :  { %v5284_v28 = vadd.f32 %v5282_v6, %v11493_v0  ;;  %v8656_v6 = vpack.c.bf16 %v6398_v42, %v6397_v38 }
0x1969   :  { %v5289_v14 = vsel %vm1029_vm1, %v5285_v49, -inf }
0x196a   :  { %5290 = vmax.xlane.f32.xlu1 %v5289_v14  ;;  %v5286_v7 = vsel %vm1029_vm1, %v5284_v28, -inf }
0x196b   :  { %5287 = vmax.xlane.f32.xlu0 %v5286_v7 }
0x196c   :  { %v7683_v24 = vpop.f32.mrb[58].mxu1 }
0x196d   :  { %v5477_v60 = vpop.f32.mrb[59].mxu1  ;;  %v5487_v51 = vmul.f32 0.25, %v7683_v24 }
0x196e   :  { %v5486_v43 = vmul.f32 0.25, %v5477_v60 }
0x196f   :  { %v5489_v39 = vadd.f32 %v5487_v51, %v11488_v44 }
0x1970   :  { %v5488_v45 = vadd.f32 %v5486_v43, %v11493_v0 }
0x1971   :  { %v5493_v36 = vsel %vm1029_vm1, %v5489_v39, -inf }
0x1972   :  { %v5490_v63 = vsel %vm1029_vm1, %v5488_v45, -inf }
0x1973   :  { %5491 = vmax.xlane.f32.xlu0 %v5490_v63 }
0x1977   :  { %5494 = vmax.xlane.f32.xlu0 %v5493_v36 }
0x19f7   :  { %v5291_v23 = vpop.xlane.xlu1 %5290 }
0x19f8   :  { %v5293_v22 = vsub.f32 %v5285_v49, %v5291_v23  ;;  %v5288_v31 = vpop.xlane.xlu0 %5287 }
0x19f9   :  { %v5292_v18 = vsub.f32 %v5284_v28, %v5288_v31 }
0x19fa   :  { %v5296_v15 = vmul.f32 1.442695, %v5293_v22 }
0x19fb   :  { %v5294_v59 = vmul.f32 1.442695, %v5292_v18 }
0x19fc   :  { %9316 = vpow2.f32 %v5296_v15 }
0x19fd   :  { %9318 = vpow2.f32 %v5294_v59 }
0x1a00   :  { %v5492_v19 = vpop.xlane.xlu0 %5491 }
0x1a01   :  { %v5496_v4 = vsub.f32 %v5488_v45, %v5492_v19 }
0x1a03   :  { %v5498_v41 = vmul.f32 1.442695, %v5496_v4 }
0x1a04   :  { %v5495_v0 = vpop.xlane.xlu0 %5494 }
0x1a05   :  { %9320 = vpow2.f32 %v5498_v41  ;;  %v5497_v44 = vsub.f32 %v5489_v39, %v5495_v0 }
0x1a06   :  { %v9317_v35 = vpop.eup %9316 }
0x1a07   :  { %v9319_v8 = vpop.eup %9318  ;;  %v5500_v9 = vmul.f32 1.442695, %v5497_v44  ;;  %v5301_v17 = vsel %vm1029_vm1, %v9317_v35, 0.0 }
0x1a08   :  { %5302 = vadd.xlane.f32.xlu1 %v5301_v17  ;;  %v5298_v50 = vsel %vm1029_vm1, %v9319_v8, 0.0  ;;  %v6404_v17 = vld [vmem:[%s11750_s13 + $0x38] sm:$0xff] }
0x1a09   :  { %9322 = vpow2.f32 %v5500_v9  ;;  %5299 = vadd.xlane.f32.xlu0 %v5298_v50 }
0x1a0f   :  { %v9321_v48 = vpop.eup %9320 }
0x1a10   :  { %v5502_v25 = vsel %vm1029_vm1, %v9321_v48, 0.0 }
0x1a11   :  { %5503 = vadd.xlane.f32.xlu0 %v5502_v25  ;;  %v6408_v25 = vld [vmem:[%s11751_s14 + $0x48] sm:$0xff] }
0x1a13   :  { %v9323_v57 = vpop.eup %9322 }
0x1a14   :  { %v5505_v20 = vsel %vm1029_vm1, %v9323_v57, 0.0 }
0x1a15   :  { %5506 = vadd.xlane.f32.xlu1 %v5505_v20 }
0x1a26   :  { %9268 = vrot.lane.b32.xlu1 %v11604_v52, %s9354_s5  ;;  %s9357_s5 = smov 32  }
0x1a27   :  { %9263 = vrot.lane.b32.xlu0 %v11604_v52, %s9355_s26 }
0x1a95   :  { %v5303_v32 = vpop.xlane.xlu1 %5302 }
0x1a96   :  { %v5300_v27 = vpop.xlane.xlu0 %5299 }
0x1a97   :  { %9324 = vrcp.f32 %v5300_v27  ;;  %v6410_v27 = vld [vmem:[%s11751_s14 + $0x58] sm:$0xff] }
0x1a98   :  { %9326 = vrcp.f32 %v5303_v32 }
0x1a9e   :  { %v5504_v29 = vpop.xlane.xlu0 %5503 }
0x1a9f   :  { %9328 = vrcp.f32 %v5504_v29  ;;  %v6411_v29 = vld [vmem:[%s11751_s14 + $0x60] sm:$0xff] }
0x1aa1   :  { %v9325_v13 = vpop.eup %9324 }
0x1aa2   :  { %v5507_v34 = vpop.xlane.xlu1 %5506  ;;  %v9264_v47 = vpop.permute.xlu0 %9263  ;;  %v5305_v16 = vmul.f32 %v9325_v13, %v9319_v8  ;;  %v6403_v8 = vld [vmem:[%s11750_s13 + $0x30] sm:$0xff]  ;;  %v6412_v13 = vld [vmem:[%s11751_s14 + $0x68] sm:$0xff] }
0x1aa3   :  { %9330 = vrcp.f32 %v5507_v34  ;;  %v9266_v54 = vunpack.i.h.bf16 %v9264_v47  ;;  %v9265_v10 = vunpack.i.l.bf16 %v9264_v47  ;;  %v9327_v56 = vpop.eup %9326  ;;  %v8664_v50 = vpack.c.bf16 %v6404_v17, %v6403_v8 }
0x1aa4   :  { %7674 = vmatprep.mubr.msk.f32.mxu0 %vm1029_vm1, %v5305_v16  ;;  %v5307_v2 = vmul.f32 %v9327_v56, %v9317_v35  ;;  %v6402_v35 = vld [vmem:[%s11750_s13 + $0x28] sm:$0xff]  ;;  %v8676_v34 = vpack.c.bf16 %v6412_v13, %v6411_v29 }
0x1aa5   :  { %v8638_v40 = vpack.c.bf16 %v9266_v54, %v9265_v10 }
0x1aa6   :  { %v9269_v21 = vpop.permute.xlu1 %9268 }
0x1aa7   :  { %v9271_v33 = vunpack.i.h.bf16 %v9269_v21  ;;  %v9270_v52 = vunpack.i.l.bf16 %v9269_v21  ;;  %8639 = vmatprep.subr.bf16.mxu0 %v8638_v40 }
0x1aa8   :  { %8641 = vmatpush3.bf16.msra.mxu0 %v8638_v40 }
0x1aa9   :  { %v9329_v3 = vpop.eup %9328  ;;  %v8648_v58 = vpack.c.bf16 %v9271_v33, %v9270_v52 }
0x1aaa   :  { %v5509_v12 = vmul.f32 %v9329_v3, %v9321_v48  ;;  %v6407_v48 = vld [vmem:[%s11751_s14 + $0x40] sm:$0xff] }
0x1aab   :  { %7675 = vmatmul.mubr.msk.f32.vlgmr.msra.gmra.mrb[120].mxu0 %vm1029_vm1, %v5307_v2  ;;  %8649 = vmatprep.subr.bf16.mxu0 %v8648_v58  ;;  %v8668_v20 = vpack.c.bf16 %v6408_v25, %v6407_v48  ;;  %v6413_v2 = vld [vmem:[%s11751_s14 + $0x70] sm:$0xff] }
0x1aac   :  { %8651 = vmatpush3.bf16.msra.mxu0 %v8648_v58  ;;  %7688 = vmatprep.mubr.msk.f32.mxu0 %vm1029_vm1, %v5509_v12  ;;  %v6414_v58 = vld [vmem:[%s11751_s14 + $0x78] sm:$0xff] }
0x1aad   :  { %v9331_v30 = vpop.eup %9330  ;;  %8653 = vmatprep.subr.bf16.mxu0 %v8652_v62  ;;  %v8680_v12 = vpack.c.bf16 %v6414_v58, %v6413_v2 }
0x1aae   :  { %v5511_v26 = vmul.f32 %v9331_v30, %v9323_v57  ;;  %v6409_v57 = vld [vmem:[%s11751_s14 + $0x50] sm:$0xff]  ;;  %s9356_s14 = smov 36  }
0x1aaf   :  { %v8672_v32 = vpack.c.bf16 %v6410_v27, %v6409_v57 }
0x1ab0   :  { %7689 = vmatmul.mubr.msk.f32.vlgmr.msra.gmra.mrb[122].mxu0 %vm1029_vm1, %v5511_v26 }
0x1ab1   :  { %8655 = vmatpush3.bf16.msra.mxu0 %v8652_v62 }
0x1ab2   :  { %8657 = vmatprep.subr.bf16.mxu0 %v8656_v6 }
0x1ab5   :  { %8659 = vmatpush3.bf16.msra.mxu0 %v8656_v6 }
0x1ab6   :  { %8669 = vmatprep.subr.bf16.mxu0 %v8668_v20 }
0x1b7e   :  { %v7676_v49 = vpop.f32.mrb[120].mxu0 }
0x1b7f   :  { %v5386_v28 = vpop.f32.mrb[121].mxu0 }
0x1b83   :  { %v7690_v14 = vpop.f32.mrb[122].mxu0 }
0x1b84   :  { %v5590_v7 = vpop.f32.mrb[123].mxu0 }
0x1b85   :  { %5601 = vrot.lane.b32.xlu1 %v5590_v7, %s9353_s10 }
0x1b89   :  { %5603 = vrot.lane.b32.xlu1 %v7690_v14, %s9353_s10 }
0x1bf7   :  { %v5602_v24 = vpop.permute.xlu1 %5601 }
0x1bf8   :  { %v5607_v60 = vsel %vm1029_vm1, %v5386_v28, %v5602_v24 }
0x1bf9   :  { %7699 = vmatprep.mubr.msk.f32.mxu0 %vm145_vm0, %v5607_v60 }
0x1bfb   :  { %v5604_v51 = vpop.permute.xlu1 %5603 }
0x1bfc   :  { %v5608_v43 = vsel %vm1029_vm1, %v7676_v49, %v5604_v51 }
0x1bfd   :  { %7700 = vmatmul.mubr.msk.f32.vlgmr.msra.gmra.mrb[124].mxu0 %vm145_vm0, %v5608_v43 }
0x1bfe   :  { %8671 = vmatpush3.bf16.msra.mxu0 %v8668_v20 }
0x1bff   :  { %8673 = vmatprep.subr.bf16.mxu0 %v8672_v32 }
0x1c02   :  { %8675 = vmatpush3.bf16.msra.mxu0 %v8672_v32 }
0x1c03   :  { %8677 = vmatprep.subr.bf16.mxu0 %v8676_v34 }
0x1c06   :  { %8679 = vmatpush3.bf16.msra.mxu0 %v8676_v34 }
0x1c07   :  { %8681 = vmatprep.subr.bf16.mxu0 %v8680_v12 }
0x1c0a   :  { %8683 = vmatpush3.bf16.msra.mxu0 %v8680_v12 }
0x1cd0   :  { %v7701_v45 = vpop.f32.mrb[124].mxu0 }
0x1cd1   :  { %v5696_v39 = vadd.f32 %v7701_v45, %v11597_v53  ;;  %v5686_v63 = vpop.f32.mrb[125].mxu0 }
0x1cd2   :  { %v5695_v36 = vadd.f32 %v5686_v63, %v11595_v46  ;;  %v6401_v46 = vld [vmem:[%s11750_s13 + $0x20] sm:$0xff] }
0x1cd3   :  { %v5700_v23 = vsel %vm145_vm0, %v5696_v39, 0.0  ;;  %v8660_v9 = vpack.c.bf16 %v6402_v35, %v6401_v46  ;;  %v12068_v46 = vld [vmem:[#allocation76_spill] sm:$0xff] }
0x1cd4   :  { %5701 = vadd.xlane.f32.xlu1 %v5700_v23  ;;  %v5697_v22 = vsel %vm145_vm0, %v5695_v36, 0.0 }
0x1cd5   :  { %5698 = vadd.xlane.f32.xlu0 %v5697_v22  ;;  %8661 = vmatprep.subr.bf16.mxu1 %v8660_v9 }
0x1cd6   :  { %8663 = vmatpush3.bf16.msra.mxu1 %v8660_v9 }
0x1cd7   :  { %8665 = vmatprep.subr.bf16.mxu1 %v8664_v50 }
0x1cda   :  { %8667 = vmatpush3.bf16.msra.mxu1 %v8664_v50 }
0x1d61   :  { %v5702_v31 = vpop.xlane.xlu1 %5701 }
0x1d62   :  { %v5704_v18 = vmul.f32 0.03125, %v5702_v31  ;;  %v5699_v15 = vpop.xlane.xlu0 %5698 }
0x1d63   :  { %v5703_v59 = vmul.f32 0.03125, %v5699_v15 }
0x1d64   :  { %v5706_v19 = vsub.f32 %v5696_v39, %v5704_v18 }
0x1d65   :  { %v5705_v4 = vsub.f32 %v5695_v36, %v5703_v59 }
0x1d66   :  { %v5708_v44 = vmul.f32 %v5706_v19, %v5706_v19 }
0x1d67   :  { %v5707_v41 = vmul.f32 %v5705_v4, %v5705_v4 }
0x1d68   :  { %v5712_v53 = vsel %vm145_vm0, %v5708_v44, 0.0 }
0x1d69   :  { %v5709_v0 = vsel %vm145_vm0, %v5707_v41, 0.0 }
0x1d6a   :  { %5710 = vadd.xlane.f32.xlu0 %v5709_v0 }
0x1d6e   :  { %5713 = vadd.xlane.f32.xlu0 %v5712_v53 }
0x1df7   :  { %v5711_v47 = vpop.xlane.xlu0 %5710 }
0x1df8   :  { %v5715_v16 = vmul.f32 0.03125, %v5711_v47 }
0x1dfa   :  { %v5717_v54 = vadd.f32 1e-05, %v5715_v16 }
0x1dfb   :  { %v5714_v10 = vpop.xlane.xlu0 %5713 }
0x1dfc   :  { %9332 = vrsqrt.f32 %v5717_v54  ;;  %v5716_v40 = vmul.f32 0.03125, %v5714_v10 }
0x1dfe   :  { %v5718_v56 = vadd.f32 1e-05, %v5716_v40 }
0x1e00   :  { %9334 = vrsqrt.f32 %v5718_v56 }
0x1e06   :  { %v9333_v21 = vpop.eup %9332 }
0x1e07   :  { %v5721_v33 = vmul.f32 %v9333_v21, %v5705_v4  ;;  %v12067_v4 = vld [vmem:[#allocation42_spill] sm:$0xff] }
0x1e09   :  { %7710 = vmatprep.mubr.msk.f32.mxu1 %vm145_vm0, %v5721_v33 }
0x1e0a   :  { %v9335_v52 = vpop.eup %9334 }
0x1e0b   :  { %v5722_v3 = vmul.f32 %v9335_v52, %v5706_v19 }
0x1e0d   :  { %7711 = vmatmul.mubr.msk.f32.vlgmr.msra.gmra.mrb[60].mxu1 %vm145_vm0, %v5722_v3 }
0x1ee0   :  { %v7712_v30 = vpop.f32.mrb[60].mxu1 }
0x1ee1   :  { %v5800_v26 = vpop.f32.mrb[61].mxu1  ;;  %v5810_v11 = vmax.f32 %v7712_v30, 0.0 }
0x1ee2   :  { %v5809_v61 = vmax.f32 %v5800_v26, 0.0 }
0x1ee4   :  { %7729 = vmatprep.mubr.msk.f32.mxu0 %vm1501_vm3, %v5809_v61 }
0x1ee5   :  { %7730 = vmatmul.mubr.msk.f32.vlgmr.msra.gmra.mrb[126].mxu0 %vm1501_vm3, %v5810_v11 }
0x1fb8   :  { %v7731_v62 = vpop.f32.mrb[126].mxu0 }
0x1fb9   :  { %v5898_v38 = vadd.f32 %v7731_v62, %v5722_v3  ;;  %v5892_v42 = vpop.f32.mrb[127].mxu0 }
0x1fba   :  { %v5893_v6 = vadd.f32 %v5892_v42, %v5721_v33 }
0x1fbb   :  { %v5904_v49 = vsel %vm145_vm0, %v5898_v38, 0.0 }
0x1fbc   :  { %5905 = vadd.xlane.f32.xlu1 %v5904_v49  ;;  %v5901_v28 = vsel %vm145_vm0, %v5893_v6, 0.0 }
0x1fbd   :  { %5902 = vadd.xlane.f32.xlu0 %v5901_v28 }
0x2049   :  { %v5906_v14 = vpop.xlane.xlu1 %5905 }
0x204a   :  { %v5908_v7 = vmul.f32 0.03125, %v5906_v14  ;;  %v5903_v24 = vpop.xlane.xlu0 %5902 }
0x204b   :  { %v5907_v60 = vmul.f32 0.03125, %v5903_v24 }
0x204c   :  { %v5910_v51 = vsub.f32 %v5898_v38, %v5908_v7 }
0x204d   :  { %v5909_v43 = vsub.f32 %v5893_v6, %v5907_v60 }
0x204e   :  { %v5912_v45 = vmul.f32 %v5910_v51, %v5910_v51 }
0x204f   :  { %v5911_v39 = vmul.f32 %v5909_v43, %v5909_v43 }
0x2050   :  { %v5916_v63 = vsel %vm145_vm0, %v5912_v45, 0.0 }
0x2051   :  { %5917 = vadd.xlane.f32.xlu1 %v5916_v63  ;;  %v5913_v36 = vsel %vm145_vm0, %v5911_v39, 0.0 }
0x2052   :  { %5914 = vadd.xlane.f32.xlu0 %v5913_v36 }
0x2062   :  { %4280 = vrot.lane.b32.xlu1 %v11345_v1, %s9356_s14 }
0x2068   :  { %4278 = vrot.lane.b32.xlu0 %v11333_v55, %s9356_s14 }
0x20de   :  { %v5918_v23 = vpop.xlane.xlu1 %5917 }
0x20df   :  { %v5920_v22 = vmul.f32 0.03125, %v5918_v23  ;;  %v5915_v31 = vpop.xlane.xlu0 %5914 }
0x20e0   :  { %v5919_v18 = vmul.f32 0.03125, %v5915_v31 }
0x20e1   :  { %v5922_v15 = vadd.f32 1e-05, %v5920_v22 }
0x20e2   :  { %v5921_v59 = vadd.f32 1e-05, %v5919_v18  ;;  %v4281_v1 = vpop.permute.xlu1 %4280 }
0x20e3   :  { %9336 = vrsqrt.f32 %v5922_v15  ;;  %v4279_v19 = vpop.permute.xlu0 %4278  ;;  %v4285_v35 = vsel %vm1733_vm4, %v12068_v46, %v4281_v1 }
0x20e4   :  { %v4284_v41 = vsel %vm1733_vm4, %v12067_v4, %v4279_v19  ;;  %9338 = vrsqrt.f32 %v5921_v59 }
0x20e5   :  { %5937 = vrot.lane.b32.xlu0 %v4284_v41, %s9355_s26 }
0x20ed   :  { %v9337_v0 = vpop.eup %9336 }
0x20ee   :  { %v5926_v44 = vmul.f32 %v9337_v0, %v5910_v51  ;;  %v9339_v53 = vpop.eup %9338 }
0x20ef   :  { %v5925_v55 = vmul.f32 %v9339_v53, %v5909_v43 }
0x20f0   :  { %5931 = vrot.lane.b32.xlu1 %v5926_v44, %s9357_s5 }
0x20f4   :  { %5929 = vrot.lane.b32.xlu1 %v5925_v55, %s9357_s5 }
0x20f8   :  { %5939 = vrot.lane.b32.xlu1 %v4285_v35, %s9355_s26 }
0x2157   :  { %v5938_v8 = vpop.permute.xlu0 %5937 }
0x2158   :  { %v5948_v9 = vsel %vm5947_vm6, %v5938_v8, 0.0 }
0x2159   :  { %5951 = vst [vmem:[%s11752_s15 + $0x8] sm:$0xff] %v5948_v9 }
0x2162   :  { %v5932_v17 = vpop.permute.xlu1 %5931 }
0x2163   :  { %v5944_v57 = vsel %vm145_vm0, %v11456_v5, %v5932_v17 }
0x2166   :  { %v5930_v50 = vpop.permute.xlu1 %5929 }
0x2167   :  { %v5943_v48 = vsel %vm145_vm0, %v11451_v37, %v5930_v50 }
0x2168   :  { %v5945_v25 = vsel %vm1501_vm3, %v5943_v48, %v5938_v8 }
0x2169   :  { %5950 = vst [vmem:[%s11752_s15] sm:$0xff] %v5945_v25 }
0x216a   :  { %v5940_v20 = vpop.permute.xlu1 %5939 }
0x216b   :  { %v5946_v27 = vsel %vm1501_vm3, %v5944_v57, %v5940_v20  ;;  %v5949_v32 = vsel %vm5947_vm6, %v5940_v20, 0.0 }
0x216c   :  { %5952 = vst [vmem:[%s11752_s15 + $0x10] sm:$0xff] %v5946_v27  ;;  %5953 = vst [vmem:[%s11752_s15 + $0x18] sm:$0xff] %v5949_v32 }

</bundles_post_ra>
